<compile_context>
chip_gen: v7x
topology: tpu7x:2x2x1
jax: 0.10.0
libtpu: 0.0.40
codegen_flags: <defaults>
</compile_context>

<pallas_src>
import math
from functools import partial

import numpy as np
import jax
import jax.numpy as jnp
from jax.experimental import pallas as pl
from jax.experimental.pallas import tpu as pltpu


_PAR = pltpu.CompilerParams(dimension_semantics=("parallel",))
_PAR_BIG = pltpu.CompilerParams(dimension_semantics=("parallel",),
                                vmem_limit_bytes=48 * 1024 * 1024)


def _round_up(x, m):
    return ((x + m - 1) // m) * m


def _pick_bt(B, L, target_rows=256):
    """Pick a batch tile (divisor of B) so Bt*L ~ target_rows, keeping >=2 grid steps."""
    want = max(1, -(-target_rows // L))          # ceil(target_rows / L)
    bt = 1
    for d in range(1, B + 1):
        if B % d == 0 and d <= want:
            bt = d
    if bt == B and B > 1:                        # keep >=2 grid steps (v7x 2-TC split)
        for d in range(B - 1, 0, -1):
            if B % d == 0:
                bt = d
                break
    return bt


# ----------------------------------------------------------------------------
# Kernel helpers (traced inside kernels; all matmuls bf16 in / f32 accumulate)
# ----------------------------------------------------------------------------

def _decomp_into(r, A, inv_k, s_ref, t_ref):
    """Per-batch series_decomp: trend = (A_counts @ r) / k, seasonal = r - trend.
    r: (Bt, L, D) f32, A: (L, L) bf16 integer window counts."""
    Bt = r.shape[0]
    for b in range(Bt):
        rb = r[b]
        tr = jnp.dot(A, rb.astype(jnp.bfloat16),
                     preferred_element_type=jnp.float32) * inv_k
        s_ref[b] = rb - tr
        if t_ref is not None:
            t_ref[b] = tr


def _proj_residual(attn_ref, x_ref, wo_ref, bo_ref):
    Bt, L, Dm = x_ref.shape
    a2 = attn_ref[...].reshape(Bt * L, Dm).astype(jnp.bfloat16)
    proj = jnp.dot(a2, wo_ref[...], preferred_element_type=jnp.float32) + bo_ref[...]
    return x_ref[...] + proj.reshape(Bt, L, Dm)


def _ffn_residual(x_ref, w1_ref, w2_ref):
    Bt, L, Dm = x_ref.shape
    x = x_ref[...]
    h = jnp.maximum(
        jnp.dot(x.reshape(Bt * L, Dm).astype(jnp.bfloat16), w1_ref[...],
                preferred_element_type=jnp.float32), 0.0)
    y = jnp.dot(h.astype(jnp.bfloat16), w2_ref[...],
                preferred_element_type=jnp.float32)
    return x + y.reshape(Bt, L, Dm)


def _my_layernorm_body(x, g, b):
    """my_Layernorm: LayerNorm(x) minus its per-batch mean over the sequence axis."""
    mu = jnp.mean(x, axis=-1, keepdims=True)
    var = jnp.mean(jnp.square(x - mu), axis=-1, keepdims=True)
    xh = (x - mu) * jax.lax.rsqrt(var + 1e-5) * g + b
    return xh - jnp.mean(xh, axis=1, keepdims=True)


# ----------------------------------------------------------------------------
# Pallas kernels (one grid step == Bt batch elements; activation refs are 3-D)
# ----------------------------------------------------------------------------

def _linear_kernel(x_ref, w_ref, b_ref, o_ref):
    """o = x @ w + b on the batch-folded operand."""
    Bt, M, K = x_ref.shape
    N = w_ref.shape[1]
    x2 = x_ref[...].reshape(Bt * M, K).astype(jnp.bfloat16)
    y = jnp.dot(x2, w_ref[...], preferred_element_type=jnp.float32) + b_ref[...]
    o_ref[...] = y.reshape(Bt, M, N)


def _q_kv_kernel(x_ref, cr_ref, wq_ref, bq_ref, wkv_ref, bkv_ref, q_ref, kv_ref):
    """Cross-attention projections: q = x@wq+bq ; kv = cross@[wk|wv]+b."""
    Bt, L, Dm = x_ref.shape
    S = cr_ref.shape[1]
    Nq, Nkv = wq_ref.shape[1], wkv_ref.shape[1]
    xq = x_ref[...].reshape(Bt * L, Dm).astype(jnp.bfloat16)
    q_ref[...] = (jnp.dot(xq, wq_ref[...], preferred_element_type=jnp.float32)
                  + bq_ref[...]).reshape(Bt, L, Nq)
    xc = cr_ref[...].reshape(Bt * S, Dm).astype(jnp.bfloat16)
    kv_ref[...] = (jnp.dot(xc, wkv_ref[...], preferred_element_type=jnp.float32)
                   + bkv_ref[...]).reshape(Bt, S, Nkv)


def _decomp_kernel(x_ref, A_ref, s_ref, t_ref, *, inv_k):
    _decomp_into(x_ref[...], A_ref[...], inv_k, s_ref, t_ref)


def _proj_res_decomp_kernel(attn_ref, x_ref, wo_ref, bo_ref, A_ref, s_ref, t_ref, *, inv_k):
    _decomp_into(_proj_residual(attn_ref, x_ref, wo_ref, bo_ref),
                 A_ref[...], inv_k, s_ref, t_ref)


def _proj_res_decomp_s_kernel(attn_ref, x_ref, wo_ref, bo_ref, A_ref, s_ref, *, inv_k):
    _decomp_into(_proj_residual(attn_ref, x_ref, wo_ref, bo_ref),
                 A_ref[...], inv_k, s_ref, None)


def _ffn_res_decomp_kernel(x_ref, w1_ref, w2_ref, A_ref, s_ref, t_ref, *, inv_k):
    _decomp_into(_ffn_residual(x_ref, w1_ref, w2_ref), A_ref[...], inv_k, s_ref, t_ref)


def _ffn_res_decomp_s_kernel(x_ref, w1_ref, w2_ref, A_ref, s_ref, *, inv_k):
    _decomp_into(_ffn_residual(x_ref, w1_ref, w2_ref), A_ref[...], inv_k, s_ref, None)


def _embed_kernel(x_ref, w_ref, o_ref):
    """DataEmbedding_wo_pos: single matmul over the im2col'ed conv-3 taps + time feats."""
    Bt, L, K = x_ref.shape
    D = w_ref.shape[-1]
    x2 = x_ref[...].reshape(Bt * L, K).astype(jnp.bfloat16)
    o_ref[...] = jnp.dot(x2, w_ref[...],
                         preferred_element_type=jnp.float32).reshape(Bt, L, D)


def _trend_kernel(t1_ref, t2_ref, t3_ref, tr_ref, tw_ref, o_ref):
    """trend_out = trend + circular_conv3(t1 + t2 + t3); one matmul, taps rolled via XLU."""
    Bt, L, Dm = t1_ref.shape
    Cp = tr_ref.shape[-1]
    ts = (t1_ref[...] + t2_ref[...] + t3_ref[...]).reshape(Bt * L, Dm).astype(jnp.bfloat16)
    p = jnp.dot(ts, tw_ref[...], preferred_element_type=jnp.float32).reshape(Bt, L, 3 * Cp)
    p0 = p[:, :, :Cp]
    p1 = p[:, :, Cp:2 * Cp]
    p2 = p[:, :, 2 * Cp:]
    # out[t] = x[t-1]@W0 + x[t]@W1 + x[t+1]@W2  -> roll tap outputs along the seq axis
    conv = pltpu.roll(p0, shift=1, axis=1) + p1 + pltpu.roll(p2, shift=L - 1, axis=1)
    o_ref[...] = tr_ref[...] + conv


def _my_layernorm_kernel(x_ref, g_ref, b_ref, o_ref):
    o_ref[...] = _my_layernorm_body(x_ref[...], g_ref[...], b_ref[...])


def _ln_proj_kernel(x_ref, g_ref, b_ref, pw_ref, pb_ref, o_ref):
    """my_Layernorm fused with the final nn.Linear(d_model, c_out_padded) projection."""
    Bt, L, D = x_ref.shape
    Cp = pw_ref.shape[-1]
    xh = _my_layernorm_body(x_ref[...], g_ref[...], b_ref[...])
    y = jnp.dot(xh.reshape(Bt * L, D).astype(jnp.bfloat16), pw_ref[...],
                preferred_element_type=jnp.float32) + pb_ref[...]
    o_ref[...] = y.reshape(Bt, L, Cp)


# ----------------------------------------------------------------------------
# pallas_call wrappers (batch folded into each grid step, "parallel" grid axis)
# ----------------------------------------------------------------------------

def batched_linear(x, w, b):
    B, M, K = x.shape
    N = w.shape[1]
    Bt = _pick_bt(B, M)
    return pl.pallas_call(
        _linear_kernel,
        out_shape=jax.ShapeDtypeStruct((B, M, N), jnp.float32),
        grid=(B // Bt,),
        in_specs=[pl.BlockSpec((Bt, M, K), lambda i: (i, 0, 0)),
                  pl.BlockSpec((K, N), lambda i: (0, 0)),
                  pl.BlockSpec((1, N), lambda i: (0, 0))],
        out_specs=pl.BlockSpec((Bt, M, N), lambda i: (i, 0, 0)),
        compiler_params=_PAR,
    )(x, w, b)


def q_kv_project(x, cross, wq, bq, wkv, bkv):
    B, L, Dm = x.shape
    S = cross.shape[1]
    Nq, Nkv = wq.shape[1], wkv.shape[1]
    Bt = _pick_bt(B, L)
    return pl.pallas_call(
        _q_kv_kernel,
        out_shape=(jax.ShapeDtypeStruct((B, L, Nq), jnp.float32),
                   jax.ShapeDtypeStruct((B, S, Nkv), jnp.float32)),
        grid=(B // Bt,),
        in_specs=[pl.BlockSpec((Bt, L, Dm), lambda i: (i, 0, 0)),
                  pl.BlockSpec((Bt, S, Dm), lambda i: (i, 0, 0)),
                  pl.BlockSpec((Dm, Nq), lambda i: (0, 0)),
                  pl.BlockSpec((1, Nq), lambda i: (0, 0)),
                  pl.BlockSpec((Dm, Nkv), lambda i: (0, 0)),
                  pl.BlockSpec((1, Nkv), lambda i: (0, 0))],
        out_specs=(pl.BlockSpec((Bt, L, Nq), lambda i: (i, 0, 0)),
                   pl.BlockSpec((Bt, S, Nkv), lambda i: (i, 0, 0))),
        compiler_params=_PAR,
    )(x, cross, wq, bq, wkv, bkv)


def series_decomp(x, A, inv_k):
    B, L, D = x.shape
    Bt = _pick_bt(B, L)
    act = pl.BlockSpec((Bt, L, D), lambda i: (i, 0, 0))
    sd = jax.ShapeDtypeStruct((B, L, D), jnp.float32)
    return pl.pallas_call(
        partial(_decomp_kernel, inv_k=inv_k),
        out_shape=(sd, sd),
        grid=(B // Bt,),
        in_specs=[act, pl.BlockSpec((L, L), lambda i: (0, 0))],
        out_specs=(act, act),
        compiler_params=_PAR,
    )(x, A)


def proj_res_decomp(attn, x, wo, bo, A, inv_k, need_trend):
    B, L, Dm = x.shape
    Bt = _pick_bt(B, L)
    act = pl.BlockSpec((Bt, L, Dm), lambda i: (i, 0, 0))
    in_specs = [act, act,
                pl.BlockSpec((Dm, Dm), lambda i: (0, 0)),
                pl.BlockSpec((1, Dm), lambda i: (0, 0)),
                pl.BlockSpec((L, L), lambda i: (0, 0))]
    sd = jax.ShapeDtypeStruct((B, L, Dm), jnp.float32)
    if need_trend:
        return pl.pallas_call(
            partial(_proj_res_decomp_kernel, inv_k=inv_k),
            out_shape=(sd, sd), grid=(B // Bt,),
            in_specs=in_specs, out_specs=(act, act),
            compiler_params=_PAR_BIG,
        )(attn, x, wo, bo, A)
    return pl.pallas_call(
        partial(_proj_res_decomp_s_kernel, inv_k=inv_k),
        out_shape=sd, grid=(B // Bt,),
        in_specs=in_specs, out_specs=act,
        compiler_params=_PAR_BIG,
    )(attn, x, wo, bo, A)


def ffn_res_decomp(x, w1, w2, A, inv_k, need_trend):
    B, L, Dm = x.shape
    dff = w1.shape[1]
    Bt = _pick_bt(B, L)
    act = pl.BlockSpec((Bt, L, Dm), lambda i: (i, 0, 0))
    in_specs = [act,
                pl.BlockSpec((Dm, dff), lambda i: (0, 0)),
                pl.BlockSpec((dff, Dm), lambda i: (0, 0)),
                pl.BlockSpec((L, L), lambda i: (0, 0))]
    sd = jax.ShapeDtypeStruct((B, L, Dm), jnp.float32)
    if need_trend:
        return pl.pallas_call(
            partial(_ffn_res_decomp_kernel, inv_k=inv_k),
            out_shape=(sd, sd), grid=(B // Bt,),
            in_specs=in_specs, out_specs=(act, act),
            compiler_params=_PAR_BIG,
        )(x, w1, w2, A)
    return pl.pallas_call(
        partial(_ffn_res_decomp_s_kernel, inv_k=inv_k),
        out_shape=sd, grid=(B // Bt,),
        in_specs=in_specs, out_specs=act,
        compiler_params=_PAR_BIG,
    )(x, w1, w2, A)


def data_embedding(p, x, x_mark):
    """Circular conv-3 token embedding + timeF embedding as ONE matmul.
    The 3 taps + time features are concatenated in XLA (Cin/d_time are tiny)."""
    B, L, _ = x.shape
    xe = jnp.concatenate(
        [jnp.roll(x, 1, axis=1), x, jnp.roll(x, -1, axis=1), x_mark], axis=-1)
    K = xe.shape[-1]
    D = p['w'].shape[-1]
    Bt = _pick_bt(B, L)
    return pl.pallas_call(
        _embed_kernel,
        out_shape=jax.ShapeDtypeStruct((B, L, D), jnp.float32),
        grid=(B // Bt,),
        in_specs=[pl.BlockSpec((Bt, L, K), lambda i: (i, 0, 0)),
                  pl.BlockSpec((K, D), lambda i: (0, 0))],
        out_specs=pl.BlockSpec((Bt, L, D), lambda i: (i, 0, 0)),
        compiler_params=_PAR,
    )(xe, p['w'])


def trend_project_add(t1, t2, t3, trend, trend_w):
    B, L, Dm = t1.shape
    Cp = trend.shape[-1]
    Bt = _pick_bt(B, L)
    act = pl.BlockSpec((Bt, L, Dm), lambda i: (i, 0, 0))
    acc = pl.BlockSpec((Bt, L, Cp), lambda i: (i, 0, 0))
    return pl.pallas_call(
        _trend_kernel,
        out_shape=jax.ShapeDtypeStruct((B, L, Cp), jnp.float32),
        grid=(B // Bt,),
        in_specs=[act, act, act, acc,
                  pl.BlockSpec((Dm, 3 * Cp), lambda i: (0, 0))],
        out_specs=acc,
        compiler_params=_PAR,
    )(t1, t2, t3, trend, trend_w)


def my_layernorm(x, gamma, beta):
    B, L, D = x.shape
    Bt = _pick_bt(B, L)
    act = pl.BlockSpec((Bt, L, D), lambda i: (i, 0, 0))
    return pl.pallas_call(
        _my_layernorm_kernel,
        out_shape=jax.ShapeDtypeStruct((B, L, D), jnp.float32),
        grid=(B // Bt,),
        in_specs=[act,
                  pl.BlockSpec((1, D), lambda i: (0, 0)),
                  pl.BlockSpec((1, D), lambda i: (0, 0))],
        out_specs=act,
        compiler_params=_PAR,
    )(x, gamma, beta)


def ln_project(x, gamma, beta, pw, pb):
    B, L, D = x.shape
    Cp = pw.shape[-1]
    Bt = _pick_bt(B, L)
    return pl.pallas_call(
        _ln_proj_kernel,
        out_shape=jax.ShapeDtypeStruct((B, L, Cp), jnp.float32),
        grid=(B // Bt,),
        in_specs=[pl.BlockSpec((Bt, L, D), lambda i: (i, 0, 0)),
                  pl.BlockSpec((1, D), lambda i: (0, 0)),
                  pl.BlockSpec((1, D), lambda i: (0, 0)),
                  pl.BlockSpec((D, Cp), lambda i: (0, 0)),
                  pl.BlockSpec((1, Cp), lambda i: (0, 0))],
        out_specs=pl.BlockSpec((Bt, L, Cp), lambda i: (i, 0, 0)),
        compiler_params=_PAR,
    )(x, gamma, beta, pw, pb)


# ----------------------------------------------------------------------------
# Constant moving-average matrix (bf16 integer counts, exact; scaled by 1/k)
# ----------------------------------------------------------------------------

def make_avg_matrix(L, kernel_size):
    """A[t,s]: replicate-padded moving-average window counts (AvgPool1d semantics)."""
    assert kernel_size % 2 == 1, "moving_avg must be odd to match AvgPool1d semantics"
    pad = (kernel_size - 1) // 2
    A = np.zeros((L, L), np.float32)
    for t in range(L):
        for j in range(-pad, pad + 1):
            A[t, min(max(t + j, 0), L - 1)] += 1.0
    return jnp.asarray(A, dtype=jnp.bfloat16)   # small integer counts: exact in bf16


# ----------------------------------------------------------------------------
# AutoCorrelation (FFT scoring + top-k delay aggregation stay in plain JAX)
# ----------------------------------------------------------------------------

def _time_delay_agg_inference(values, corr, factor):
    """values: (B,H,C,L), corr: (B,H,E,L) -> (B,H,C,L).  Single stacked gather."""
    B, H, C, L = values.shape
    top_k = int(factor * math.log(L))
    mean_value = jnp.mean(corr, axis=(1, 2))                       # (B, L)
    weights, delay = jax.lax.top_k(mean_value, top_k)              # (B, k)
    tmp_corr = jax.nn.softmax(weights, axis=-1)                    # (B, k)
    init_index = jnp.arange(L, dtype=jnp.int32)
    idx = (init_index[None, None, :] + delay[:, :, None]) % L      # (B, k, L)
    idx = jnp.broadcast_to(idx[:, None, None, :, :], (B, H, C, top_k, L))
    v = jnp.broadcast_to(values[:, :, :, None, :], (B, H, C, top_k, L))
    pattern = jnp.take_along_axis(v, idx, axis=-1)                 # one gather
    return jnp.sum(pattern * tmp_corr[:, None, None, :, None], axis=3)


def auto_correlation(q, k, v, factor):
    """queries:(B,L,H,E), keys/values:(B,S,H,D) -> (B,L,H,D)."""
    B, L, H, E = q.shape
    _, S, _, D = v.shape
    if L > S:
        pad = jnp.zeros((B, L - S, H, D), jnp.float32)
        v = jnp.concatenate([v, pad], axis=1)
        k = jnp.concatenate([k, pad], axis=1)
    else:
        v = v[:, :L]
        k = k[:, :L]
    qT = jnp.transpose(q, (0, 2, 3, 1))                            # (B,H,E,L)
    kT = jnp.transpose(k, (0, 2, 3, 1))
    # TODO(synk): rfft/irfft correlation scoring + data-dependent top-k gather
    # have no clean Pallas TPU equivalent; they stay in XLA.
    corr = jnp.fft.irfft(jnp.fft.rfft(qT, axis=-1) * jnp.conj(jnp.fft.rfft(kT, axis=-1)),
                         n=L, axis=-1)
    vT = jnp.transpose(v, (0, 2, 3, 1))                            # (B,H,D,L)
    agg = _time_delay_agg_inference(vT, corr, factor)
    return jnp.transpose(agg, (0, 3, 1, 2))                        # (B,L,H,D)


# ----------------------------------------------------------------------------
# Model blocks
# ----------------------------------------------------------------------------

def self_attention_block(ap, x, A, inv_k, factor, n_heads, need_trend):
    B, L, Dm = x.shape
    qkv = batched_linear(x, ap['wqkv'], ap['bqkv'])                # (B, L, 3*Dm)
    qkv = qkv.reshape(B, L, 3, n_heads, Dm // n_heads)
    attn = auto_correlation(qkv[:, :, 0], qkv[:, :, 1], qkv[:, :, 2], factor)
    return proj_res_decomp(attn.reshape(B, L, Dm), x, ap['wo'], ap['bo'],
                           A, inv_k, need_trend)


def cross_attention_block(ap, x, cross, A, inv_k, factor, n_heads):
    B, L, Dm = x.shape
    S = cross.shape[1]
    q, kv = q_kv_project(x, cross, ap['wq'], ap['bq'], ap['wkv'], ap['bkv'])
    q = q.reshape(B, L, n_heads, Dm // n_heads)
    kv = kv.reshape(B, S, 2, n_heads, Dm // n_heads)
    attn = auto_correlation(q, kv[:, :, 0], kv[:, :, 1], factor)
    return proj_res_decomp(attn.reshape(B, L, Dm), x, ap['wo'], ap['bo'],
                           A, inv_k, need_trend=True)


def encoder(params, x, cfg, A, inv_k):
    for lp in params['enc_layers']:
        # encoder discards the trend halves -> seasonal-only kernels (no HBM writeback)
        x = self_attention_block(lp['attn'], x, A, inv_k, cfg['factor'],
                                 cfg['n_heads'], need_trend=False)
        x = ffn_res_decomp(x, lp['w1'], lp['w2'], A, inv_k, need_trend=False)
    return my_layernorm(x, params['enc_norm']['gamma'], params['enc_norm']['beta'])


def decoder(params, x, cross, trend, cfg, A, inv_k):
    for lp in params['dec_layers']:
        x, t1 = self_attention_block(lp['self_attn'], x, A, inv_k, cfg['factor'],
                                     cfg['n_heads'], need_trend=True)
        x, t2 = cross_attention_block(lp['cross_attn'], x, cross, A, inv_k,
                                      cfg['factor'], cfg['n_heads'])
        x, t3 = ffn_res_decomp(x, lp['w1'], lp['w2'], A, inv_k, need_trend=True)
        trend = trend_project_add(t1, t2, t3, trend, lp['trend_w'])
    seasonal = ln_project(x, params['dec_norm']['gamma'], params['dec_norm']['beta'],
                          params['proj_w'], params['proj_b'])
    return seasonal, trend


def autoformer_forward(params, x_enc, x_mark_enc, x_dec, x_mark_dec, cfg):
    B = x_enc.shape[0]
    L_enc = cfg['seq_len']
    L_dec = cfg['label_len'] + cfg['pred_len']
    k = cfg['moving_avg']
    inv_k = 1.0 / k
    A_enc = make_avg_matrix(L_enc, k)
    A_dec = make_avg_matrix(L_dec, k)
    Cp = params['proj_w'].shape[-1]                                # c_out padded to 128

    mean = jnp.repeat(jnp.mean(x_enc, axis=1, keepdims=True), cfg['pred_len'], axis=1)
    zeros = jnp.zeros((B, cfg['pred_len'], x_dec.shape[2]), jnp.float32)
    seasonal_init, trend_init = series_decomp(x_enc, A_enc, inv_k)
    trend_init = jnp.concatenate([trend_init[:, -cfg['label_len']:, :], mean], axis=1)
    seasonal_init = jnp.concatenate([seasonal_init[:, -cfg['label_len']:, :], zeros], axis=1)
    # pad trend channels to 128 lanes (lane-dense stores inside the Pallas path)
    trend_init = jnp.pad(trend_init, ((0, 0), (0, 0), (0, Cp - trend_init.shape[-1])))

    enc_out = data_embedding(params['enc_emb'], x_enc, x_mark_enc)
    enc_out = encoder(params, enc_out, cfg, A_enc, inv_k)

    dec_out = data_embedding(params['dec_emb'], seasonal_init, x_mark_dec)
    seasonal_part, trend_part = decoder(params, dec_out, enc_out, trend_init,
                                        cfg, A_dec, inv_k)

    dec_out = trend_part + seasonal_part                           # (B, L_dec, Cp)
    return dec_out[:, -cfg['pred_len']:, :cfg['c_out']]            # output_attention=False


# ----------------------------------------------------------------------------
# Deterministic parameter init (synthetic; bf16 matmul weights, f32 biases/norms)
# ----------------------------------------------------------------------------

class KeyGen:
    def __init__(self, key):
        self.key = key

    def __call__(self):
        self.key, sub = jax.random.split(self.key)
        return sub


def init_params(key, cfg):
    kg = KeyGen(key)
    Dm, dff = cfg['d_model'], cfg['d_ff']
    enc_in, dec_in, c_out = cfg['enc_in'], cfg['dec_in'], cfg['c_out']
    d_time = 4  # freq='h' -> 4 time features (timeF embedding)
    Cp = _round_up(c_out, 128)

    def w(shape, scale=0.1):
        return (jax.random.normal(kg(), shape, jnp.float32) * scale).astype(jnp.bfloat16)

    def b(shape, scale=0.1):
        return jax.random.normal(kg(), shape, jnp.float32) * scale

    def embed(cin):
        # circular conv-3 taps + timeF linear stacked into one (3*cin + d_time, Dm) matrix
        return dict(w=w((3 * cin + d_time, Dm)))

    def self_attn():
        return dict(wqkv=w((Dm, 3 * Dm)), bqkv=b((1, 3 * Dm)),
                    wo=w((Dm, Dm)), bo=b((1, Dm)))

    def cross_attn():
        return dict(wq=w((Dm, Dm)), bq=b((1, Dm)),
                    wkv=w((Dm, 2 * Dm)), bkv=b((1, 2 * Dm)),
                    wo=w((Dm, Dm)), bo=b((1, Dm)))

    def trend_w():
        # 3 conv taps, each zero-padded to 128 lanes, concatenated along N -> (Dm, 3*Cp)
        tw = jax.random.normal(kg(), (3, Dm, c_out), jnp.float32) * 0.1
        tw = jnp.pad(tw, ((0, 0), (0, 0), (0, Cp - c_out)))
        return jnp.transpose(tw, (1, 0, 2)).reshape(Dm, 3 * Cp).astype(jnp.bfloat16)

    pw = jax.random.normal(kg(), (Dm, c_out), jnp.float32) * 0.1
    pw = jnp.pad(pw, ((0, 0), (0, Cp - c_out))).astype(jnp.bfloat16)
    pb = jnp.pad(jax.random.normal(kg(), (1, c_out), jnp.float32) * 0.1,
                 ((0, 0), (0, Cp - c_out)))

    return dict(
        enc_emb=embed(enc_in),
        dec_emb=embed(dec_in),
        enc_layers=[dict(attn=self_attn(), w1=w((Dm, dff)), w2=w((dff, Dm)))
                    for _ in range(cfg['e_layers'])],
        enc_norm=dict(gamma=jnp.ones((1, Dm), jnp.float32),
                      beta=jnp.zeros((1, Dm), jnp.float32)),
        dec_layers=[dict(self_attn=self_attn(), cross_attn=cross_attn(),
                         w1=w((Dm, dff)), w2=w((dff, Dm)), trend_w=trend_w())
                    for _ in range(cfg['d_layers'])],
        dec_norm=dict(gamma=jnp.ones((1, Dm), jnp.float32),
                      beta=jnp.zeros((1, Dm), jnp.float32)),
        proj_w=pw,
        proj_b=pb,
    )


# ----------------------------------------------------------------------------
# Main
# ----------------------------------------------------------------------------

if __name__ == "__main__":
    cfg = dict(seq_len=16, label_len=8, pred_len=8,
               enc_in=4, dec_in=4, c_out=4,
               d_model=32, n_heads=4, d_ff=64,
               e_layers=1, d_layers=1,
               moving_avg=5, factor=1, dropout=0.0,
               activation='relu', embed='timeF', freq='h',
               output_attention=False)

    key = jax.random.PRNGKey(0)
    kp, kx = jax.random.split(key)
    params = init_params(kp, cfg)

    k1, k2, k3, k4 = jax.random.split(kx, 4)
    B = 4                                  # -> Bt=2 per grid step, 2 grid steps
    dec_len = cfg['label_len'] + cfg['pred_len']
    x_enc = jax.random.normal(k1, (B, cfg['seq_len'], cfg['enc_in']), jnp.float32)
    x_mark_enc = jax.random.normal(k2, (B, cfg['seq_len'], 4), jnp.float32)
    x_dec = jax.random.normal(k3, (B, dec_len, cfg['dec_in']), jnp.float32)
    x_mark_dec = jax.random.normal(k4, (B, dec_len, 4), jnp.float32)

    fwd = jax.jit(partial(autoformer_forward, cfg=cfg))
    out = fwd(params, x_enc, x_mark_enc, x_dec, x_mark_dec)
    out = jax.block_until_ready(out)
    assert out.shape == (B, cfg['pred_len'], cfg['c_out'])
    assert bool(jnp.all(jnp.isfinite(out)))
    print("KERNEL_OK")
</pallas_src>

<mosaic_0001>
module attributes {stable_mosaic.version = 11 : i64} {
  func.func private @main(%arg0: i32) attributes {dimension_semantics = [#tpu.dimension_semantics<core_parallel>], iteration_bounds = array<i64: 2>, tpu.core_type = #tpu.core_type<sc_scalar_subcore>, window_params = []} {
    return
  }
}

module attributes {stable_mosaic.version = 11 : i64} {
  func.func private @main(%arg0: i32) attributes {dimension_semantics = [#tpu.dimension_semantics<core_parallel>], iteration_bounds = array<i64: 2>, tpu.core_type = #tpu.core_type<sc_scalar_subcore>, window_params = []} {
    return
  }
}

module attributes {stable_mosaic.version = 11 : i64} {
  func.func @_embed_kernel(%arg0: i32, %arg1: memref<2x16x16xf32, #tpu.memory_space<vmem>>, %arg2: memref<16x32xbf16, #tpu.memory_space<vmem>>, %arg3: memref<2x16x32xf32, #tpu.memory_space<vmem>>) attributes {dimension_semantics = [#tpu.dimension_semantics<parallel>], iteration_bounds = array<i64: 2>, scalar_prefetch = 0 : i64, scratch_operands = 0 : i64, tpu.core_type = #tpu.core_type<tc>, window_params = [{transform_indices = @transform_0, window_bounds = array<i64: 2, 16, 16>}, {pipeline_mode = #tpu.pipeline_mode<synchronous>, transform_indices = @transform_1, window_bounds = array<i64: 16, 32>}, {transform_indices = @transform_2, window_bounds = array<i64: 2, 16, 32>}]} {
    %c0 = arith.constant 0 : index
    %c0_0 = arith.constant 0 : index
    %c0_1 = arith.constant 0 : index
    %0 = vector.load %arg1[%c0, %c0_0, %c0_1] : memref<2x16x16xf32, #tpu.memory_space<vmem>>, vector<2x16x16xf32>
    %1 = vector.shape_cast %0 : vector<2x16x16xf32> to vector<32x16xf32>
    %2 = arith.truncf %1 : vector<32x16xf32> to vector<32x16xbf16>
    %c0_2 = arith.constant 0 : index
    %c0_3 = arith.constant 0 : index
    %3 = vector.load %arg2[%c0_2, %c0_3] : memref<16x32xbf16, #tpu.memory_space<vmem>>, vector<16x32xbf16>
    %cst = arith.constant dense<0.000000e+00> : vector<32x32xf32>
    %4 = tpu.matmul %2, %3, %cst {dimension_numbers = #tpu.dot_dimension_numbers<[1], [0], [0], [1], [0, 0, 1, 1], [], []>} : vector<32x16xbf16>, vector<16x32xbf16>, vector<32x32xf32> -> vector<32x32xf32>
    %5 = vector.shape_cast %4 : vector<32x32xf32> to vector<2x16x32xf32>
    %c0_4 = arith.constant 0 : index
    %c0_5 = arith.constant 0 : index
    %c0_6 = arith.constant 0 : index
    %6 = vector.load %arg3[%c0_4, %c0_5, %c0_6] : memref<2x16x32xf32, #tpu.memory_space<vmem>>, vector<2x16x32xf32>
    tpu.vector_store %arg3[%c0_4, %c0_5, %c0_6], %5 {strides = array<i32>} : memref<2x16x32xf32, #tpu.memory_space<vmem>>, vector<2x16x32xf32>,
    return
  }
  func.func @transform_0(%arg0: i32) -> (i32, i32, i32) {
    %c0_i32 = arith.constant 0 : i32
    %c0_i32_0 = arith.constant 0 : i32
    %c0_i32_1 = arith.constant 0 : i32
    return %arg0, %c0_i32, %c0_i32_0 : i32, i32, i32
  }
  func.func @transform_1(%arg0: i32) -> (i32, i32) {
    %c0_i32 = arith.constant 0 : i32
    %c0_i32_0 = arith.constant 0 : i32
    %c0_i32_1 = arith.constant 0 : i32
    return %c0_i32, %c0_i32_0 : i32, i32
  }
  func.func @transform_2(%arg0: i32) -> (i32, i32, i32) {
    %c0_i32 = arith.constant 0 : i32
    %c0_i32_0 = arith.constant 0 : i32
    %c0_i32_1 = arith.constant 0 : i32
    return %arg0, %c0_i32, %c0_i32_0 : i32, i32, i32
  }
}

module attributes {stable_mosaic.version = 11 : i64} {
  func.func @_linear_kernel(%arg0: i32, %arg1: memref<2x16x32xf32, #tpu.memory_space<vmem>>, %arg2: memref<32x96xbf16, #tpu.memory_space<vmem>>, %arg3: memref<1x96xf32, #tpu.memory_space<vmem>>, %arg4: memref<2x16x96xf32, #tpu.memory_space<vmem>>) attributes {dimension_semantics = [#tpu.dimension_semantics<parallel>], iteration_bounds = array<i64: 2>, scalar_prefetch = 0 : i64, scratch_operands = 0 : i64, tpu.core_type = #tpu.core_type<tc>, window_params = [{transform_indices = @transform_0, window_bounds = array<i64: 2, 16, 32>}, {pipeline_mode = #tpu.pipeline_mode<synchronous>, transform_indices = @transform_1, window_bounds = array<i64: 32, 96>}, {pipeline_mode = #tpu.pipeline_mode<synchronous>, transform_indices = @transform_2, window_bounds = array<i64: 1, 96>}, {transform_indices = @transform_3, window_bounds = array<i64: 2, 16, 96>}]} {
    %c0 = arith.constant 0 : index
    %c0_0 = arith.constant 0 : index
    %c0_1 = arith.constant 0 : index
    %0 = vector.load %arg1[%c0, %c0_0, %c0_1] : memref<2x16x32xf32, #tpu.memory_space<vmem>>, vector<2x16x32xf32>
    %1 = vector.shape_cast %0 : vector<2x16x32xf32> to vector<32x32xf32>
    %2 = arith.truncf %1 : vector<32x32xf32> to vector<32x32xbf16>
    %c0_2 = arith.constant 0 : index
    %c0_3 = arith.constant 0 : index
    %3 = vector.load %arg2[%c0_2, %c0_3] : memref<32x96xbf16, #tpu.memory_space<vmem>>, vector<32x96xbf16>
    %cst = arith.constant dense<0.000000e+00> : vector<32x96xf32>
    %4 = tpu.matmul %2, %3, %cst {dimension_numbers = #tpu.dot_dimension_numbers<[1], [0], [0], [1], [0, 0, 1, 1], [], []>} : vector<32x32xbf16>, vector<32x96xbf16>, vector<32x96xf32> -> vector<32x96xf32>
    %c0_4 = arith.constant 0 : index
    %c0_5 = arith.constant 0 : index
    %5 = vector.load %arg3[%c0_4, %c0_5] : memref<1x96xf32, #tpu.memory_space<vmem>>, vector<1x96xf32>
    %6 = vector.broadcast %5 : vector<1x96xf32> to vector<32x96xf32>
    %7 = arith.addf %4, %6 : vector<32x96xf32>
    %8 = vector.shape_cast %7 : vector<32x96xf32> to vector<2x16x96xf32>
    %c0_6 = arith.constant 0 : index
    %c0_7 = arith.constant 0 : index
    %c0_8 = arith.constant 0 : index
    %9 = vector.load %arg4[%c0_6, %c0_7, %c0_8] : memref<2x16x96xf32, #tpu.memory_space<vmem>>, vector<2x16x96xf32>
    tpu.vector_store %arg4[%c0_6, %c0_7, %c0_8], %8 {strides = array<i32>} : memref<2x16x96xf32, #tpu.memory_space<vmem>>, vector<2x16x96xf32>,
    return
  }
  func.func @transform_0(%arg0: i32) -> (i32, i32, i32) {
    %c0_i32 = arith.constant 0 : i32
    %c0_i32_0 = arith.constant 0 : i32
    %c0_i32_1 = arith.constant 0 : i32
    return %arg0, %c0_i32, %c0_i32_0 : i32, i32, i32
  }
  func.func @transform_1(%arg0: i32) -> (i32, i32) {
    %c0_i32 = arith.constant 0 : i32
    %c0_i32_0 = arith.constant 0 : i32
    %c0_i32_1 = arith.constant 0 : i32
    return %c0_i32, %c0_i32_0 : i32, i32
  }
  func.func @transform_2(%arg0: i32) -> (i32, i32) {
    %c0_i32 = arith.constant 0 : i32
    %c0_i32_0 = arith.constant 0 : i32
    %c0_i32_1 = arith.constant 0 : i32
    return %c0_i32, %c0_i32_0 : i32, i32
  }
  func.func @transform_3(%arg0: i32) -> (i32, i32, i32) {
    %c0_i32 = arith.constant 0 : i32
    %c0_i32_0 = arith.constant 0 : i32
    %c0_i32_1 = arith.constant 0 : i32
    return %arg0, %c0_i32, %c0_i32_0 : i32, i32, i32
  }
}

module attributes {stable_mosaic.version = 11 : i64} {
  func.func @_decomp_kernel(%arg0: i32, %arg1: memref<2x16x4xf32, #tpu.memory_space<vmem>>, %arg2: memref<16x16xbf16, #tpu.memory_space<vmem>>, %arg3: memref<2x16x4xf32, #tpu.memory_space<vmem>>, %arg4: memref<2x16x4xf32, #tpu.memory_space<vmem>>) attributes {dimension_semantics = [#tpu.dimension_semantics<parallel>], iteration_bounds = array<i64: 2>, scalar_prefetch = 0 : i64, scratch_operands = 0 : i64, tpu.core_type = #tpu.core_type<tc>, window_params = [{transform_indices = @transform_0, window_bounds = array<i64: 2, 16, 4>}, {pipeline_mode = #tpu.pipeline_mode<synchronous>, transform_indices = @transform_1, window_bounds = array<i64: 16, 16>}, {transform_indices = @transform_2, window_bounds = array<i64: 2, 16, 4>}, {transform_indices = @transform_3, window_bounds = array<i64: 2, 16, 4>}]} {
    %c0 = arith.constant 0 : index
    %c0_0 = arith.constant 0 : index
    %c0_1 = arith.constant 0 : index
    %0 = vector.load %arg1[%c0, %c0_0, %c0_1] : memref<2x16x4xf32, #tpu.memory_space<vmem>>, vector<2x16x4xf32>
    %c0_2 = arith.constant 0 : index
    %c0_3 = arith.constant 0 : index
    %1 = vector.load %arg2[%c0_2, %c0_3] : memref<16x16xbf16, #tpu.memory_space<vmem>>, vector<16x16xbf16>
    %2 = vector.extract_strided_slice %0 {offsets = [0, 0, 0], sizes = [1, 16, 4], strides = [1, 1, 1]} : vector<2x16x4xf32> to vector<1x16x4xf32>
    %3 = vector.shape_cast %2 : vector<1x16x4xf32> to vector<16x4xf32>
    %4 = arith.truncf %3 : vector<16x4xf32> to vector<16x4xbf16>
    %cst = arith.constant dense<0.000000e+00> : vector<16x4xf32>
    %5 = tpu.matmul %1, %4, %cst {dimension_numbers = #tpu.dot_dimension_numbers<[1], [0], [0], [1], [0, 0, 1, 1], [], []>} : vector<16x16xbf16>, vector<16x4xbf16>, vector<16x4xf32> -> vector<16x4xf32>
    %cst_4 = arith.constant 2.000000e-01 : f32
    %6 = vector.broadcast %cst_4 : f32 to vector<16x4xf32>
    %7 = arith.mulf %5, %6 : vector<16x4xf32>
    %8 = arith.subf %3, %7 : vector<16x4xf32>
    %c0_5 = arith.constant 0 : index
    %c0_6 = arith.constant 0 : index
    %c0_7 = arith.constant 0 : index
    %9 = vector.load %arg3[%c0_5, %c0_6, %c0_7] : memref<2x16x4xf32, #tpu.memory_space<vmem>>, vector<1x16x4xf32>
    %10 = vector.shape_cast %9 : vector<1x16x4xf32> to vector<16x4xf32>
    %11 = vector.shape_cast %8 : vector<16x4xf32> to vector<1x16x4xf32>
    tpu.vector_store %arg3[%c0_5, %c0_6, %c0_7], %11 {strides = array<i32>} : memref<2x16x4xf32, #tpu.memory_space<vmem>>, vector<1x16x4xf32>,
    %c0_8 = arith.constant 0 : index
    %c0_9 = arith.constant 0 : index
    %c0_10 = arith.constant 0 : index
    %12 = vector.load %arg4[%c0_8, %c0_9, %c0_10] : memref<2x16x4xf32, #tpu.memory_space<vmem>>, vector<1x16x4xf32>
    %13 = vector.shape_cast %12 : vector<1x16x4xf32> to vector<16x4xf32>
    %14 = vector.shape_cast %7 : vector<16x4xf32> to vector<1x16x4xf32>
    tpu.vector_store %arg4[%c0_8, %c0_9, %c0_10], %14 {strides = array<i32>} : memref<2x16x4xf32, #tpu.memory_space<vmem>>, vector<1x16x4xf32>,
    %15 = vector.extract_strided_slice %0 {offsets = [1, 0, 0], sizes = [1, 16, 4], strides = [1, 1, 1]} : vector<2x16x4xf32> to vector<1x16x4xf32>
    %16 = vector.shape_cast %15 : vector<1x16x4xf32> to vector<16x4xf32>
    %17 = arith.truncf %16 : vector<16x4xf32> to vector<16x4xbf16>
    %cst_11 = arith.constant dense<0.000000e+00> : vector<16x4xf32>
    %18 = tpu.matmul %1, %17, %cst_11 {dimension_numbers = #tpu.dot_dimension_numbers<[1], [0], [0], [1], [0, 0, 1, 1], [], []>} : vector<16x16xbf16>, vector<16x4xbf16>, vector<16x4xf32> -> vector<16x4xf32>
    %cst_12 = arith.constant 2.000000e-01 : f32
    %19 = vector.broadcast %cst_12 : f32 to vector<16x4xf32>
    %20 = arith.mulf %18, %19 : vector<16x4xf32>
    %21 = arith.subf %16, %20 : vector<16x4xf32>
    %c1 = arith.constant 1 : index
    %c0_13 = arith.constant 0 : index
    %c0_14 = arith.constant 0 : index
    %22 = vector.load %arg3[%c1, %c0_13, %c0_14] : memref<2x16x4xf32, #tpu.memory_space<vmem>>, vector<1x16x4xf32>
    %23 = vector.shape_cast %22 : vector<1x16x4xf32> to vector<16x4xf32>
    %24 = vector.shape_cast %21 : vector<16x4xf32> to vector<1x16x4xf32>
    tpu.vector_store %arg3[%c1, %c0_13, %c0_14], %24 {strides = array<i32>} : memref<2x16x4xf32, #tpu.memory_space<vmem>>, vector<1x16x4xf32>,
    %c1_15 = arith.constant 1 : index
    %c0_16 = arith.constant 0 : index
    %c0_17 = arith.constant 0 : index
    %25 = vector.load %arg4[%c1_15, %c0_16, %c0_17] : memref<2x16x4xf32, #tpu.memory_space<vmem>>, vector<1x16x4xf32>
    %26 = vector.shape_cast %25 : vector<1x16x4xf32> to vector<16x4xf32>
    %27 = vector.shape_cast %20 : vector<16x4xf32> to vector<1x16x4xf32>
    tpu.vector_store %arg4[%c1_15, %c0_16, %c0_17], %27 {strides = array<i32>} : memref<2x16x4xf32, #tpu.memory_space<vmem>>, vector<1x16x4xf32>,
    return
  }
  func.func @transform_0(%arg0: i32) -> (i32, i32, i32) {
    %c0_i32 = arith.constant 0 : i32
    %c0_i32_0 = arith.constant 0 : i32
    %c0_i32_1 = arith.constant 0 : i32
    return %arg0, %c0_i32, %c0_i32_0 : i32, i32, i32
  }
  func.func @transform_1(%arg0: i32) -> (i32, i32) {
    %c0_i32 = arith.constant 0 : i32
    %c0_i32_0 = arith.constant 0 : i32
    %c0_i32_1 = arith.constant 0 : i32
    return %c0_i32, %c0_i32_0 : i32, i32
  }
  func.func @transform_2(%arg0: i32) -> (i32, i32, i32) {
    %c0_i32 = arith.constant 0 : i32
    %c0_i32_0 = arith.constant 0 : i32
    %c0_i32_1 = arith.constant 0 : i32
    return %arg0, %c0_i32, %c0_i32_0 : i32, i32, i32
  }
  func.func @transform_3(%arg0: i32) -> (i32, i32, i32) {
    %c0_i32 = arith.constant 0 : i32
    %c0_i32_0 = arith.constant 0 : i32
    %c0_i32_1 = arith.constant 0 : i32
    return %arg0, %c0_i32, %c0_i32_0 : i32, i32, i32
  }
}

module attributes {stable_mosaic.version = 11 : i64} {
  func.func @_proj_res_decomp_s_kernel(%arg0: i32, %arg1: memref<2x16x32xf32, #tpu.memory_space<vmem>>, %arg2: memref<2x16x32xf32, #tpu.memory_space<vmem>>, %arg3: memref<32x32xbf16, #tpu.memory_space<vmem>>, %arg4: memref<1x32xf32, #tpu.memory_space<vmem>>, %arg5: memref<16x16xbf16, #tpu.memory_space<vmem>>, %arg6: memref<2x16x32xf32, #tpu.memory_space<vmem>>) attributes {dimension_semantics = [#tpu.dimension_semantics<parallel>], iteration_bounds = array<i64: 2>, scalar_prefetch = 0 : i64, scratch_operands = 0 : i64, tpu.core_type = #tpu.core_type<tc>, window_params = [{transform_indices = @transform_0, window_bounds = array<i64: 2, 16, 32>}, {transform_indices = @transform_1, window_bounds = array<i64: 2, 16, 32>}, {pipeline_mode = #tpu.pipeline_mode<synchronous>, transform_indices = @transform_2, window_bounds = array<i64: 32, 32>}, {pipeline_mode = #tpu.pipeline_mode<synchronous>, transform_indices = @transform_3, window_bounds = array<i64: 1, 32>}, {pipeline_mode = #tpu.pipeline_mode<synchronous>, transform_indices = @transform_4, window_bounds = array<i64: 16, 16>}, {transform_indices = @transform_5, window_bounds = array<i64: 2, 16, 32>}]} {
    %c0 = arith.constant 0 : index
    %c0_0 = arith.constant 0 : index
    %c0_1 = arith.constant 0 : index
    %0 = vector.load %arg1[%c0, %c0_0, %c0_1] : memref<2x16x32xf32, #tpu.memory_space<vmem>>, vector<2x16x32xf32>
    %1 = vector.shape_cast %0 : vector<2x16x32xf32> to vector<32x32xf32>
    %2 = arith.truncf %1 : vector<32x32xf32> to vector<32x32xbf16>
    %c0_2 = arith.constant 0 : index
    %c0_3 = arith.constant 0 : index
    %3 = vector.load %arg3[%c0_2, %c0_3] : memref<32x32xbf16, #tpu.memory_space<vmem>>, vector<32x32xbf16>
    %cst = arith.constant dense<0.000000e+00> : vector<32x32xf32>
    %4 = tpu.matmul %2, %3, %cst {dimension_numbers = #tpu.dot_dimension_numbers<[1], [0], [0], [1], [0, 0, 1, 1], [], []>} : vector<32x32xbf16>, vector<32x32xbf16>, vector<32x32xf32> -> vector<32x32xf32>
    %c0_4 = arith.constant 0 : index
    %c0_5 = arith.constant 0 : index
    %5 = vector.load %arg4[%c0_4, %c0_5] : memref<1x32xf32, #tpu.memory_space<vmem>>, vector<1x32xf32>
    %6 = vector.broadcast %5 : vector<1x32xf32> to vector<32x32xf32>
    %7 = arith.addf %4, %6 : vector<32x32xf32>
    %c0_6 = arith.constant 0 : index
    %c0_7 = arith.constant 0 : index
    %c0_8 = arith.constant 0 : index
    %8 = vector.load %arg2[%c0_6, %c0_7, %c0_8] : memref<2x16x32xf32, #tpu.memory_space<vmem>>, vector<2x16x32xf32>
    %9 = vector.shape_cast %7 : vector<32x32xf32> to vector<2x16x32xf32>
    %10 = arith.addf %8, %9 : vector<2x16x32xf32>
    %c0_9 = arith.constant 0 : index
    %c0_10 = arith.constant 0 : index
    %11 = vector.load %arg5[%c0_9, %c0_10] : memref<16x16xbf16, #tpu.memory_space<vmem>>, vector<16x16xbf16>
    %12 = vector.extract_strided_slice %10 {offsets = [0, 0, 0], sizes = [1, 16, 32], strides = [1, 1, 1]} : vector<2x16x32xf32> to vector<1x16x32xf32>
    %13 = vector.shape_cast %12 : vector<1x16x32xf32> to vector<16x32xf32>
    %14 = arith.truncf %13 : vector<16x32xf32> to vector<16x32xbf16>
    %cst_11 = arith.constant dense<0.000000e+00> : vector<16x32xf32>
    %15 = tpu.matmul %11, %14, %cst_11 {dimension_numbers = #tpu.dot_dimension_numbers<[1], [0], [0], [1], [0, 0, 1, 1], [], []>} : vector<16x16xbf16>, vector<16x32xbf16>, vector<16x32xf32> -> vector<16x32xf32>
    %cst_12 = arith.constant 2.000000e-01 : f32
    %16 = vector.broadcast %cst_12 : f32 to vector<16x32xf32>
    %17 = arith.mulf %15, %16 : vector<16x32xf32>
    %18 = arith.subf %13, %17 : vector<16x32xf32>
    %c0_13 = arith.constant 0 : index
    %c0_14 = arith.constant 0 : index
    %c0_15 = arith.constant 0 : index
    %19 = vector.load %arg6[%c0_13, %c0_14, %c0_15] : memref<2x16x32xf32, #tpu.memory_space<vmem>>, vector<1x16x32xf32>
    %20 = vector.shape_cast %19 : vector<1x16x32xf32> to vector<16x32xf32>
    %21 = vector.shape_cast %18 : vector<16x32xf32> to vector<1x16x32xf32>
    tpu.vector_store %arg6[%c0_13, %c0_14, %c0_15], %21 {strides = array<i32>} : memref<2x16x32xf32, #tpu.memory_space<vmem>>, vector<1x16x32xf32>,
    %22 = vector.extract_strided_slice %10 {offsets = [1, 0, 0], sizes = [1, 16, 32], strides = [1, 1, 1]} : vector<2x16x32xf32> to vector<1x16x32xf32>
    %23 = vector.shape_cast %22 : vector<1x16x32xf32> to vector<16x32xf32>
    %24 = arith.truncf %23 : vector<16x32xf32> to vector<16x32xbf16>
    %cst_16 = arith.constant dense<0.000000e+00> : vector<16x32xf32>
    %25 = tpu.matmul %11, %24, %cst_16 {dimension_numbers = #tpu.dot_dimension_numbers<[1], [0], [0], [1], [0, 0, 1, 1], [], []>} : vector<16x16xbf16>, vector<16x32xbf16>, vector<16x32xf32> -> vector<16x32xf32>
    %cst_17 = arith.constant 2.000000e-01 : f32
    %26 = vector.broadcast %cst_17 : f32 to vector<16x32xf32>
    %27 = arith.mulf %25, %26 : vector<16x32xf32>
    %28 = arith.subf %23, %27 : vector<16x32xf32>
    %c1 = arith.constant 1 : index
    %c0_18 = arith.constant 0 : index
    %c0_19 = arith.constant 0 : index
    %29 = vector.load %arg6[%c1, %c0_18, %c0_19] : memref<2x16x32xf32, #tpu.memory_space<vmem>>, vector<1x16x32xf32>
    %30 = vector.shape_cast %29 : vector<1x16x32xf32> to vector<16x32xf32>
    %31 = vector.shape_cast %28 : vector<16x32xf32> to vector<1x16x32xf32>
    tpu.vector_store %arg6[%c1, %c0_18, %c0_19], %31 {strides = array<i32>} : memref<2x16x32xf32, #tpu.memory_space<vmem>>, vector<1x16x32xf32>,
    return
  }
  func.func @transform_0(%arg0: i32) -> (i32, i32, i32) {
    %c0_i32 = arith.constant 0 : i32
    %c0_i32_0 = arith.constant 0 : i32
    %c0_i32_1 = arith.constant 0 : i32
    return %arg0, %c0_i32, %c0_i32_0 : i32, i32, i32
  }
  func.func @transform_1(%arg0: i32) -> (i32, i32, i32) {
    %c0_i32 = arith.constant 0 : i32
    %c0_i32_0 = arith.constant 0 : i32
    %c0_i32_1 = arith.constant 0 : i32
    return %arg0, %c0_i32, %c0_i32_0 : i32, i32, i32
  }
  func.func @transform_2(%arg0: i32) -> (i32, i32) {
    %c0_i32 = arith.constant 0 : i32
    %c0_i32_0 = arith.constant 0 : i32
    %c0_i32_1 = arith.constant 0 : i32
    return %c0_i32, %c0_i32_0 : i32, i32
  }
  func.func @transform_3(%arg0: i32) -> (i32, i32) {
    %c0_i32 = arith.constant 0 : i32
    %c0_i32_0 = arith.constant 0 : i32
    %c0_i32_1 = arith.constant 0 : i32
    return %c0_i32, %c0_i32_0 : i32, i32
  }
  func.func @transform_4(%arg0: i32) -> (i32, i32) {
    %c0_i32 = arith.constant 0 : i32
    %c0_i32_0 = arith.constant 0 : i32
    %c0_i32_1 = arith.constant 0 : i32
    return %c0_i32, %c0_i32_0 : i32, i32
  }
  func.func @transform_5(%arg0: i32) -> (i32, i32, i32) {
    %c0_i32 = arith.constant 0 : i32
    %c0_i32_0 = arith.constant 0 : i32
    %c0_i32_1 = arith.constant 0 : i32
    return %arg0, %c0_i32, %c0_i32_0 : i32, i32, i32
  }
}

module attributes {stable_mosaic.version = 11 : i64} {
  func.func @_ffn_res_decomp_s_kernel(%arg0: i32, %arg1: memref<2x16x32xf32, #tpu.memory_space<vmem>>, %arg2: memref<32x64xbf16, #tpu.memory_space<vmem>>, %arg3: memref<64x32xbf16, #tpu.memory_space<vmem>>, %arg4: memref<16x16xbf16, #tpu.memory_space<vmem>>, %arg5: memref<2x16x32xf32, #tpu.memory_space<vmem>>) attributes {dimension_semantics = [#tpu.dimension_semantics<parallel>], iteration_bounds = array<i64: 2>, scalar_prefetch = 0 : i64, scratch_operands = 0 : i64, tpu.core_type = #tpu.core_type<tc>, window_params = [{transform_indices = @transform_0, window_bounds = array<i64: 2, 16, 32>}, {pipeline_mode = #tpu.pipeline_mode<synchronous>, transform_indices = @transform_1, window_bounds = array<i64: 32, 64>}, {pipeline_mode = #tpu.pipeline_mode<synchronous>, transform_indices = @transform_2, window_bounds = array<i64: 64, 32>}, {pipeline_mode = #tpu.pipeline_mode<synchronous>, transform_indices = @transform_3, window_bounds = array<i64: 16, 16>}, {transform_indices = @transform_4, window_bounds = array<i64: 2, 16, 32>}]} {
    %c0 = arith.constant 0 : index
    %c0_0 = arith.constant 0 : index
    %c0_1 = arith.constant 0 : index
    %0 = vector.load %arg1[%c0, %c0_0, %c0_1] : memref<2x16x32xf32, #tpu.memory_space<vmem>>, vector<2x16x32xf32>
    %1 = vector.shape_cast %0 : vector<2x16x32xf32> to vector<32x32xf32>
    %2 = arith.truncf %1 : vector<32x32xf32> to vector<32x32xbf16>
    %c0_2 = arith.constant 0 : index
    %c0_3 = arith.constant 0 : index
    %3 = vector.load %arg2[%c0_2, %c0_3] : memref<32x64xbf16, #tpu.memory_space<vmem>>, vector<32x64xbf16>
    %cst = arith.constant dense<0.000000e+00> : vector<32x64xf32>
    %4 = tpu.matmul %2, %3, %cst {dimension_numbers = #tpu.dot_dimension_numbers<[1], [0], [0], [1], [0, 0, 1, 1], [], []>} : vector<32x32xbf16>, vector<32x64xbf16>, vector<32x64xf32> -> vector<32x64xf32>
    %cst_4 = arith.constant 0.000000e+00 : f32
    %5 = vector.broadcast %cst_4 : f32 to vector<32x64xf32>
    %6 = arith.maximumf %4, %5 : vector<32x64xf32>
    %7 = arith.truncf %6 : vector<32x64xf32> to vector<32x64xbf16>
    %c0_5 = arith.constant 0 : index
    %c0_6 = arith.constant 0 : index
    %8 = vector.load %arg3[%c0_5, %c0_6] : memref<64x32xbf16, #tpu.memory_space<vmem>>, vector<64x32xbf16>
    %cst_7 = arith.constant dense<0.000000e+00> : vector<32x32xf32>
    %9 = tpu.matmul %7, %8, %cst_7 {dimension_numbers = #tpu.dot_dimension_numbers<[1], [0], [0], [1], [0, 0, 1, 1], [], []>} : vector<32x64xbf16>, vector<64x32xbf16>, vector<32x32xf32> -> vector<32x32xf32>
    %10 = vector.shape_cast %9 : vector<32x32xf32> to vector<2x16x32xf32>
    %11 = arith.addf %0, %10 : vector<2x16x32xf32>
    %c0_8 = arith.constant 0 : index
    %c0_9 = arith.constant 0 : index
    %12 = vector.load %arg4[%c0_8, %c0_9] : memref<16x16xbf16, #tpu.memory_space<vmem>>, vector<16x16xbf16>
    %13 = vector.extract_strided_slice %11 {offsets = [0, 0, 0], sizes = [1, 16, 32], strides = [1, 1, 1]} : vector<2x16x32xf32> to vector<1x16x32xf32>
    %14 = vector.shape_cast %13 : vector<1x16x32xf32> to vector<16x32xf32>
    %15 = arith.truncf %14 : vector<16x32xf32> to vector<16x32xbf16>
    %cst_10 = arith.constant dense<0.000000e+00> : vector<16x32xf32>
    %16 = tpu.matmul %12, %15, %cst_10 {dimension_numbers = #tpu.dot_dimension_numbers<[1], [0], [0], [1], [0, 0, 1, 1], [], []>} : vector<16x16xbf16>, vector<16x32xbf16>, vector<16x32xf32> -> vector<16x32xf32>
    %cst_11 = arith.constant 2.000000e-01 : f32
    %17 = vector.broadcast %cst_11 : f32 to vector<16x32xf32>
    %18 = arith.mulf %16, %17 : vector<16x32xf32>
    %19 = arith.subf %14, %18 : vector<16x32xf32>
    %c0_12 = arith.constant 0 : index
    %c0_13 = arith.constant 0 : index
    %c0_14 = arith.constant 0 : index
    %20 = vector.load %arg5[%c0_12, %c0_13, %c0_14] : memref<2x16x32xf32, #tpu.memory_space<vmem>>, vector<1x16x32xf32>
    %21 = vector.shape_cast %20 : vector<1x16x32xf32> to vector<16x32xf32>
    %22 = vector.shape_cast %19 : vector<16x32xf32> to vector<1x16x32xf32>
    tpu.vector_store %arg5[%c0_12, %c0_13, %c0_14], %22 {strides = array<i32>} : memref<2x16x32xf32, #tpu.memory_space<vmem>>, vector<1x16x32xf32>,
    %23 = vector.extract_strided_slice %11 {offsets = [1, 0, 0], sizes = [1, 16, 32], strides = [1, 1, 1]} : vector<2x16x32xf32> to vector<1x16x32xf32>
    %24 = vector.shape_cast %23 : vector<1x16x32xf32> to vector<16x32xf32>
    %25 = arith.truncf %24 : vector<16x32xf32> to vector<16x32xbf16>
    %cst_15 = arith.constant dense<0.000000e+00> : vector<16x32xf32>
    %26 = tpu.matmul %12, %25, %cst_15 {dimension_numbers = #tpu.dot_dimension_numbers<[1], [0], [0], [1], [0, 0, 1, 1], [], []>} : vector<16x16xbf16>, vector<16x32xbf16>, vector<16x32xf32> -> vector<16x32xf32>
    %cst_16 = arith.constant 2.000000e-01 : f32
    %27 = vector.broadcast %cst_16 : f32 to vector<16x32xf32>
    %28 = arith.mulf %26, %27 : vector<16x32xf32>
    %29 = arith.subf %24, %28 : vector<16x32xf32>
    %c1 = arith.constant 1 : index
    %c0_17 = arith.constant 0 : index
    %c0_18 = arith.constant 0 : index
    %30 = vector.load %arg5[%c1, %c0_17, %c0_18] : memref<2x16x32xf32, #tpu.memory_space<vmem>>, vector<1x16x32xf32>
    %31 = vector.shape_cast %30 : vector<1x16x32xf32> to vector<16x32xf32>
    %32 = vector.shape_cast %29 : vector<16x32xf32> to vector<1x16x32xf32>
    tpu.vector_store %arg5[%c1, %c0_17, %c0_18], %32 {strides = array<i32>} : memref<2x16x32xf32, #tpu.memory_space<vmem>>, vector<1x16x32xf32>,
    return
  }
  func.func @transform_0(%arg0: i32) -> (i32, i32, i32) {
    %c0_i32 = arith.constant 0 : i32
    %c0_i32_0 = arith.constant 0 : i32
    %c0_i32_1 = arith.constant 0 : i32
    return %arg0, %c0_i32, %c0_i32_0 : i32, i32, i32
  }
  func.func @transform_1(%arg0: i32) -> (i32, i32) {
    %c0_i32 = arith.constant 0 : i32
    %c0_i32_0 = arith.constant 0 : i32
    %c0_i32_1 = arith.constant 0 : i32
    return %c0_i32, %c0_i32_0 : i32, i32
  }
  func.func @transform_2(%arg0: i32) -> (i32, i32) {
    %c0_i32 = arith.constant 0 : i32
    %c0_i32_0 = arith.constant 0 : i32
    %c0_i32_1 = arith.constant 0 : i32
    return %c0_i32, %c0_i32_0 : i32, i32
  }
  func.func @transform_3(%arg0: i32) -> (i32, i32) {
    %c0_i32 = arith.constant 0 : i32
    %c0_i32_0 = arith.constant 0 : i32
    %c0_i32_1 = arith.constant 0 : i32
    return %c0_i32, %c0_i32_0 : i32, i32
  }
  func.func @transform_4(%arg0: i32) -> (i32, i32, i32) {
    %c0_i32 = arith.constant 0 : i32
    %c0_i32_0 = arith.constant 0 : i32
    %c0_i32_1 = arith.constant 0 : i32
    return %arg0, %c0_i32, %c0_i32_0 : i32, i32, i32
  }
}

module attributes {stable_mosaic.version = 11 : i64} {
  func.func @_my_layernorm_kernel(%arg0: i32, %arg1: memref<2x16x32xf32, #tpu.memory_space<vmem>>, %arg2: memref<1x32xf32, #tpu.memory_space<vmem>>, %arg3: memref<1x32xf32, #tpu.memory_space<vmem>>, %arg4: memref<2x16x32xf32, #tpu.memory_space<vmem>>) attributes {dimension_semantics = [#tpu.dimension_semantics<parallel>], iteration_bounds = array<i64: 2>, scalar_prefetch = 0 : i64, scratch_operands = 0 : i64, tpu.core_type = #tpu.core_type<tc>, window_params = [{transform_indices = @transform_0, window_bounds = array<i64: 2, 16, 32>}, {pipeline_mode = #tpu.pipeline_mode<synchronous>, transform_indices = @transform_1, window_bounds = array<i64: 1, 32>}, {pipeline_mode = #tpu.pipeline_mode<synchronous>, transform_indices = @transform_2, window_bounds = array<i64: 1, 32>}, {transform_indices = @transform_3, window_bounds = array<i64: 2, 16, 32>}]} {
    %c0 = arith.constant 0 : index
    %c0_0 = arith.constant 0 : index
    %c0_1 = arith.constant 0 : index
    %0 = vector.load %arg1[%c0, %c0_0, %c0_1] : memref<2x16x32xf32, #tpu.memory_space<vmem>>, vector<2x16x32xf32>
    %c0_2 = arith.constant 0 : index
    %c0_3 = arith.constant 0 : index
    %1 = vector.load %arg2[%c0_2, %c0_3] : memref<1x32xf32, #tpu.memory_space<vmem>>, vector<1x32xf32>
    %c0_4 = arith.constant 0 : index
    %c0_5 = arith.constant 0 : index
    %2 = vector.load %arg3[%c0_4, %c0_5] : memref<1x32xf32, #tpu.memory_space<vmem>>, vector<1x32xf32>
    %cst = arith.constant dense<0.000000e+00> : vector<2x16xf32>
    %3 = vector.multi_reduction <add>, %0, %cst [2] : vector<2x16x32xf32> to vector<2x16xf32>
    %4 = vector.shape_cast %3 : vector<2x16xf32> to vector<2x16x1xf32>
    %cst_6 = arith.constant 3.200000e+01 : f32
    %5 = vector.broadcast %cst_6 : f32 to vector<2x16x1xf32>
    %6 = arith.divf %4, %5 : vector<2x16x1xf32>
    %7 = vector.broadcast %6 : vector<2x16x1xf32> to vector<2x16x32xf32>
    %8 = arith.subf %0, %7 : vector<2x16x32xf32>
    %9 = arith.mulf %8, %8 : vector<2x16x32xf32>
    %cst_7 = arith.constant dense<0.000000e+00> : vector<2x16xf32>
    %10 = vector.multi_reduction <add>, %9, %cst_7 [2] : vector<2x16x32xf32> to vector<2x16xf32>
    %11 = vector.shape_cast %10 : vector<2x16xf32> to vector<2x16x1xf32>
    %cst_8 = arith.constant 3.200000e+01 : f32
    %12 = vector.broadcast %cst_8 : f32 to vector<2x16x1xf32>
    %13 = arith.divf %11, %12 : vector<2x16x1xf32>
    %14 = vector.broadcast %6 : vector<2x16x1xf32> to vector<2x16x32xf32>
    %15 = arith.subf %0, %14 : vector<2x16x32xf32>
    %cst_9 = arith.constant 9.99999974E-6 : f32
    %16 = vector.broadcast %cst_9 : f32 to vector<2x16x1xf32>
    %17 = arith.addf %13, %16 : vector<2x16x1xf32>
    %18 = math.rsqrt %17 : vector<2x16x1xf32>
    %19 = vector.broadcast %18 : vector<2x16x1xf32> to vector<2x16x32xf32>
    %20 = arith.mulf %15, %19 : vector<2x16x32xf32>
    %21 = vector.shape_cast %1 : vector<1x32xf32> to vector<1x1x32xf32>
    %22 = vector.broadcast %21 : vector<1x1x32xf32> to vector<2x16x32xf32>
    %23 = arith.mulf %20, %22 : vector<2x16x32xf32>
    %24 = vector.shape_cast %2 : vector<1x32xf32> to vector<1x1x32xf32>
    %25 = vector.broadcast %24 : vector<1x1x32xf32> to vector<2x16x32xf32>
    %26 = arith.addf %23, %25 : vector<2x16x32xf32>
    %cst_10 = arith.constant dense<0.000000e+00> : vector<2x32xf32>
    %27 = vector.multi_reduction <add>, %26, %cst_10 [1] : vector<2x16x32xf32> to vector<2x32xf32>
    %28 = vector.shape_cast %27 : vector<2x32xf32> to vector<2x1x32xf32>
    %cst_11 = arith.constant 1.600000e+01 : f32
    %29 = vector.broadcast %cst_11 : f32 to vector<2x1x32xf32>
    %30 = arith.divf %28, %29 : vector<2x1x32xf32>
    %31 = vector.broadcast %30 : vector<2x1x32xf32> to vector<2x16x32xf32>
    %32 = arith.subf %26, %31 : vector<2x16x32xf32>
    %c0_12 = arith.constant 0 : index
    %c0_13 = arith.constant 0 : index
    %c0_14 = arith.constant 0 : index
    %33 = vector.load %arg4[%c0_12, %c0_13, %c0_14] : memref<2x16x32xf32, #tpu.memory_space<vmem>>, vector<2x16x32xf32>
    tpu.vector_store %arg4[%c0_12, %c0_13, %c0_14], %32 {strides = array<i32>} : memref<2x16x32xf32, #tpu.memory_space<vmem>>, vector<2x16x32xf32>,
    return
  }
  func.func @transform_0(%arg0: i32) -> (i32, i32, i32) {
    %c0_i32 = arith.constant 0 : i32
    %c0_i32_0 = arith.constant 0 : i32
    %c0_i32_1 = arith.constant 0 : i32
    return %arg0, %c0_i32, %c0_i32_0 : i32, i32, i32
  }
  func.func @transform_1(%arg0: i32) -> (i32, i32) {
    %c0_i32 = arith.constant 0 : i32
    %c0_i32_0 = arith.constant 0 : i32
    %c0_i32_1 = arith.constant 0 : i32
    return %c0_i32, %c0_i32_0 : i32, i32
  }
  func.func @transform_2(%arg0: i32) -> (i32, i32) {
    %c0_i32 = arith.constant 0 : i32
    %c0_i32_0 = arith.constant 0 : i32
    %c0_i32_1 = arith.constant 0 : i32
    return %c0_i32, %c0_i32_0 : i32, i32
  }
  func.func @transform_3(%arg0: i32) -> (i32, i32, i32) {
    %c0_i32 = arith.constant 0 : i32
    %c0_i32_0 = arith.constant 0 : i32
    %c0_i32_1 = arith.constant 0 : i32
    return %arg0, %c0_i32, %c0_i32_0 : i32, i32, i32
  }
}

module attributes {stable_mosaic.version = 11 : i64} {
  func.func @_proj_res_decomp_kernel(%arg0: i32, %arg1: memref<2x16x32xf32, #tpu.memory_space<vmem>>, %arg2: memref<2x16x32xf32, #tpu.memory_space<vmem>>, %arg3: memref<32x32xbf16, #tpu.memory_space<vmem>>, %arg4: memref<1x32xf32, #tpu.memory_space<vmem>>, %arg5: memref<16x16xbf16, #tpu.memory_space<vmem>>, %arg6: memref<2x16x32xf32, #tpu.memory_space<vmem>>, %arg7: memref<2x16x32xf32, #tpu.memory_space<vmem>>) attributes {dimension_semantics = [#tpu.dimension_semantics<parallel>], iteration_bounds = array<i64: 2>, scalar_prefetch = 0 : i64, scratch_operands = 0 : i64, tpu.core_type = #tpu.core_type<tc>, window_params = [{transform_indices = @transform_0, window_bounds = array<i64: 2, 16, 32>}, {transform_indices = @transform_1, window_bounds = array<i64: 2, 16, 32>}, {pipeline_mode = #tpu.pipeline_mode<synchronous>, transform_indices = @transform_2, window_bounds = array<i64: 32, 32>}, {pipeline_mode = #tpu.pipeline_mode<synchronous>, transform_indices = @transform_3, window_bounds = array<i64: 1, 32>}, {pipeline_mode = #tpu.pipeline_mode<synchronous>, transform_indices = @transform_4, window_bounds = array<i64: 16, 16>}, {transform_indices = @transform_5, window_bounds = array<i64: 2, 16, 32>}, {transform_indices = @transform_6, window_bounds = array<i64: 2, 16, 32>}]} {
    %c0 = arith.constant 0 : index
    %c0_0 = arith.constant 0 : index
    %c0_1 = arith.constant 0 : index
    %0 = vector.load %arg1[%c0, %c0_0, %c0_1] : memref<2x16x32xf32, #tpu.memory_space<vmem>>, vector<2x16x32xf32>
    %1 = vector.shape_cast %0 : vector<2x16x32xf32> to vector<32x32xf32>
    %2 = arith.truncf %1 : vector<32x32xf32> to vector<32x32xbf16>
    %c0_2 = arith.constant 0 : index
    %c0_3 = arith.constant 0 : index
    %3 = vector.load %arg3[%c0_2, %c0_3] : memref<32x32xbf16, #tpu.memory_space<vmem>>, vector<32x32xbf16>
    %cst = arith.constant dense<0.000000e+00> : vector<32x32xf32>
    %4 = tpu.matmul %2, %3, %cst {dimension_numbers = #tpu.dot_dimension_numbers<[1], [0], [0], [1], [0, 0, 1, 1], [], []>} : vector<32x32xbf16>, vector<32x32xbf16>, vector<32x32xf32> -> vector<32x32xf32>
    %c0_4 = arith.constant 0 : index
    %c0_5 = arith.constant 0 : index
    %5 = vector.load %arg4[%c0_4, %c0_5] : memref<1x32xf32, #tpu.memory_space<vmem>>, vector<1x32xf32>
    %6 = vector.broadcast %5 : vector<1x32xf32> to vector<32x32xf32>
    %7 = arith.addf %4, %6 : vector<32x32xf32>
    %c0_6 = arith.constant 0 : index
    %c0_7 = arith.constant 0 : index
    %c0_8 = arith.constant 0 : index
    %8 = vector.load %arg2[%c0_6, %c0_7, %c0_8] : memref<2x16x32xf32, #tpu.memory_space<vmem>>, vector<2x16x32xf32>
    %9 = vector.shape_cast %7 : vector<32x32xf32> to vector<2x16x32xf32>
    %10 = arith.addf %8, %9 : vector<2x16x32xf32>
    %c0_9 = arith.constant 0 : index
    %c0_10 = arith.constant 0 : index
    %11 = vector.load %arg5[%c0_9, %c0_10] : memref<16x16xbf16, #tpu.memory_space<vmem>>, vector<16x16xbf16>
    %12 = vector.extract_strided_slice %10 {offsets = [0, 0, 0], sizes = [1, 16, 32], strides = [1, 1, 1]} : vector<2x16x32xf32> to vector<1x16x32xf32>
    %13 = vector.shape_cast %12 : vector<1x16x32xf32> to vector<16x32xf32>
    %14 = arith.truncf %13 : vector<16x32xf32> to vector<16x32xbf16>
    %cst_11 = arith.constant dense<0.000000e+00> : vector<16x32xf32>
    %15 = tpu.matmul %11, %14, %cst_11 {dimension_numbers = #tpu.dot_dimension_numbers<[1], [0], [0], [1], [0, 0, 1, 1], [], []>} : vector<16x16xbf16>, vector<16x32xbf16>, vector<16x32xf32> -> vector<16x32xf32>
    %cst_12 = arith.constant 2.000000e-01 : f32
    %16 = vector.broadcast %cst_12 : f32 to vector<16x32xf32>
    %17 = arith.mulf %15, %16 : vector<16x32xf32>
    %18 = arith.subf %13, %17 : vector<16x32xf32>
    %c0_13 = arith.constant 0 : index
    %c0_14 = arith.constant 0 : index
    %c0_15 = arith.constant 0 : index
    %19 = vector.load %arg6[%c0_13, %c0_14, %c0_15] : memref<2x16x32xf32, #tpu.memory_space<vmem>>, vector<1x16x32xf32>
    %20 = vector.shape_cast %19 : vector<1x16x32xf32> to vector<16x32xf32>
    %21 = vector.shape_cast %18 : vector<16x32xf32> to vector<1x16x32xf32>
    tpu.vector_store %arg6[%c0_13, %c0_14, %c0_15], %21 {strides = array<i32>} : memref<2x16x32xf32, #tpu.memory_space<vmem>>, vector<1x16x32xf32>,
    %c0_16 = arith.constant 0 : index
    %c0_17 = arith.constant 0 : index
    %c0_18 = arith.constant 0 : index
    %22 = vector.load %arg7[%c0_16, %c0_17, %c0_18] : memref<2x16x32xf32, #tpu.memory_space<vmem>>, vector<1x16x32xf32>
    %23 = vector.shape_cast %22 : vector<1x16x32xf32> to vector<16x32xf32>
    %24 = vector.shape_cast %17 : vector<16x32xf32> to vector<1x16x32xf32>
    tpu.vector_store %arg7[%c0_16, %c0_17, %c0_18], %24 {strides = array<i32>} : memref<2x16x32xf32, #tpu.memory_space<vmem>>, vector<1x16x32xf32>,
    %25 = vector.extract_strided_slice %10 {offsets = [1, 0, 0], sizes = [1, 16, 32], strides = [1, 1, 1]} : vector<2x16x32xf32> to vector<1x16x32xf32>
    %26 = vector.shape_cast %25 : vector<1x16x32xf32> to vector<16x32xf32>
    %27 = arith.truncf %26 : vector<16x32xf32> to vector<16x32xbf16>
    %cst_19 = arith.constant dense<0.000000e+00> : vector<16x32xf32>
    %28 = tpu.matmul %11, %27, %cst_19 {dimension_numbers = #tpu.dot_dimension_numbers<[1], [0], [0], [1], [0, 0, 1, 1], [], []>} : vector<16x16xbf16>, vector<16x32xbf16>, vector<16x32xf32> -> vector<16x32xf32>
    %cst_20 = arith.constant 2.000000e-01 : f32
    %29 = vector.broadcast %cst_20 : f32 to vector<16x32xf32>
    %30 = arith.mulf %28, %29 : vector<16x32xf32>
    %31 = arith.subf %26, %30 : vector<16x32xf32>
    %c1 = arith.constant 1 : index
    %c0_21 = arith.constant 0 : index
    %c0_22 = arith.constant 0 : index
    %32 = vector.load %arg6[%c1, %c0_21, %c0_22] : memref<2x16x32xf32, #tpu.memory_space<vmem>>, vector<1x16x32xf32>
    %33 = vector.shape_cast %32 : vector<1x16x32xf32> to vector<16x32xf32>
    %34 = vector.shape_cast %31 : vector<16x32xf32> to vector<1x16x32xf32>
    tpu.vector_store %arg6[%c1, %c0_21, %c0_22], %34 {strides = array<i32>} : memref<2x16x32xf32, #tpu.memory_space<vmem>>, vector<1x16x32xf32>,
    %c1_23 = arith.constant 1 : index
    %c0_24 = arith.constant 0 : index
    %c0_25 = arith.constant 0 : index
    %35 = vector.load %arg7[%c1_23, %c0_24, %c0_25] : memref<2x16x32xf32, #tpu.memory_space<vmem>>, vector<1x16x32xf32>
    %36 = vector.shape_cast %35 : vector<1x16x32xf32> to vector<16x32xf32>
    %37 = vector.shape_cast %30 : vector<16x32xf32> to vector<1x16x32xf32>
    tpu.vector_store %arg7[%c1_23, %c0_24, %c0_25], %37 {strides = array<i32>} : memref<2x16x32xf32, #tpu.memory_space<vmem>>, vector<1x16x32xf32>,
    return
  }
  func.func @transform_0(%arg0: i32) -> (i32, i32, i32) {
    %c0_i32 = arith.constant 0 : i32
    %c0_i32_0 = arith.constant 0 : i32
    %c0_i32_1 = arith.constant 0 : i32
    return %arg0, %c0_i32, %c0_i32_0 : i32, i32, i32
  }
  func.func @transform_1(%arg0: i32) -> (i32, i32, i32) {
    %c0_i32 = arith.constant 0 : i32
    %c0_i32_0 = arith.constant 0 : i32
    %c0_i32_1 = arith.constant 0 : i32
    return %arg0, %c0_i32, %c0_i32_0 : i32, i32, i32
  }
  func.func @transform_2(%arg0: i32) -> (i32, i32) {
    %c0_i32 = arith.constant 0 : i32
    %c0_i32_0 = arith.constant 0 : i32
    %c0_i32_1 = arith.constant 0 : i32
    return %c0_i32, %c0_i32_0 : i32, i32
  }
  func.func @transform_3(%arg0: i32) -> (i32, i32) {
    %c0_i32 = arith.constant 0 : i32
    %c0_i32_0 = arith.constant 0 : i32
    %c0_i32_1 = arith.constant 0 : i32
    return %c0_i32, %c0_i32_0 : i32, i32
  }
  func.func @transform_4(%arg0: i32) -> (i32, i32) {
    %c0_i32 = arith.constant 0 : i32
    %c0_i32_0 = arith.constant 0 : i32
    %c0_i32_1 = arith.constant 0 : i32
    return %c0_i32, %c0_i32_0 : i32, i32
  }
  func.func @transform_5(%arg0: i32) -> (i32, i32, i32) {
    %c0_i32 = arith.constant 0 : i32
    %c0_i32_0 = arith.constant 0 : i32
    %c0_i32_1 = arith.constant 0 : i32
    return %arg0, %c0_i32, %c0_i32_0 : i32, i32, i32
  }
  func.func @transform_6(%arg0: i32) -> (i32, i32, i32) {
    %c0_i32 = arith.constant 0 : i32
    %c0_i32_0 = arith.constant 0 : i32
    %c0_i32_1 = arith.constant 0 : i32
    return %arg0, %c0_i32, %c0_i32_0 : i32, i32, i32
  }
}

module attributes {stable_mosaic.version = 11 : i64} {
  func.func @_q_kv_kernel(%arg0: i32, %arg1: memref<2x16x32xf32, #tpu.memory_space<vmem>>, %arg2: memref<2x16x32xf32, #tpu.memory_space<vmem>>, %arg3: memref<32x32xbf16, #tpu.memory_space<vmem>>, %arg4: memref<1x32xf32, #tpu.memory_space<vmem>>, %arg5: memref<32x64xbf16, #tpu.memory_space<vmem>>, %arg6: memref<1x64xf32, #tpu.memory_space<vmem>>, %arg7: memref<2x16x32xf32, #tpu.memory_space<vmem>>, %arg8: memref<2x16x64xf32, #tpu.memory_space<vmem>>) attributes {dimension_semantics = [#tpu.dimension_semantics<parallel>], iteration_bounds = array<i64: 2>, scalar_prefetch = 0 : i64, scratch_operands = 0 : i64, tpu.core_type = #tpu.core_type<tc>, window_params = [{transform_indices = @transform_0, window_bounds = array<i64: 2, 16, 32>}, {transform_indices = @transform_1, window_bounds = array<i64: 2, 16, 32>}, {pipeline_mode = #tpu.pipeline_mode<synchronous>, transform_indices = @transform_2, window_bounds = array<i64: 32, 32>}, {pipeline_mode = #tpu.pipeline_mode<synchronous>, transform_indices = @transform_3, window_bounds = array<i64: 1, 32>}, {pipeline_mode = #tpu.pipeline_mode<synchronous>, transform_indices = @transform_4, window_bounds = array<i64: 32, 64>}, {pipeline_mode = #tpu.pipeline_mode<synchronous>, transform_indices = @transform_5, window_bounds = array<i64: 1, 64>}, {transform_indices = @transform_6, window_bounds = array<i64: 2, 16, 32>}, {transform_indices = @transform_7, window_bounds = array<i64: 2, 16, 64>}]} {
    %c0 = arith.constant 0 : index
    %c0_0 = arith.constant 0 : index
    %c0_1 = arith.constant 0 : index
    %0 = vector.load %arg1[%c0, %c0_0, %c0_1] : memref<2x16x32xf32, #tpu.memory_space<vmem>>, vector<2x16x32xf32>
    %1 = vector.shape_cast %0 : vector<2x16x32xf32> to vector<32x32xf32>
    %2 = arith.truncf %1 : vector<32x32xf32> to vector<32x32xbf16>
    %c0_2 = arith.constant 0 : index
    %c0_3 = arith.constant 0 : index
    %3 = vector.load %arg3[%c0_2, %c0_3] : memref<32x32xbf16, #tpu.memory_space<vmem>>, vector<32x32xbf16>
    %cst = arith.constant dense<0.000000e+00> : vector<32x32xf32>
    %4 = tpu.matmul %2, %3, %cst {dimension_numbers = #tpu.dot_dimension_numbers<[1], [0], [0], [1], [0, 0, 1, 1], [], []>} : vector<32x32xbf16>, vector<32x32xbf16>, vector<32x32xf32> -> vector<32x32xf32>
    %c0_4 = arith.constant 0 : index
    %c0_5 = arith.constant 0 : index
    %5 = vector.load %arg4[%c0_4, %c0_5] : memref<1x32xf32, #tpu.memory_space<vmem>>, vector<1x32xf32>
    %6 = vector.broadcast %5 : vector<1x32xf32> to vector<32x32xf32>
    %7 = arith.addf %4, %6 : vector<32x32xf32>
    %8 = vector.shape_cast %7 : vector<32x32xf32> to vector<2x16x32xf32>
    %c0_6 = arith.constant 0 : index
    %c0_7 = arith.constant 0 : index
    %c0_8 = arith.constant 0 : index
    %9 = vector.load %arg7[%c0_6, %c0_7, %c0_8] : memref<2x16x32xf32, #tpu.memory_space<vmem>>, vector<2x16x32xf32>
    tpu.vector_store %arg7[%c0_6, %c0_7, %c0_8], %8 {strides = array<i32>} : memref<2x16x32xf32, #tpu.memory_space<vmem>>, vector<2x16x32xf32>,
    %c0_9 = arith.constant 0 : index
    %c0_10 = arith.constant 0 : index
    %c0_11 = arith.constant 0 : index
    %10 = vector.load %arg2[%c0_9, %c0_10, %c0_11] : memref<2x16x32xf32, #tpu.memory_space<vmem>>, vector<2x16x32xf32>
    %11 = vector.shape_cast %10 : vector<2x16x32xf32> to vector<32x32xf32>
    %12 = arith.truncf %11 : vector<32x32xf32> to vector<32x32xbf16>
    %c0_12 = arith.constant 0 : index
    %c0_13 = arith.constant 0 : index
    %13 = vector.load %arg5[%c0_12, %c0_13] : memref<32x64xbf16, #tpu.memory_space<vmem>>, vector<32x64xbf16>
    %cst_14 = arith.constant dense<0.000000e+00> : vector<32x64xf32>
    %14 = tpu.matmul %12, %13, %cst_14 {dimension_numbers = #tpu.dot_dimension_numbers<[1], [0], [0], [1], [0, 0, 1, 1], [], []>} : vector<32x32xbf16>, vector<32x64xbf16>, vector<32x64xf32> -> vector<32x64xf32>
    %c0_15 = arith.constant 0 : index
    %c0_16 = arith.constant 0 : index
    %15 = vector.load %arg6[%c0_15, %c0_16] : memref<1x64xf32, #tpu.memory_space<vmem>>, vector<1x64xf32>
    %16 = vector.broadcast %15 : vector<1x64xf32> to vector<32x64xf32>
    %17 = arith.addf %14, %16 : vector<32x64xf32>
    %18 = vector.shape_cast %17 : vector<32x64xf32> to vector<2x16x64xf32>
    %c0_17 = arith.constant 0 : index
    %c0_18 = arith.constant 0 : index
    %c0_19 = arith.constant 0 : index
    %19 = vector.load %arg8[%c0_17, %c0_18, %c0_19] : memref<2x16x64xf32, #tpu.memory_space<vmem>>, vector<2x16x64xf32>
    tpu.vector_store %arg8[%c0_17, %c0_18, %c0_19], %18 {strides = array<i32>} : memref<2x16x64xf32, #tpu.memory_space<vmem>>, vector<2x16x64xf32>,
    return
  }
  func.func @transform_0(%arg0: i32) -> (i32, i32, i32) {
    %c0_i32 = arith.constant 0 : i32
    %c0_i32_0 = arith.constant 0 : i32
    %c0_i32_1 = arith.constant 0 : i32
    return %arg0, %c0_i32, %c0_i32_0 : i32, i32, i32
  }
  func.func @transform_1(%arg0: i32) -> (i32, i32, i32) {
    %c0_i32 = arith.constant 0 : i32
    %c0_i32_0 = arith.constant 0 : i32
    %c0_i32_1 = arith.constant 0 : i32
    return %arg0, %c0_i32, %c0_i32_0 : i32, i32, i32
  }
  func.func @transform_2(%arg0: i32) -> (i32, i32) {
    %c0_i32 = arith.constant 0 : i32
    %c0_i32_0 = arith.constant 0 : i32
    %c0_i32_1 = arith.constant 0 : i32
    return %c0_i32, %c0_i32_0 : i32, i32
  }
  func.func @transform_3(%arg0: i32) -> (i32, i32) {
    %c0_i32 = arith.constant 0 : i32
    %c0_i32_0 = arith.constant 0 : i32
    %c0_i32_1 = arith.constant 0 : i32
    return %c0_i32, %c0_i32_0 : i32, i32
  }
  func.func @transform_4(%arg0: i32) -> (i32, i32) {
    %c0_i32 = arith.constant 0 : i32
    %c0_i32_0 = arith.constant 0 : i32
    %c0_i32_1 = arith.constant 0 : i32
    return %c0_i32, %c0_i32_0 : i32, i32
  }
  func.func @transform_5(%arg0: i32) -> (i32, i32) {
    %c0_i32 = arith.constant 0 : i32
    %c0_i32_0 = arith.constant 0 : i32
    %c0_i32_1 = arith.constant 0 : i32
    return %c0_i32, %c0_i32_0 : i32, i32
  }
  func.func @transform_6(%arg0: i32) -> (i32, i32, i32) {
    %c0_i32 = arith.constant 0 : i32
    %c0_i32_0 = arith.constant 0 : i32
    %c0_i32_1 = arith.constant 0 : i32
    return %arg0, %c0_i32, %c0_i32_0 : i32, i32, i32
  }
  func.func @transform_7(%arg0: i32) -> (i32, i32, i32) {
    %c0_i32 = arith.constant 0 : i32
    %c0_i32_0 = arith.constant 0 : i32
    %c0_i32_1 = arith.constant 0 : i32
    return %arg0, %c0_i32, %c0_i32_0 : i32, i32, i32
  }
}

module attributes {stable_mosaic.version = 11 : i64} {
  func.func @_ffn_res_decomp_kernel(%arg0: i32, %arg1: memref<2x16x32xf32, #tpu.memory_space<vmem>>, %arg2: memref<32x64xbf16, #tpu.memory_space<vmem>>, %arg3: memref<64x32xbf16, #tpu.memory_space<vmem>>, %arg4: memref<16x16xbf16, #tpu.memory_space<vmem>>, %arg5: memref<2x16x32xf32, #tpu.memory_space<vmem>>, %arg6: memref<2x16x32xf32, #tpu.memory_space<vmem>>) attributes {dimension_semantics = [#tpu.dimension_semantics<parallel>], iteration_bounds = array<i64: 2>, scalar_prefetch = 0 : i64, scratch_operands = 0 : i64, tpu.core_type = #tpu.core_type<tc>, window_params = [{transform_indices = @transform_0, window_bounds = array<i64: 2, 16, 32>}, {pipeline_mode = #tpu.pipeline_mode<synchronous>, transform_indices = @transform_1, window_bounds = array<i64: 32, 64>}, {pipeline_mode = #tpu.pipeline_mode<synchronous>, transform_indices = @transform_2, window_bounds = array<i64: 64, 32>}, {pipeline_mode = #tpu.pipeline_mode<synchronous>, transform_indices = @transform_3, window_bounds = array<i64: 16, 16>}, {transform_indices = @transform_4, window_bounds = array<i64: 2, 16, 32>}, {transform_indices = @transform_5, window_bounds = array<i64: 2, 16, 32>}]} {
    %c0 = arith.constant 0 : index
    %c0_0 = arith.constant 0 : index
    %c0_1 = arith.constant 0 : index
    %0 = vector.load %arg1[%c0, %c0_0, %c0_1] : memref<2x16x32xf32, #tpu.memory_space<vmem>>, vector<2x16x32xf32>
    %1 = vector.shape_cast %0 : vector<2x16x32xf32> to vector<32x32xf32>
    %2 = arith.truncf %1 : vector<32x32xf32> to vector<32x32xbf16>
    %c0_2 = arith.constant 0 : index
    %c0_3 = arith.constant 0 : index
    %3 = vector.load %arg2[%c0_2, %c0_3] : memref<32x64xbf16, #tpu.memory_space<vmem>>, vector<32x64xbf16>
    %cst = arith.constant dense<0.000000e+00> : vector<32x64xf32>
    %4 = tpu.matmul %2, %3, %cst {dimension_numbers = #tpu.dot_dimension_numbers<[1], [0], [0], [1], [0, 0, 1, 1], [], []>} : vector<32x32xbf16>, vector<32x64xbf16>, vector<32x64xf32> -> vector<32x64xf32>
    %cst_4 = arith.constant 0.000000e+00 : f32
    %5 = vector.broadcast %cst_4 : f32 to vector<32x64xf32>
    %6 = arith.maximumf %4, %5 : vector<32x64xf32>
    %7 = arith.truncf %6 : vector<32x64xf32> to vector<32x64xbf16>
    %c0_5 = arith.constant 0 : index
    %c0_6 = arith.constant 0 : index
    %8 = vector.load %arg3[%c0_5, %c0_6] : memref<64x32xbf16, #tpu.memory_space<vmem>>, vector<64x32xbf16>
    %cst_7 = arith.constant dense<0.000000e+00> : vector<32x32xf32>
    %9 = tpu.matmul %7, %8, %cst_7 {dimension_numbers = #tpu.dot_dimension_numbers<[1], [0], [0], [1], [0, 0, 1, 1], [], []>} : vector<32x64xbf16>, vector<64x32xbf16>, vector<32x32xf32> -> vector<32x32xf32>
    %10 = vector.shape_cast %9 : vector<32x32xf32> to vector<2x16x32xf32>
    %11 = arith.addf %0, %10 : vector<2x16x32xf32>
    %c0_8 = arith.constant 0 : index
    %c0_9 = arith.constant 0 : index
    %12 = vector.load %arg4[%c0_8, %c0_9] : memref<16x16xbf16, #tpu.memory_space<vmem>>, vector<16x16xbf16>
    %13 = vector.extract_strided_slice %11 {offsets = [0, 0, 0], sizes = [1, 16, 32], strides = [1, 1, 1]} : vector<2x16x32xf32> to vector<1x16x32xf32>
    %14 = vector.shape_cast %13 : vector<1x16x32xf32> to vector<16x32xf32>
    %15 = arith.truncf %14 : vector<16x32xf32> to vector<16x32xbf16>
    %cst_10 = arith.constant dense<0.000000e+00> : vector<16x32xf32>
    %16 = tpu.matmul %12, %15, %cst_10 {dimension_numbers = #tpu.dot_dimension_numbers<[1], [0], [0], [1], [0, 0, 1, 1], [], []>} : vector<16x16xbf16>, vector<16x32xbf16>, vector<16x32xf32> -> vector<16x32xf32>
    %cst_11 = arith.constant 2.000000e-01 : f32
    %17 = vector.broadcast %cst_11 : f32 to vector<16x32xf32>
    %18 = arith.mulf %16, %17 : vector<16x32xf32>
    %19 = arith.subf %14, %18 : vector<16x32xf32>
    %c0_12 = arith.constant 0 : index
    %c0_13 = arith.constant 0 : index
    %c0_14 = arith.constant 0 : index
    %20 = vector.load %arg5[%c0_12, %c0_13, %c0_14] : memref<2x16x32xf32, #tpu.memory_space<vmem>>, vector<1x16x32xf32>
    %21 = vector.shape_cast %20 : vector<1x16x32xf32> to vector<16x32xf32>
    %22 = vector.shape_cast %19 : vector<16x32xf32> to vector<1x16x32xf32>
    tpu.vector_store %arg5[%c0_12, %c0_13, %c0_14], %22 {strides = array<i32>} : memref<2x16x32xf32, #tpu.memory_space<vmem>>, vector<1x16x32xf32>,
    %c0_15 = arith.constant 0 : index
    %c0_16 = arith.constant 0 : index
    %c0_17 = arith.constant 0 : index
    %23 = vector.load %arg6[%c0_15, %c0_16, %c0_17] : memref<2x16x32xf32, #tpu.memory_space<vmem>>, vector<1x16x32xf32>
    %24 = vector.shape_cast %23 : vector<1x16x32xf32> to vector<16x32xf32>
    %25 = vector.shape_cast %18 : vector<16x32xf32> to vector<1x16x32xf32>
    tpu.vector_store %arg6[%c0_15, %c0_16, %c0_17], %25 {strides = array<i32>} : memref<2x16x32xf32, #tpu.memory_space<vmem>>, vector<1x16x32xf32>,
    %26 = vector.extract_strided_slice %11 {offsets = [1, 0, 0], sizes = [1, 16, 32], strides = [1, 1, 1]} : vector<2x16x32xf32> to vector<1x16x32xf32>
    %27 = vector.shape_cast %26 : vector<1x16x32xf32> to vector<16x32xf32>
    %28 = arith.truncf %27 : vector<16x32xf32> to vector<16x32xbf16>
    %cst_18 = arith.constant dense<0.000000e+00> : vector<16x32xf32>
    %29 = tpu.matmul %12, %28, %cst_18 {dimension_numbers = #tpu.dot_dimension_numbers<[1], [0], [0], [1], [0, 0, 1, 1], [], []>} : vector<16x16xbf16>, vector<16x32xbf16>, vector<16x32xf32> -> vector<16x32xf32>
    %cst_19 = arith.constant 2.000000e-01 : f32
    %30 = vector.broadcast %cst_19 : f32 to vector<16x32xf32>
    %31 = arith.mulf %29, %30 : vector<16x32xf32>
    %32 = arith.subf %27, %31 : vector<16x32xf32>
    %c1 = arith.constant 1 : index
    %c0_20 = arith.constant 0 : index
    %c0_21 = arith.constant 0 : index
    %33 = vector.load %arg5[%c1, %c0_20, %c0_21] : memref<2x16x32xf32, #tpu.memory_space<vmem>>, vector<1x16x32xf32>
    %34 = vector.shape_cast %33 : vector<1x16x32xf32> to vector<16x32xf32>
    %35 = vector.shape_cast %32 : vector<16x32xf32> to vector<1x16x32xf32>
    tpu.vector_store %arg5[%c1, %c0_20, %c0_21], %35 {strides = array<i32>} : memref<2x16x32xf32, #tpu.memory_space<vmem>>, vector<1x16x32xf32>,
    %c1_22 = arith.constant 1 : index
    %c0_23 = arith.constant 0 : index
    %c0_24 = arith.constant 0 : index
    %36 = vector.load %arg6[%c1_22, %c0_23, %c0_24] : memref<2x16x32xf32, #tpu.memory_space<vmem>>, vector<1x16x32xf32>
    %37 = vector.shape_cast %36 : vector<1x16x32xf32> to vector<16x32xf32>
    %38 = vector.shape_cast %31 : vector<16x32xf32> to vector<1x16x32xf32>
    tpu.vector_store %arg6[%c1_22, %c0_23, %c0_24], %38 {strides = array<i32>} : memref<2x16x32xf32, #tpu.memory_space<vmem>>, vector<1x16x32xf32>,
    return
  }
  func.func @transform_0(%arg0: i32) -> (i32, i32, i32) {
    %c0_i32 = arith.constant 0 : i32
    %c0_i32_0 = arith.constant 0 : i32
    %c0_i32_1 = arith.constant 0 : i32
    return %arg0, %c0_i32, %c0_i32_0 : i32, i32, i32
  }
  func.func @transform_1(%arg0: i32) -> (i32, i32) {
    %c0_i32 = arith.constant 0 : i32
    %c0_i32_0 = arith.constant 0 : i32
    %c0_i32_1 = arith.constant 0 : i32
    return %c0_i32, %c0_i32_0 : i32, i32
  }
  func.func @transform_2(%arg0: i32) -> (i32, i32) {
    %c0_i32 = arith.constant 0 : i32
    %c0_i32_0 = arith.constant 0 : i32
    %c0_i32_1 = arith.constant 0 : i32
    return %c0_i32, %c0_i32_0 : i32, i32
  }
  func.func @transform_3(%arg0: i32) -> (i32, i32) {
    %c0_i32 = arith.constant 0 : i32
    %c0_i32_0 = arith.constant 0 : i32
    %c0_i32_1 = arith.constant 0 : i32
    return %c0_i32, %c0_i32_0 : i32, i32
  }
  func.func @transform_4(%arg0: i32) -> (i32, i32, i32) {
    %c0_i32 = arith.constant 0 : i32
    %c0_i32_0 = arith.constant 0 : i32
    %c0_i32_1 = arith.constant 0 : i32
    return %arg0, %c0_i32, %c0_i32_0 : i32, i32, i32
  }
  func.func @transform_5(%arg0: i32) -> (i32, i32, i32) {
    %c0_i32 = arith.constant 0 : i32
    %c0_i32_0 = arith.constant 0 : i32
    %c0_i32_1 = arith.constant 0 : i32
    return %arg0, %c0_i32, %c0_i32_0 : i32, i32, i32
  }
}

module attributes {stable_mosaic.version = 11 : i64} {
  func.func @_trend_kernel(%arg0: i32, %arg1: memref<2x16x32xf32, #tpu.memory_space<vmem>>, %arg2: memref<2x16x32xf32, #tpu.memory_space<vmem>>, %arg3: memref<2x16x32xf32, #tpu.memory_space<vmem>>, %arg4: memref<2x16x128xf32, #tpu.memory_space<vmem>>, %arg5: memref<32x384xbf16, #tpu.memory_space<vmem>>, %arg6: memref<2x16x128xf32, #tpu.memory_space<vmem>>) attributes {dimension_semantics = [#tpu.dimension_semantics<parallel>], iteration_bounds = array<i64: 2>, scalar_prefetch = 0 : i64, scratch_operands = 0 : i64, tpu.core_type = #tpu.core_type<tc>, window_params = [{transform_indices = @transform_0, window_bounds = array<i64: 2, 16, 32>}, {transform_indices = @transform_1, window_bounds = array<i64: 2, 16, 32>}, {transform_indices = @transform_2, window_bounds = array<i64: 2, 16, 32>}, {transform_indices = @transform_3, window_bounds = array<i64: 2, 16, 128>}, {pipeline_mode = #tpu.pipeline_mode<synchronous>, transform_indices = @transform_4, window_bounds = array<i64: 32, 384>}, {transform_indices = @transform_5, window_bounds = array<i64: 2, 16, 128>}]} {
    %c0 = arith.constant 0 : index
    %c0_0 = arith.constant 0 : index
    %c0_1 = arith.constant 0 : index
    %0 = vector.load %arg1[%c0, %c0_0, %c0_1] : memref<2x16x32xf32, #tpu.memory_space<vmem>>, vector<2x16x32xf32>
    %c0_2 = arith.constant 0 : index
    %c0_3 = arith.constant 0 : index
    %c0_4 = arith.constant 0 : index
    %1 = vector.load %arg2[%c0_2, %c0_3, %c0_4] : memref<2x16x32xf32, #tpu.memory_space<vmem>>, vector<2x16x32xf32>
    %2 = arith.addf %0, %1 : vector<2x16x32xf32>
    %c0_5 = arith.constant 0 : index
    %c0_6 = arith.constant 0 : index
    %c0_7 = arith.constant 0 : index
    %3 = vector.load %arg3[%c0_5, %c0_6, %c0_7] : memref<2x16x32xf32, #tpu.memory_space<vmem>>, vector<2x16x32xf32>
    %4 = arith.addf %2, %3 : vector<2x16x32xf32>
    %5 = vector.shape_cast %4 : vector<2x16x32xf32> to vector<32x32xf32>
    %6 = arith.truncf %5 : vector<32x32xf32> to vector<32x32xbf16>
    %c0_8 = arith.constant 0 : index
    %c0_9 = arith.constant 0 : index
    %7 = vector.load %arg5[%c0_8, %c0_9] : memref<32x384xbf16, #tpu.memory_space<vmem>>, vector<32x384xbf16>
    %cst = arith.constant dense<0.000000e+00> : vector<32x384xf32>
    %8 = tpu.matmul %6, %7, %cst {dimension_numbers = #tpu.dot_dimension_numbers<[1], [0], [0], [1], [0, 0, 1, 1], [], []>} : vector<32x32xbf16>, vector<32x384xbf16>, vector<32x384xf32> -> vector<32x384xf32>
    %9 = vector.shape_cast %8 : vector<32x384xf32> to vector<2x16x384xf32>
    %10 = vector.extract_strided_slice %9 {offsets = [0, 0, 0], sizes = [2, 16, 128], strides = [1, 1, 1]} : vector<2x16x384xf32> to vector<2x16x128xf32>
    %11 = vector.extract_strided_slice %9 {offsets = [0, 0, 128], sizes = [2, 16, 128], strides = [1, 1, 1]} : vector<2x16x384xf32> to vector<2x16x128xf32>
    %12 = vector.extract_strided_slice %9 {offsets = [0, 0, 256], sizes = [2, 16, 128], strides = [1, 1, 1]} : vector<2x16x384xf32> to vector<2x16x128xf32>
    %c1_i32 = arith.constant 1 : i32
    %13 = tpu.dynamic_rotate %10 by %c1_i32 dim 1 : vector<2x16x128xf32>, i32 -> vector<2x16x128xf32>
    %14 = arith.addf %13, %11 : vector<2x16x128xf32>
    %c15_i32 = arith.constant 15 : i32
    %15 = tpu.dynamic_rotate %12 by %c15_i32 dim 1 : vector<2x16x128xf32>, i32 -> vector<2x16x128xf32>
    %16 = arith.addf %14, %15 : vector<2x16x128xf32>
    %c0_10 = arith.constant 0 : index
    %c0_11 = arith.constant 0 : index
    %c0_12 = arith.constant 0 : index
    %17 = vector.load %arg4[%c0_10, %c0_11, %c0_12] : memref<2x16x128xf32, #tpu.memory_space<vmem>>, vector<2x16x128xf32>
    %18 = arith.addf %17, %16 : vector<2x16x128xf32>
    %c0_13 = arith.constant 0 : index
    %c0_14 = arith.constant 0 : index
    %c0_15 = arith.constant 0 : index
    %19 = vector.load %arg6[%c0_13, %c0_14, %c0_15] : memref<2x16x128xf32, #tpu.memory_space<vmem>>, vector<2x16x128xf32>
    tpu.vector_store %arg6[%c0_13, %c0_14, %c0_15], %18 {strides = array<i32>} : memref<2x16x128xf32, #tpu.memory_space<vmem>>, vector<2x16x128xf32>,
    return
  }
  func.func @transform_0(%arg0: i32) -> (i32, i32, i32) {
    %c0_i32 = arith.constant 0 : i32
    %c0_i32_0 = arith.constant 0 : i32
    %c0_i32_1 = arith.constant 0 : i32
    return %arg0, %c0_i32, %c0_i32_0 : i32, i32, i32
  }
  func.func @transform_1(%arg0: i32) -> (i32, i32, i32) {
    %c0_i32 = arith.constant 0 : i32
    %c0_i32_0 = arith.constant 0 : i32
    %c0_i32_1 = arith.constant 0 : i32
    return %arg0, %c0_i32, %c0_i32_0 : i32, i32, i32
  }
  func.func @transform_2(%arg0: i32) -> (i32, i32, i32) {
    %c0_i32 = arith.constant 0 : i32
    %c0_i32_0 = arith.constant 0 : i32
    %c0_i32_1 = arith.constant 0 : i32
    return %arg0, %c0_i32, %c0_i32_0 : i32, i32, i32
  }
  func.func @transform_3(%arg0: i32) -> (i32, i32, i32) {
    %c0_i32 = arith.constant 0 : i32
    %c0_i32_0 = arith.constant 0 : i32
    %c0_i32_1 = arith.constant 0 : i32
    return %arg0, %c0_i32, %c0_i32_0 : i32, i32, i32
  }
  func.func @transform_4(%arg0: i32) -> (i32, i32) {
    %c0_i32 = arith.constant 0 : i32
    %c0_i32_0 = arith.constant 0 : i32
    %c0_i32_1 = arith.constant 0 : i32
    return %c0_i32, %c0_i32_0 : i32, i32
  }
  func.func @transform_5(%arg0: i32) -> (i32, i32, i32) {
    %c0_i32 = arith.constant 0 : i32
    %c0_i32_0 = arith.constant 0 : i32
    %c0_i32_1 = arith.constant 0 : i32
    return %arg0, %c0_i32, %c0_i32_0 : i32, i32, i32
  }
}

module attributes {stable_mosaic.version = 11 : i64} {
  func.func @_ln_proj_kernel(%arg0: i32, %arg1: memref<2x16x32xf32, #tpu.memory_space<vmem>>, %arg2: memref<1x32xf32, #tpu.memory_space<vmem>>, %arg3: memref<1x32xf32, #tpu.memory_space<vmem>>, %arg4: memref<32x128xbf16, #tpu.memory_space<vmem>>, %arg5: memref<1x128xf32, #tpu.memory_space<vmem>>, %arg6: memref<2x16x128xf32, #tpu.memory_space<vmem>>) attributes {dimension_semantics = [#tpu.dimension_semantics<parallel>], iteration_bounds = array<i64: 2>, scalar_prefetch = 0 : i64, scratch_operands = 0 : i64, tpu.core_type = #tpu.core_type<tc>, window_params = [{transform_indices = @transform_0, window_bounds = array<i64: 2, 16, 32>}, {pipeline_mode = #tpu.pipeline_mode<synchronous>, transform_indices = @transform_1, window_bounds = array<i64: 1, 32>}, {pipeline_mode = #tpu.pipeline_mode<synchronous>, transform_indices = @transform_2, window_bounds = array<i64: 1, 32>}, {pipeline_mode = #tpu.pipeline_mode<synchronous>, transform_indices = @transform_3, window_bounds = array<i64: 32, 128>}, {pipeline_mode = #tpu.pipeline_mode<synchronous>, transform_indices = @transform_4, window_bounds = array<i64: 1, 128>}, {transform_indices = @transform_5, window_bounds = array<i64: 2, 16, 128>}]} {
    %c0 = arith.constant 0 : index
    %c0_0 = arith.constant 0 : index
    %c0_1 = arith.constant 0 : index
    %0 = vector.load %arg1[%c0, %c0_0, %c0_1] : memref<2x16x32xf32, #tpu.memory_space<vmem>>, vector<2x16x32xf32>
    %c0_2 = arith.constant 0 : index
    %c0_3 = arith.constant 0 : index
    %1 = vector.load %arg2[%c0_2, %c0_3] : memref<1x32xf32, #tpu.memory_space<vmem>>, vector<1x32xf32>
    %c0_4 = arith.constant 0 : index
    %c0_5 = arith.constant 0 : index
    %2 = vector.load %arg3[%c0_4, %c0_5] : memref<1x32xf32, #tpu.memory_space<vmem>>, vector<1x32xf32>
    %cst = arith.constant dense<0.000000e+00> : vector<2x16xf32>
    %3 = vector.multi_reduction <add>, %0, %cst [2] : vector<2x16x32xf32> to vector<2x16xf32>
    %4 = vector.shape_cast %3 : vector<2x16xf32> to vector<2x16x1xf32>
    %cst_6 = arith.constant 3.200000e+01 : f32
    %5 = vector.broadcast %cst_6 : f32 to vector<2x16x1xf32>
    %6 = arith.divf %4, %5 : vector<2x16x1xf32>
    %7 = vector.broadcast %6 : vector<2x16x1xf32> to vector<2x16x32xf32>
    %8 = arith.subf %0, %7 : vector<2x16x32xf32>
    %9 = arith.mulf %8, %8 : vector<2x16x32xf32>
    %cst_7 = arith.constant dense<0.000000e+00> : vector<2x16xf32>
    %10 = vector.multi_reduction <add>, %9, %cst_7 [2] : vector<2x16x32xf32> to vector<2x16xf32>
    %11 = vector.shape_cast %10 : vector<2x16xf32> to vector<2x16x1xf32>
    %cst_8 = arith.constant 3.200000e+01 : f32
    %12 = vector.broadcast %cst_8 : f32 to vector<2x16x1xf32>
    %13 = arith.divf %11, %12 : vector<2x16x1xf32>
    %14 = vector.broadcast %6 : vector<2x16x1xf32> to vector<2x16x32xf32>
    %15 = arith.subf %0, %14 : vector<2x16x32xf32>
    %cst_9 = arith.constant 9.99999974E-6 : f32
    %16 = vector.broadcast %cst_9 : f32 to vector<2x16x1xf32>
    %17 = arith.addf %13, %16 : vector<2x16x1xf32>
    %18 = math.rsqrt %17 : vector<2x16x1xf32>
    %19 = vector.broadcast %18 : vector<2x16x1xf32> to vector<2x16x32xf32>
    %20 = arith.mulf %15, %19 : vector<2x16x32xf32>
    %21 = vector.shape_cast %1 : vector<1x32xf32> to vector<1x1x32xf32>
    %22 = vector.broadcast %21 : vector<1x1x32xf32> to vector<2x16x32xf32>
    %23 = arith.mulf %20, %22 : vector<2x16x32xf32>
    %24 = vector.shape_cast %2 : vector<1x32xf32> to vector<1x1x32xf32>
    %25 = vector.broadcast %24 : vector<1x1x32xf32> to vector<2x16x32xf32>
    %26 = arith.addf %23, %25 : vector<2x16x32xf32>
    %cst_10 = arith.constant dense<0.000000e+00> : vector<2x32xf32>
    %27 = vector.multi_reduction <add>, %26, %cst_10 [1] : vector<2x16x32xf32> to vector<2x32xf32>
    %28 = vector.shape_cast %27 : vector<2x32xf32> to vector<2x1x32xf32>
    %cst_11 = arith.constant 1.600000e+01 : f32
    %29 = vector.broadcast %cst_11 : f32 to vector<2x1x32xf32>
    %30 = arith.divf %28, %29 : vector<2x1x32xf32>
    %31 = vector.broadcast %30 : vector<2x1x32xf32> to vector<2x16x32xf32>
    %32 = arith.subf %26, %31 : vector<2x16x32xf32>
    %33 = vector.shape_cast %32 : vector<2x16x32xf32> to vector<32x32xf32>
    %34 = arith.truncf %33 : vector<32x32xf32> to vector<32x32xbf16>
    %c0_12 = arith.constant 0 : index
    %c0_13 = arith.constant 0 : index
    %35 = vector.load %arg4[%c0_12, %c0_13] : memref<32x128xbf16, #tpu.memory_space<vmem>>, vector<32x128xbf16>
    %cst_14 = arith.constant dense<0.000000e+00> : vector<32x128xf32>
    %36 = tpu.matmul %34, %35, %cst_14 {dimension_numbers = #tpu.dot_dimension_numbers<[1], [0], [0], [1], [0, 0, 1, 1], [], []>} : vector<32x32xbf16>, vector<32x128xbf16>, vector<32x128xf32> -> vector<32x128xf32>
    %c0_15 = arith.constant 0 : index
    %c0_16 = arith.constant 0 : index
    %37 = vector.load %arg5[%c0_15, %c0_16] : memref<1x128xf32, #tpu.memory_space<vmem>>, vector<1x128xf32>
    %38 = vector.broadcast %37 : vector<1x128xf32> to vector<32x128xf32>
    %39 = arith.addf %36, %38 : vector<32x128xf32>
    %40 = vector.shape_cast %39 : vector<32x128xf32> to vector<2x16x128xf32>
    %c0_17 = arith.constant 0 : index
    %c0_18 = arith.constant 0 : index
    %c0_19 = arith.constant 0 : index
    %41 = vector.load %arg6[%c0_17, %c0_18, %c0_19] : memref<2x16x128xf32, #tpu.memory_space<vmem>>, vector<2x16x128xf32>
    tpu.vector_store %arg6[%c0_17, %c0_18, %c0_19], %40 {strides = array<i32>} : memref<2x16x128xf32, #tpu.memory_space<vmem>>, vector<2x16x128xf32>,
    return
  }
  func.func @transform_0(%arg0: i32) -> (i32, i32, i32) {
    %c0_i32 = arith.constant 0 : i32
    %c0_i32_0 = arith.constant 0 : i32
    %c0_i32_1 = arith.constant 0 : i32
    return %arg0, %c0_i32, %c0_i32_0 : i32, i32, i32
  }
  func.func @transform_1(%arg0: i32) -> (i32, i32) {
    %c0_i32 = arith.constant 0 : i32
    %c0_i32_0 = arith.constant 0 : i32
    %c0_i32_1 = arith.constant 0 : i32
    return %c0_i32, %c0_i32_0 : i32, i32
  }
  func.func @transform_2(%arg0: i32) -> (i32, i32) {
    %c0_i32 = arith.constant 0 : i32
    %c0_i32_0 = arith.constant 0 : i32
    %c0_i32_1 = arith.constant 0 : i32
    return %c0_i32, %c0_i32_0 : i32, i32
  }
  func.func @transform_3(%arg0: i32) -> (i32, i32) {
    %c0_i32 = arith.constant 0 : i32
    %c0_i32_0 = arith.constant 0 : i32
    %c0_i32_1 = arith.constant 0 : i32
    return %c0_i32, %c0_i32_0 : i32, i32
  }
  func.func @transform_4(%arg0: i32) -> (i32, i32) {
    %c0_i32 = arith.constant 0 : i32
    %c0_i32_0 = arith.constant 0 : i32
    %c0_i32_1 = arith.constant 0 : i32
    return %c0_i32, %c0_i32_0 : i32, i32
  }
  func.func @transform_5(%arg0: i32) -> (i32, i32, i32) {
    %c0_i32 = arith.constant 0 : i32
    %c0_i32_0 = arith.constant 0 : i32
    %c0_i32_1 = arith.constant 0 : i32
    return %arg0, %c0_i32, %c0_i32_0 : i32, i32, i32
  }
}

</mosaic_0001>

<bundles_post_ra>
// kernel: autoformer_forward.18
= control target key start
LH: loop header
LB: loop body
LE: loop exit
PB: predicated region body
PF: predicated region fallthrough
CT: control target
= control target key end

     0   :  { %s345_s9 = smov 0   ;;  %s365_s0 = inlined_call_operand.vmem [shape: f32[4,16,16], index: 0, kind: input, shape index: {}]   ;;  %s366_s1 = inlined_call_operand.vmem [shape: bf16[16,32], index: 1, kind: input, shape index: {}]   ;;  %s367_s2 = inlined_call_operand.vmem [shape: f32[4,16,32], index: 2, kind: output, shape index: {}]  }
   0x1 LB: > { %s286_s10 = sadd.s32 4294967295, %s328_s9   ;;  %p290_p0 = scmp.ge.s32.totalorder %s328_s9, 1  ;;  %s328_s9 = sphi %s345_s9, %s12_s9  }
   0x2   : > { %p114_p1 = scmp.lt.s32.totalorder %s328_s9, 3 }
   0x4   : > { %p115_p2 = pnand %p290_p0, %p114_p1 }
   0x5   : > { %v321_v0 = vld [vmem:[%s366_s1] sm:$0xff] (!%p115_p2)   ;;  %s291_s13 = sshll.u32 (!%p115_p2), %s286_s10, 1  ;;  %vm167_vm0 = vcmask (!%p115_p2), 130048   ;;  %vm223_vm1 = vcmask (!%p115_p2), 261120  }
   0x6   : > { %118 = sbr.rel (%p115_p2) target bundleno = 236 (0xec), region = 28  ;;  %p139_p3 = scmp.lt.s32.totalorder (!%p115_p2), %s291_s13, 3  ;;  %307 = vmatprep.subr.bf16.mxu0 (!%p115_p2), %v321_v0 }
   0x7   : > { %308 = vmatpush3.bf16.msra.mxu0 (!%p115_p2), %v321_v0 }
   0xd   : > { %s369_s13 = smov (!%p139_p3, %s291_s13), 3 }
   0xe   : > { %s302_s14 = sshll.u32 %s369_s13, 4 }
   0xf   : > { %s143_s17 = scalar_lea.vmem %s365_s0, %s302_s14  ;;  %s150_s20 = scalar_lea.vmem %s367_s2, %s302_s14 }
  0x10   : > { %v153_v1 = vld [vmem:[%s143_s17] sm:$0xff]  ;;  %v154_v2 = vld [vmem:[%s143_s17 + $0x8] sm:$0xff]  ;;  %v155_v3 = vld [vmem:[%s143_s17 + $0x10] sm:$0xff] }
  0x11   : > { %v157_v4 = vpack.c.bf16 %v154_v2, %v153_v1  ;;  %v156_v5 = vld [vmem:[%s143_s17 + $0x18] sm:$0xff] }
  0x12   : > { %v158_v6 = vpack.c.bf16 %v156_v5, %v155_v3 }
  0x13   : > { %309 = vmatprep.mubr.msk.bf16.mxu0 %vm167_vm0, %v157_v4 }
  0x14   : > { %310 = vmatmul.mubr.msk.bf16.vlgmr.msra.gmra.mrb[0].mxu0 %vm167_vm0, %v158_v6 }
  0xe7   : > { %v311_v7 = vpop.f32.mrb[0].mxu0 }
  0xe8   : > { %v208_v8 = vpop.f32.mrb[1].mxu0  ;;  %226 = vst.msk [vmem:[%s150_s20 + $0x10] sm:$0xff] %vm223_vm1, %v311_v7 }
  0xe9   : > { %224 = vst.msk [vmem:[%s150_s20] sm:$0xff] %vm223_vm1, %v208_v8  ;;  %v312_v9 = vpop.f32.mrb[2].mxu0 }
  0xea   : > { %v211_v10 = vpop.f32.mrb[3].mxu0  ;;  %227 = vst.msk [vmem:[%s150_s20 + $0x18] sm:$0xff] %vm223_vm1, %v312_v9 }
  0xeb   : > { %225 = vst.msk [vmem:[%s150_s20 + $0x8] sm:$0xff] %vm223_vm1, %v211_v10 }
  0xec PF: > { %s12_s9 = sadd.s32 1, %s328_s9  }
  0xed   : > { %p9_p4 = scmp.ge.s32.totalorder %s12_s9, 4  }
  0xef   :  { %11 = sbr.rel (!%p9_p4) target bundleno = 1 (0x1), region = 58 }

// kernel: autoformer_forward.19
= control target key start
LH: loop header
LB: loop body
LE: loop exit
PB: predicated region body
PF: predicated region fallthrough
CT: control target
= control target key end

     0   :  { %s398_s12 = smov 0   ;;  %s424_s0 = inlined_call_operand.vmem [shape: f32[4,16,32], index: 0, kind: input, shape index: {}]   ;;  %s425_s1 = inlined_call_operand.vmem [shape: bf16[32,96], index: 1, kind: input, shape index: {}]   ;;  %s426_s2 = inlined_call_operand.vmem [shape: f32[1,96], index: 2, kind: input, shape index: {}]   ;;  %s427_s3 = inlined_call_operand.vmem [shape: f32[4,16,96], index: 3, kind: output, shape index: {}]  }
   0x1 LB: > { %s328_s13 = sadd.s32 4294967295, %s376_s12   ;;  %p332_p0 = scmp.ge.s32.totalorder %s376_s12, 1  ;;  %s376_s12 = sphi %s398_s12, %s13_s12  }
   0x2   : > { %p139_p1 = scmp.lt.s32.totalorder %s376_s12, 3 }
   0x4   : > { %p140_p2 = pnand %p332_p0, %p139_p1 }
   0x5   : > { %v368_v0 = vld [vmem:[%s425_s1] sm:$0xff] (!%p140_p2)   ;;  %s333_s16 = sshll.u32 (!%p140_p2), %s328_s13, 1  ;;  %v369_v1 = vld [vmem:[%s425_s1 + $0x8] sm:$0xff] (!%p140_p2)   ;;  %vm209_vm0 = vcmask (!%p140_p2), 261120   ;;  %vm265_vm1 = vcmask (!%p140_p2), 785408  }
   0x6   : > { %143 = sbr.rel (%p140_p2) target bundleno = 238 (0xee), region = 32  ;;  %p166_p3 = scmp.lt.s32.totalorder (!%p140_p2), %s333_s16, 3  ;;  %352 = vmatprep.subr.bf16.mxu0 (!%p140_p2), %v368_v0  ;;  %v339_v8 = vld [vmem:[%s426_s2] ss:$0 sm:$0xff] (!%p140_p2) }
   0x7   : > { %353 = vmatpush3.bf16.msra.mxu0 (!%p140_p2), %v368_v0 }
   0x8   : > { %354 = vmatprep.subr.bf16.mxu0 (!%p140_p2), %v369_v1 }
   0xb   : > { %355 = vmatpush3.bf16.msra.mxu0 (!%p140_p2), %v369_v1 }
   0xd   : > { %s429_s16 = smov (!%p166_p3, %s333_s16), 3 }
   0xe   : > { %s346_s19 = sshll.u32 %s429_s16, 4 }
   0xf   : > { %s170_s22 = scalar_lea.vmem %s424_s0, %s346_s19  ;;  %s177_s27 = scalar_lea.vmem %s427_s3, %s346_s19 }
  0x10   : > { %v180_v2 = vld [vmem:[%s170_s22] sm:$0xff]  ;;  %v181_v3 = vld [vmem:[%s170_s22 + $0x8] sm:$0xff]  ;;  %v182_v4 = vld [vmem:[%s170_s22 + $0x10] sm:$0xff] }
  0x11   : > { %v184_v5 = vpack.c.bf16 %v181_v3, %v180_v2  ;;  %v183_v6 = vld [vmem:[%s170_s22 + $0x18] sm:$0xff] }
  0x12   : > { %v185_v7 = vpack.c.bf16 %v183_v6, %v182_v4 }
  0x13   : > { %356 = vmatprep.mubr.msk.bf16.mxu0 %vm209_vm0, %v184_v5 }
  0x14   : > { %357 = vmatmul.mubr.msk.bf16.vlgmr.msra.gmra.mrb[0].mxu0 %vm209_vm0, %v185_v7 }
  0xe7   : > { %v358_v9 = vpop.f32.mrb[0].mxu0 }
  0xe8   : > { %v250_v10 = vpop.f32.mrb[1].mxu0  ;;  %v259_v13 = vadd.f32 %v358_v9, %v339_v8 }
  0xe9   : > { %v251_v11 = vadd.f32 %v339_v8, %v250_v10  ;;  %v359_v12 = vpop.f32.mrb[2].mxu0 }
  0xea   : > { %v253_v14 = vpop.f32.mrb[3].mxu0  ;;  %268 = vst.msk [vmem:[%s177_s27 + $0x10] sm:$0xff] %vm265_vm1, %v259_v13  ;;  %v262_v16 = vadd.f32 %v359_v12, %v339_v8 }
  0xeb   : > { %266 = vst.msk [vmem:[%s177_s27] sm:$0xff] %vm265_vm1, %v251_v11  ;;  %v254_v15 = vadd.f32 %v339_v8, %v253_v14 }
  0xec   : > { %269 = vst.msk [vmem:[%s177_s27 + $0x18] sm:$0xff] %vm265_vm1, %v262_v16 }
  0xed   : > { %267 = vst.msk [vmem:[%s177_s27 + $0x8] sm:$0xff] %vm265_vm1, %v254_v15 }
  0xee PF: > { %s13_s12 = sadd.s32 1, %s376_s12  }
  0xef   : > { %p10_p4 = scmp.ge.s32.totalorder %s13_s12, 4  }
  0xf1   :  { %12 = sbr.rel (!%p10_p4) target bundleno = 1 (0x1), region = 62 }

// kernel: reverse.9
= control target key start
LH: loop header
LB: loop body
LE: loop exit
PB: predicated region body
PF: predicated region fallthrough
CT: control target
= control target key end

     0   :  { %v2_v0 = vlaneseq  ;;  %s398_s0 = inlined_call_operand.vmem [shape: f32[4,4,8,7], index: 0, kind: input, shape index: {}]   ;;  %s399_s1 = inlined_call_operand.vmem [shape: f32[4,4,8,7], index: 1, kind: output, shape index: {}]  }
   0x1   :  { %v66_v2 = vld [vmem:[%s398_s0 + $0x10] sm:$0xff]  ;;  %v62_v3 = vld [vmem:[%s398_s0] sm:$0xff]  ;;  %v68_v4 = vld [vmem:[%s398_s0 + $0x18] sm:$0xff] }
   0x2   :  { %v3_v1 = vsub.s32 6, %v2_v0  ;;  %v64_v5 = vld [vmem:[%s398_s0 + $0x8] sm:$0xff]  ;;  %v70_v7 = vld [vmem:[%s398_s0 + $0x20] sm:$0xff]  ;;  %v76_v8 = vld [vmem:[%s398_s0 + $0x38] sm:$0xff] }
   0x3   :  { %v72_v6 = vld [vmem:[%s398_s0 + $0x28] sm:$0xff]  ;;  %v74_v9 = vld [vmem:[%s398_s0 + $0x30] sm:$0xff]  ;;  %v78_v11 = vld [vmem:[%s398_s0 + $0x40] sm:$0xff] }
   0x4   :  { %4 = vset.pattern.permute.xlu0 %v3_v1  ;;  %291 = vset.pattern.permute.xlu1 %v3_v1  ;;  %v80_v10 = vld [vmem:[%s398_s0 + $0x48] sm:$0xff]  ;;  %v84_v12 = vld [vmem:[%s398_s0 + $0x58] sm:$0xff]  ;;  %v82_v13 = vld [vmem:[%s398_s0 + $0x50] sm:$0xff] }
   0x5   :  { %110 = vperm.xlu1 %291, %v66_v2   ;;  %98 = vperm.xlu0 %4, %v62_v3   ;;  %v88_v14 = vld [vmem:[%s398_s0 + $0x68] sm:$0xff]  ;;  %v86_v15 = vld [vmem:[%s398_s0 + $0x60] sm:$0xff]  ;;  %v92_v16 = vld [vmem:[%s398_s0 + $0x78] sm:$0xff] }
   0x6   :  { %v90_v17 = vld [vmem:[%s398_s0 + $0x70] sm:$0xff] }
   0x9   :  { %116 = vperm.xlu1 %291, %v68_v4   ;;  %104 = vperm.xlu0 %4, %v64_v5  }
   0xd   :  { %128 = vperm.xlu1 %291, %v72_v6   ;;  %122 = vperm.xlu0 %4, %v70_v7  }
  0x11   :  { %140 = vperm.xlu1 %291, %v76_v8   ;;  %134 = vperm.xlu0 %4, %v74_v9  }
  0x15   :  { %152 = vperm.xlu1 %291, %v80_v10   ;;  %146 = vperm.xlu0 %4, %v78_v11  }
  0x19   :  { %164 = vperm.xlu1 %291, %v84_v12   ;;  %158 = vperm.xlu0 %4, %v82_v13  }
  0x1d   :  { %176 = vperm.xlu1 %291, %v88_v14   ;;  %170 = vperm.xlu0 %4, %v86_v15  }
  0x21   :  { %188 = vperm.xlu1 %291, %v92_v16   ;;  %182 = vperm.xlu0 %4, %v90_v17  }
  0x84   :  { %v111_v18 = vpop.permute.xlu1 %110  ;;  %v99_v19 = vpop.permute.xlu0 %98 }
  0x85   :  { %253 = vst [vmem:[%s399_s1 + $0x10] sm:$0xff] %v111_v18  ;;  %249 = vst [vmem:[%s399_s1] sm:$0xff] %v99_v19 }
  0x88   :  { %v117_v20 = vpop.permute.xlu1 %116  ;;  %v105_v21 = vpop.permute.xlu0 %104 }
  0x89   :  { %255 = vst [vmem:[%s399_s1 + $0x18] sm:$0xff] %v117_v20  ;;  %251 = vst [vmem:[%s399_s1 + $0x8] sm:$0xff] %v105_v21 }
  0x8c   :  { %v129_v22 = vpop.permute.xlu1 %128  ;;  %v123_v23 = vpop.permute.xlu0 %122 }
  0x8d   :  { %259 = vst [vmem:[%s399_s1 + $0x28] sm:$0xff] %v129_v22  ;;  %257 = vst [vmem:[%s399_s1 + $0x20] sm:$0xff] %v123_v23 }
  0x90   :  { %v141_v24 = vpop.permute.xlu1 %140  ;;  %v135_v25 = vpop.permute.xlu0 %134 }
  0x91   :  { %263 = vst [vmem:[%s399_s1 + $0x38] sm:$0xff] %v141_v24  ;;  %261 = vst [vmem:[%s399_s1 + $0x30] sm:$0xff] %v135_v25 }
  0x94   :  { %v153_v26 = vpop.permute.xlu1 %152  ;;  %v147_v27 = vpop.permute.xlu0 %146 }
  0x95   :  { %267 = vst [vmem:[%s399_s1 + $0x48] sm:$0xff] %v153_v26  ;;  %265 = vst [vmem:[%s399_s1 + $0x40] sm:$0xff] %v147_v27 }
  0x98   :  { %v165_v28 = vpop.permute.xlu1 %164  ;;  %v159_v29 = vpop.permute.xlu0 %158 }
  0x99   :  { %271 = vst [vmem:[%s399_s1 + $0x58] sm:$0xff] %v165_v28  ;;  %269 = vst [vmem:[%s399_s1 + $0x50] sm:$0xff] %v159_v29 }
  0x9c   :  { %v177_v30 = vpop.permute.xlu1 %176  ;;  %v171_v31 = vpop.permute.xlu0 %170 }
  0x9d   :  { %275 = vst [vmem:[%s399_s1 + $0x68] sm:$0xff] %v177_v30  ;;  %273 = vst [vmem:[%s399_s1 + $0x60] sm:$0xff] %v171_v31 }
  0xa0   :  { %v189_v32 = vpop.permute.xlu1 %188  ;;  %v183_v33 = vpop.permute.xlu0 %182 }
  0xa1   :  { %279 = vst [vmem:[%s399_s1 + $0x78] sm:$0xff] %v189_v32  ;;  %277 = vst [vmem:[%s399_s1 + $0x70] sm:$0xff] %v183_v33 }

// kernel: autoformer_forward.14
= control target key start
LH: loop header
LB: loop body
LE: loop exit
PB: predicated region body
PF: predicated region fallthrough
CT: control target
= control target key end

     0   :  { %s491_s12 = smov 0   ;;  %s522_s0 = inlined_call_operand.vmem [shape: f32[4,16,4], index: 0, kind: input, shape index: {}]   ;;  %s523_s1 = inlined_call_operand.vmem [shape: bf16[16,16], index: 1, kind: input, shape index: {}]   ;;  %s524_s2 = inlined_call_operand.vmem [shape: f32[4,16,4], index: 2, kind: output, shape index: {0}]   ;;  %s525_s3 = inlined_call_operand.vmem [shape: f32[4,16,4], index: 3, kind: output, shape index: {1}]  }
   0x1 LB: > { %s408_s13 = sadd.s32 4294967295, %s467_s12   ;;  %p412_p0 = scmp.ge.s32.totalorder %s467_s12, 1  ;;  %s467_s12 = sphi %s491_s12, %s14_s12  }
   0x2   : > { %p142_p1 = scmp.lt.s32.totalorder %s467_s12, 3 }
   0x4   : > { %p143_p2 = pnand %p412_p0, %p142_p1 }
   0x5   : > { %s413_s14 = sshll.u32 (!%p143_p2), %s408_s13, 1  ;;  %v469_v0 = vmov (!%p143_p2), 0.0   ;;  %vm470_vm0 = vmmov (!%p143_p2), 0   ;;  %v460_v7 = vld [vmem:[%s523_s1] sm:$0xff] (!%p143_p2)   ;;  %vm208_vm1 = vcmask (!%p143_p2), 130048   ;;  %vm257_vm2 = vcmask (!%p143_p2), 31744  }
   0x6   : > { %146 = sbr.rel (%p143_p2) target bundleno = 242 (0xf2), region = 28  ;;  %438 = vmatprep.subr.bf16.mxu0 (!%p143_p2), %v469_v0  ;;  %444 = vmatprep.subr.bf16.mxu1 (!%p143_p2), %v469_v0  ;;  %p175_p3 = scmp.lt.s32.totalorder (!%p143_p2), %s413_s14, 3 }
   0x7   : > { %440 = vmatprep.mubr.msk.bf16.mxu0 (!%p143_p2), %vm470_vm0, %v469_v0  ;;  %446 = vmatprep.mubr.msk.bf16.mxu1 (!%p143_p2), %vm470_vm0, %v469_v0 }
   0xd   : > { %s527_s14 = smov (!%p175_p3, %s413_s14), 3 }
   0xe   : > { %s431_s15 = sshll.u32 %s527_s14, 4 }
   0xf   : > { %s179_s18 = scalar_lea.vmem %s522_s0, %s431_s15  ;;  %s193_s23 = scalar_lea.vmem %s525_s3, %s431_s15 }
  0x10   : > { %v196_v1 = vld [vmem:[%s179_s18] sm:$0xff]  ;;  %v197_v2 = vld [vmem:[%s179_s18 + $0x8] sm:$0xff]  ;;  %v198_v3 = vld [vmem:[%s179_s18 + $0x10] sm:$0xff]  ;;  %s186_s26 = scalar_lea.vmem %s524_s2, %s431_s15 }
  0x11   : > { %v202_v4 = vpack.c.bf16 %v197_v2, %v196_v1  ;;  %v199_v5 = vld [vmem:[%s179_s18 + $0x18] sm:$0xff] }
  0x12   : > { %v262_v6 = vpack.c.bf16 %v199_v5, %v198_v3 }
  0x13   : > { %439 = vmatpush3.bf16.msra.mxu0 %v202_v4 }
  0x14   : > { %445 = vmatpush3.bf16.msra.mxu1 %v262_v6 }
  0x16   : > { %441 = vmatmul.mubr.msk.bf16.vlgmr.msra.gmra.mrb[0].mxu0 %vm208_vm1, %v460_v7 }
  0x17   : > { %447 = vmatmul.mubr.msk.bf16.vlgmr.msra.gmra.mrb[0].mxu1 %vm208_vm1, %v460_v7 }
  0xe9   : > { %v246_v8 = vpop.f32.mrb[0].mxu0 }
  0xea   : > { %v253_v9 = vmul.f32 0.2, %v246_v8  ;;  %v297_v10 = vpop.f32.mrb[0].mxu1  ;;  %v442_v11 = vpop.f32.mrb[1].mxu0 }
  0xeb   : > { %v304_v12 = vmul.f32 0.2, %v297_v10  ;;  %v448_v13 = vpop.f32.mrb[1].mxu1  ;;  %v249_v14 = vpop.f32.mrb[2].mxu0 }
  0xec   : > { %v255_v15 = vsub.f32 %v196_v1, %v253_v9  ;;  %260 = vst.msk [vmem:[%s193_s23] sm:$0xff] %vm257_vm2, %v253_v9  ;;  %v254_v16 = vmul.f32 0.2, %v249_v14  ;;  %v300_v17 = vpop.f32.mrb[2].mxu1  ;;  %v443_v18 = vpop.f32.mrb[3].mxu0 }
  0xed   : > { %v306_v19 = vsub.f32 %v198_v3, %v304_v12  ;;  %427 = vst.msk [vmem:[%s193_s23 + $0x10] sm:$0xff] %vm257_vm2, %v304_v12  ;;  %v305_v20 = vmul.f32 0.2, %v300_v17  ;;  %v449_v21 = vpop.f32.mrb[3].mxu1 }
  0xee   : > { %258 = vst.msk [vmem:[%s186_s26] sm:$0xff] %vm257_vm2, %v255_v15  ;;  %v256_v22 = vsub.f32 %v197_v2, %v254_v16  ;;  %261 = vst.msk [vmem:[%s193_s23 + $0x8] sm:$0xff] %vm257_vm2, %v254_v16 }
  0xef   : > { %425 = vst.msk [vmem:[%s186_s26 + $0x10] sm:$0xff] %vm257_vm2, %v306_v19  ;;  %v307_v23 = vsub.f32 %v199_v5, %v305_v20  ;;  %428 = vst.msk [vmem:[%s193_s23 + $0x18] sm:$0xff] %vm257_vm2, %v305_v20 }
  0xf0   : > { %259 = vst.msk [vmem:[%s186_s26 + $0x8] sm:$0xff] %vm257_vm2, %v256_v22 }
  0xf1   : > { %426 = vst.msk [vmem:[%s186_s26 + $0x18] sm:$0xff] %vm257_vm2, %v307_v23 }
  0xf2 PF: > { %s14_s12 = sadd.s32 1, %s467_s12  }
  0xf3   : > { %p11_p4 = scmp.ge.s32.totalorder %s14_s12, 4  }
  0xf5   :  { %13 = sbr.rel (!%p11_p4) target bundleno = 1 (0x1), region = 72 }

// kernel: autoformer_forward.20
= control target key start
LH: loop header
LB: loop body
LE: loop exit
PB: predicated region body
PF: predicated region fallthrough
CT: control target
= control target key end

     0   :  { %s640_s18 = smov 0   ;;  %s685_s0 = inlined_call_operand.vmem [shape: f32[4,16,32], index: 0, kind: input, shape index: {}]   ;;  %s686_s1 = inlined_call_operand.vmem [shape: f32[4,16,32], index: 1, kind: input, shape index: {}]   ;;  %s687_s2 = inlined_call_operand.vmem [shape: bf16[32,32], index: 2, kind: input, shape index: {}]   ;;  %s688_s3 = inlined_call_operand.vmem [shape: f32[1,32], index: 3, kind: input, shape index: {}]   ;;  %s689_s4 = inlined_call_operand.vmem [shape: bf16[16,16], index: 4, kind: input, shape index: {}]   ;;  %s690_s5 = inlined_call_operand.vmem [shape: f32[4,16,32], index: 5, kind: output, shape index: {}]  }
   0x1 LB: > { %s530_s19 = sadd.s32 4294967295, %s606_s18   ;;  %p534_p0 = scmp.ge.s32.totalorder %s606_s18, 1  ;;  %s606_s18 = sphi %s640_s18, %s15_s18  }
   0x2   : > { %p201_p1 = scmp.lt.s32.totalorder %s606_s18, 3 }
   0x4   : > { %p202_p2 = pnand %p534_p0, %p201_p1 }
   0x5   : > { %v597_v0 = vld [vmem:[%s687_s2] sm:$0xff] (!%p202_p2)   ;;  %s535_s22 = sshll.u32 (!%p202_p2), %s530_s19, 1  ;;  %v598_v1 = vld [vmem:[%s687_s2 + $0x8] sm:$0xff] (!%p202_p2)   ;;  %vm288_vm0 = vcmask (!%p202_p2), 261120   ;;  %v608_v8 = vmov (!%p202_p2), 0.0   ;;  %vm609_vm1 = vmmov (!%p202_p2), 0  }
   0x6   : > { %205 = sbr.rel (%p202_p2) target bundleno = 471 (0x1d7), region = 40  ;;  %p238_p3 = scmp.lt.s32.totalorder (!%p202_p2), %s535_s22, 3  ;;  %567 = vmatprep.subr.bf16.mxu0 (!%p202_p2), %v597_v0  ;;  %575 = vmatprep.subr.bf16.mxu1 (!%p202_p2), %v608_v8  ;;  %v544_v9 = vld [vmem:[%s688_s3] ss:$0 sm:$0xff] (!%p202_p2)  ;;  %vm360_vm2 = vcmask (!%p202_p2), 130048  }
   0x7   : > { %568 = vmatpush3.bf16.msra.mxu0 (!%p202_p2), %v597_v0  ;;  %577 = vmatprep.mubr.msk.bf16.mxu1 (!%p202_p2), %vm609_vm1, %v608_v8  ;;  %v599_v26 = vld [vmem:[%s689_s4] sm:$0xff] (!%p202_p2)  }
   0x8   : > { %569 = vmatprep.subr.bf16.mxu0 (!%p202_p2), %v598_v1 }
   0xb   : > { %570 = vmatpush3.bf16.msra.mxu0 (!%p202_p2), %v598_v1 }
   0xd   : > { %s692_s22 = smov (!%p238_p3, %s535_s22), 3 }
   0xe   : > { %s654_s25 = sshll.u32 %s692_s22, 4 }
   0xf   : > { %s242_s28 = scalar_lea.vmem %s685_s0, %s654_s25  ;;  %s249_s8 = scalar_lea.vmem %s686_s1, %s654_s25 }
  0x10   : > { %v259_v2 = vld [vmem:[%s242_s28] sm:$0xff]  ;;  %v260_v3 = vld [vmem:[%s242_s28 + $0x8] sm:$0xff]  ;;  %v261_v4 = vld [vmem:[%s242_s28 + $0x10] sm:$0xff]  ;;  %s256_s13 = scalar_lea.vmem %s690_s5, %s654_s25 }
  0x11   : > { %v263_v5 = vpack.c.bf16 %v260_v3, %v259_v2  ;;  %v262_v6 = vld [vmem:[%s242_s28 + $0x18] sm:$0xff]  ;;  %v344_v14 = vld [vmem:[%s249_s8] sm:$0xff]  ;;  %v345_v16 = vld [vmem:[%s249_s8 + $0x8] sm:$0xff] }
  0x12   : > { %v264_v7 = vpack.c.bf16 %v262_v6, %v261_v4  ;;  %v347_v19 = vld [vmem:[%s249_s8 + $0x18] sm:$0xff]  ;;  %v346_v23 = vld [vmem:[%s249_s8 + $0x10] sm:$0xff] }
  0x13   : > { %571 = vmatprep.mubr.msk.bf16.mxu0 %vm288_vm0, %v263_v5 }
  0x14   : > { %572 = vmatmul.mubr.msk.bf16.vlgmr.msra.gmra.mrb[0].mxu0 %vm288_vm0, %v264_v7 }
  0xe7   : > { %v573_v10 = vpop.f32.mrb[0].mxu0 }
  0xe8   : > { %v329_v11 = vpop.f32.mrb[1].mxu0  ;;  %v338_v20 = vadd.f32 %v573_v10, %v544_v9 }
  0xe9   : > { %v330_v12 = vadd.f32 %v544_v9, %v329_v11  ;;  %v574_v13 = vpop.f32.mrb[2].mxu0 }
  0xea   : > { %v332_v15 = vpop.f32.mrb[3].mxu0  ;;  %v341_v17 = vadd.f32 %v574_v13, %v544_v9  ;;  %v350_v27 = vadd.f32 %v346_v23, %v338_v20 }
  0xeb   : > { %v333_v18 = vadd.f32 %v544_v9, %v332_v15  ;;  %v348_v21 = vadd.f32 %v344_v14, %v330_v12 }
  0xec   : > { %v351_v24 = vadd.f32 %v347_v19, %v341_v17 }
  0xed   : > { %v349_v22 = vadd.f32 %v345_v16, %v333_v18 }
  0xee   : > { %v411_v28 = vpack.c.bf16 %v351_v24, %v350_v27 }
  0xef   : > { %v354_v25 = vpack.c.bf16 %v349_v22, %v348_v21 }
  0xf1   : > { %576 = vmatpush3.bf16.msra.mxu1 %v354_v25 }
  0xf2   : > { %581 = vmatprep.subr.bf16.mxu1 %v608_v8 }
  0xf4   : > { %578 = vmatmul.mubr.msk.bf16.vlgmr.msra.gmra.mrb[0].mxu1 %vm360_vm2, %v599_v26 }
  0xf5   : > { %582 = vmatpush3.bf16.msra.mxu1 %v411_v28  ;;  %583 = vmatprep.mubr.msk.bf16.mxu1 %vm609_vm1, %v608_v8 }
  0xfc   : > { %584 = vmatmul.mubr.msk.bf16.vlgmr.msra.gmra.mrb[4].mxu1 %vm360_vm2, %v599_v26 }
 0x1c7   : > { %v398_v29 = vpop.f32.mrb[0].mxu1 }
 0x1c8   : > { %v405_v30 = vmul.f32 0.2, %v398_v29  ;;  %v579_v31 = vpop.f32.mrb[1].mxu1 }
 0x1c9   : > { %v401_v32 = vpop.f32.mrb[2].mxu1 }
 0x1ca   : > { %v407_v33 = vsub.f32 %v348_v21, %v405_v30  ;;  %v406_v34 = vmul.f32 0.2, %v401_v32  ;;  %v580_v35 = vpop.f32.mrb[3].mxu1 }
 0x1cc   : > { %409 = vst.msk [vmem:[%s256_s13] sm:$0xff] %vm288_vm0, %v407_v33  ;;  %v408_v36 = vsub.f32 %v349_v22, %v406_v34 }
 0x1ce   : > { %410 = vst.msk [vmem:[%s256_s13 + $0x8] sm:$0xff] %vm288_vm0, %v408_v36 }
 0x1cf   : > { %v446_v37 = vpop.f32.mrb[4].mxu1 }
 0x1d0   : > { %v453_v38 = vmul.f32 0.2, %v446_v37  ;;  %v585_v39 = vpop.f32.mrb[5].mxu1 }
 0x1d1   : > { %v449_v40 = vpop.f32.mrb[6].mxu1 }
 0x1d2   : > { %v455_v41 = vsub.f32 %v350_v27, %v453_v38  ;;  %v454_v42 = vmul.f32 0.2, %v449_v40  ;;  %v586_v43 = vpop.f32.mrb[7].mxu1 }
 0x1d4   : > { %552 = vst.msk [vmem:[%s256_s13 + $0x10] sm:$0xff] %vm288_vm0, %v455_v41  ;;  %v456_v44 = vsub.f32 %v351_v24, %v454_v42 }
 0x1d6   : > { %553 = vst.msk [vmem:[%s256_s13 + $0x18] sm:$0xff] %vm288_vm0, %v456_v44 }
 0x1d7 PF: > { %s15_s18 = sadd.s32 1, %s606_s18  }
 0x1d8   : > { %p12_p4 = scmp.ge.s32.totalorder %s15_s18, 4  }
 0x1da   :  { %14 = sbr.rel (!%p12_p4) target bundleno = 1 (0x1), region = 74 }

// kernel: autoformer_forward.21
= control target key start
LH: loop header
LB: loop body
LE: loop exit
PB: predicated region body
PF: predicated region fallthrough
CT: control target
= control target key end

     0   :  { %s677_s15 = smov 0   ;;  %s730_s0 = inlined_call_operand.vmem [shape: f32[4,16,32], index: 0, kind: input, shape index: {}]   ;;  %s731_s1 = inlined_call_operand.vmem [shape: bf16[32,64], index: 1, kind: input, shape index: {}]   ;;  %s732_s2 = inlined_call_operand.vmem [shape: bf16[64,32], index: 2, kind: input, shape index: {}]   ;;  %s733_s3 = inlined_call_operand.vmem [shape: bf16[16,16], index: 3, kind: input, shape index: {}]   ;;  %s734_s4 = inlined_call_operand.vmem [shape: f32[4,16,32], index: 4, kind: output, shape index: {}]  }
   0x1 LB: > { %s549_s16 = sadd.s32 4294967295, %s648_s15   ;;  %p553_p0 = scmp.ge.s32.totalorder %s648_s15, 1  ;;  %s648_s15 = sphi %s677_s15, %s14_s15  }
   0x2   : > { %p164_p1 = scmp.lt.s32.totalorder %s648_s15, 3 }
   0x4   : > { %p165_p2 = pnand %p553_p0, %p164_p1 }
   0x5   : > { %v635_v0 = vld [vmem:[%s731_s1] sm:$0xff] (!%p165_p2)   ;;  %s554_s19 = sshll.u32 (!%p165_p2), %s549_s16, 1  ;;  %v636_v1 = vld [vmem:[%s731_s1 + $0x8] sm:$0xff] (!%p165_p2)   ;;  %vm229_vm0 = vcmask (!%p165_p2), 261120   ;;  %v639_v10 = vld [vmem:[%s732_s2 + $0x10] sm:$0xff] (!%p165_p2)   ;;  %vm323_vm1 = vcmask (!%p165_p2), 523264  }
   0x6   : > { %168 = sbr.rel (%p165_p2) target bundleno = 689 (0x2b1), region = 36  ;;  %p193_p3 = scmp.lt.s32.totalorder (!%p165_p2), %s554_s19, 3  ;;  %593 = vmatprep.subr.bf16.mxu0 (!%p165_p2), %v635_v0  ;;  %v637_v2 = vld [vmem:[%s732_s2] sm:$0xff] (!%p165_p2)   ;;  %v638_v3 = vld [vmem:[%s732_s2 + $0x8] sm:$0xff] (!%p165_p2)   ;;  %v640_v11 = vld [vmem:[%s732_s2 + $0x18] sm:$0xff] (!%p165_p2)   ;;  %v650_v22 = vmov (!%p165_p2), 0.0  }
   0x7   : > { %594 = vmatpush3.bf16.msra.mxu0 (!%p165_p2), %v635_v0  ;;  %601 = vmatprep.subr.bf16.mxu1 (!%p165_p2), %v637_v2  ;;  %vm651_vm2 = vmmov (!%p165_p2), 0   ;;  %v641_v31 = vld [vmem:[%s733_s3] sm:$0xff] (!%p165_p2)   ;;  %vm391_vm3 = vcmask (!%p165_p2), 130048  }
   0x8   : > { %595 = vmatprep.subr.bf16.mxu0 (!%p165_p2), %v636_v1  ;;  %602 = vmatpush3.bf16.msra.mxu1 (!%p165_p2), %v637_v2 }
   0x9   : > { %603 = vmatprep.subr.bf16.mxu1 (!%p165_p2), %v638_v3 }
   0xb   : > { %596 = vmatpush3.bf16.msra.mxu0 (!%p165_p2), %v636_v1 }
   0xc   : > { %604 = vmatpush3.bf16.msra.mxu1 (!%p165_p2), %v638_v3  ;;  %613 = vmatprep.subr.bf16.mxu0 (!%p165_p2), %v650_v22 }
   0xd   : > { %s736_s19 = smov (!%p193_p3, %s554_s19), 3  ;;  %605 = vmatprep.subr.bf16.mxu1 %v639_v10 }
   0xe   : > { %s577_s26 = sshll.u32 %s736_s19, 4 }
   0xf   : > { %s197_s29 = scalar_lea.vmem %s730_s0, %s577_s26  ;;  %s204_s12 = scalar_lea.vmem %s734_s4, %s577_s26 }
  0x10   : > { %v207_v4 = vld [vmem:[%s197_s29] sm:$0xff]  ;;  %v208_v5 = vld [vmem:[%s197_s29 + $0x8] sm:$0xff]  ;;  %v209_v6 = vld [vmem:[%s197_s29 + $0x10] sm:$0xff]  ;;  %606 = vmatpush3.bf16.msra.mxu1 %v639_v10 }
  0x11   : > { %v211_v7 = vpack.c.bf16 %v208_v5, %v207_v4  ;;  %v210_v8 = vld [vmem:[%s197_s29 + $0x18] sm:$0xff]  ;;  %607 = vmatprep.subr.bf16.mxu1 %v640_v11 }
  0x12   : > { %v212_v9 = vpack.c.bf16 %v210_v8, %v209_v6 }
  0x13   : > { %597 = vmatprep.mubr.msk.bf16.mxu0 %vm229_vm0, %v211_v7 }
  0x14   : > { %598 = vmatmul.mubr.msk.bf16.vlgmr.msra.gmra.mrb[0].mxu0 %vm229_vm0, %v212_v9  ;;  %608 = vmatpush3.bf16.msra.mxu1 %v640_v11 }
  0x15   : > { %615 = vmatprep.mubr.msk.bf16.mxu0 %vm651_vm2, %v650_v22 }
  0xe7   : > { %v599_v12 = vpop.f32.mrb[0].mxu0 }
  0xe8   : > { %v270_v13 = vpop.f32.mrb[1].mxu0  ;;  %v287_v15 = vmax.f32 %v599_v12, 0.0 }
  0xe9   : > { %v600_v14 = vpop.f32.mrb[2].mxu0  ;;  %v285_v18 = vmax.f32 %v270_v13, 0.0 }
  0xea   : > { %v288_v16 = vmax.f32 %v600_v14, 0.0  ;;  %v273_v17 = vpop.f32.mrb[3].mxu0 }
  0xeb   : > { %v286_v19 = vmax.f32 %v273_v17, 0.0 }
  0xec   : > { %v290_v20 = vpack.c.bf16 %v288_v16, %v287_v15 }
  0xed   : > { %v289_v21 = vpack.c.bf16 %v286_v19, %v285_v18 }
  0xef   : > { %609 = vmatprep.mubr.msk.bf16.mxu1 %vm323_vm1, %v289_v21 }
  0xf0   : > { %610 = vmatmul.mubr.msk.bf16.vlgmr.msra.gmra.mrb[0].mxu1 %vm323_vm1, %v290_v20 }
 0x1c3   : > { %v611_v23 = vpop.f32.mrb[0].mxu1 }
 0x1c4   : > { %v364_v24 = vpop.f32.mrb[1].mxu1  ;;  %v381_v32 = vadd.f32 %v611_v23, %v209_v6 }
 0x1c5   : > { %v612_v25 = vpop.f32.mrb[2].mxu1  ;;  %v379_v27 = vadd.f32 %v364_v24, %v207_v4 }
 0x1c6   : > { %v367_v26 = vpop.f32.mrb[3].mxu1  ;;  %v382_v29 = vadd.f32 %v612_v25, %v210_v8 }
 0x1c7   : > { %v380_v28 = vadd.f32 %v367_v26, %v208_v5 }
 0x1c8   : > { %v442_v33 = vpack.c.bf16 %v382_v29, %v381_v32 }
 0x1c9   : > { %v385_v30 = vpack.c.bf16 %v380_v28, %v379_v27 }
 0x1cb   : > { %614 = vmatpush3.bf16.msra.mxu0 %v385_v30 }
 0x1cc   : > { %619 = vmatprep.subr.bf16.mxu0 %v650_v22 }
 0x1ce   : > { %616 = vmatmul.mubr.msk.bf16.vlgmr.msra.gmra.mrb[4].mxu0 %vm391_vm3, %v641_v31 }
 0x1cf   : > { %620 = vmatpush3.bf16.msra.mxu0 %v442_v33  ;;  %621 = vmatprep.mubr.msk.bf16.mxu0 %vm651_vm2, %v650_v22 }
 0x1d6   : > { %622 = vmatmul.mubr.msk.bf16.vlgmr.msra.gmra.mrb[8].mxu0 %vm391_vm3, %v641_v31 }
 0x2a1   : > { %v429_v34 = vpop.f32.mrb[4].mxu0 }
 0x2a2   : > { %v436_v35 = vmul.f32 0.2, %v429_v34  ;;  %v617_v36 = vpop.f32.mrb[5].mxu0 }
 0x2a3   : > { %v432_v37 = vpop.f32.mrb[6].mxu0 }
 0x2a4   : > { %v438_v38 = vsub.f32 %v379_v27, %v436_v35  ;;  %v437_v39 = vmul.f32 0.2, %v432_v37  ;;  %v618_v40 = vpop.f32.mrb[7].mxu0 }
 0x2a6   : > { %440 = vst.msk [vmem:[%s204_s12] sm:$0xff] %vm229_vm0, %v438_v38  ;;  %v439_v41 = vsub.f32 %v380_v28, %v437_v39 }
 0x2a8   : > { %441 = vst.msk [vmem:[%s204_s12 + $0x8] sm:$0xff] %vm229_vm0, %v439_v41 }
 0x2a9   : > { %v477_v42 = vpop.f32.mrb[8].mxu0 }
 0x2aa   : > { %v484_v43 = vmul.f32 0.2, %v477_v42  ;;  %v623_v44 = vpop.f32.mrb[9].mxu0 }
 0x2ab   : > { %v480_v45 = vpop.f32.mrb[10].mxu0 }
 0x2ac   : > { %v486_v46 = vsub.f32 %v381_v32, %v484_v43  ;;  %v485_v47 = vmul.f32 0.2, %v480_v45  ;;  %v624_v48 = vpop.f32.mrb[11].mxu0 }
 0x2ae   : > { %573 = vst.msk [vmem:[%s204_s12 + $0x10] sm:$0xff] %vm229_vm0, %v486_v46  ;;  %v487_v49 = vsub.f32 %v382_v29, %v485_v47 }
 0x2b0   : > { %574 = vst.msk [vmem:[%s204_s12 + $0x18] sm:$0xff] %vm229_vm0, %v487_v49 }
 0x2b1 PF: > { %s14_s15 = sadd.s32 1, %s648_s15  }
 0x2b2   : > { %p11_p4 = scmp.ge.s32.totalorder %s14_s15, 4  }
 0x2b4   :  { %13 = sbr.rel (!%p11_p4) target bundleno = 1 (0x1), region = 67 }

// kernel: autoformer_forward.22
= control target key start
LH: loop header
LB: loop body
LE: loop exit
PB: predicated region body
PF: predicated region fallthrough
CT: control target
= control target key end

     0   :  { %s407_s12 = smov 0   ;;  %s453_s0 = inlined_call_operand.vmem [shape: f32[4,16,32], index: 0, kind: input, shape index: {}]   ;;  %s454_s1 = inlined_call_operand.vmem [shape: f32[1,32], index: 1, kind: input, shape index: {}]   ;;  %s455_s2 = inlined_call_operand.vmem [shape: f32[1,32], index: 2, kind: input, shape index: {}]   ;;  %s456_s3 = inlined_call_operand.vmem [shape: f32[4,16,32], index: 3, kind: output, shape index: {}]  }
   0x1 LB: > { %s346_s13 = sadd.s32 4294967295, %s385_s12   ;;  %p350_p0 = scmp.ge.s32.totalorder %s385_s12, 1  ;;  %s385_s12 = sphi %s407_s12, %s13_s12  }
   0x2   : > { %p139_p1 = scmp.lt.s32.totalorder %s385_s12, 3 }
   0x4   : > { %p140_p2 = pnand %p350_p0, %p139_p1 }
   0x5   : > { %s351_s14 = sshll.u32 (!%p140_p2), %s346_s13, 1  ;;  %vm185_vm0 = vcmask (!%p140_p2), 261120   ;;  %v357_v41 = vld [vmem:[%s454_s1] ss:$0 sm:$0xff] (!%p140_p2) }
   0x6   : > { %143 = sbr.rel (%p140_p2) target bundleno = 358 (0x166), region = 32  ;;  %p166_p3 = scmp.lt.s32.totalorder (!%p140_p2), %s351_s14, 3  ;;  %v358_v45 = vld [vmem:[%s455_s2] ss:$0 sm:$0xff] (!%p140_p2) }
   0xd   : > { %s458_s14 = smov (!%p166_p3, %s351_s14), 3 }
   0xe   : > { %s361_s15 = sshll.u32 %s458_s14, 4 }
   0xf   : > { %s170_s18 = scalar_lea.vmem %s453_s0, %s361_s15  ;;  %s177_s25 = scalar_lea.vmem %s456_s3, %s361_s15 }
  0x10   : > { %v179_v0 = vld [vmem:[%s170_s18] sm:$0xff]  ;;  %v181_v1 = vld [vmem:[%s170_s18 + $0x10] sm:$0xff]  ;;  %v180_v2 = vld [vmem:[%s170_s18 + $0x8] sm:$0xff] }
  0x11   : > { %v186_v3 = vsel %vm185_vm0, %v179_v0, 0.0  ;;  %v192_v4 = vsel %vm185_vm0, %v181_v1, 0.0  ;;  %v182_v5 = vld [vmem:[%s170_s18 + $0x18] sm:$0xff]  ;;  %v189_v6 = vsel %vm185_vm0, %v180_v2, 0.0 }
  0x12   : > { %187 = vadd.xlane.f32.xlu0 %v186_v3  ;;  %193 = vadd.xlane.f32.xlu1 %v192_v4  ;;  %v195_v7 = vsel %vm185_vm0, %v182_v5, 0.0 }
  0x16   : > { %190 = vadd.xlane.f32.xlu0 %v189_v6  ;;  %196 = vadd.xlane.f32.xlu1 %v195_v7 }
  0x9f   : > { %v188_v8 = vpop.xlane.xlu0 %187  ;;  %v194_v9 = vpop.xlane.xlu1 %193 }
  0xa0   : > { %v199_v10 = vmul.f32 0.03125, %v188_v8  ;;  %v201_v11 = vmul.f32 0.03125, %v194_v9 }
  0xa2   : > { %v203_v12 = vsub.f32 %v179_v0, %v199_v10  ;;  %v205_v13 = vsub.f32 %v181_v1, %v201_v11 }
  0xa3   : > { %v191_v14 = vpop.xlane.xlu0 %190  ;;  %v197_v15 = vpop.xlane.xlu1 %196 }
  0xa4   : > { %v200_v16 = vmul.f32 0.03125, %v191_v14  ;;  %v202_v17 = vmul.f32 0.03125, %v197_v15  ;;  %v207_v18 = vmul.f32 %v203_v12, %v203_v12  ;;  %v209_v19 = vmul.f32 %v205_v13, %v205_v13 }
  0xa6   : > { %v204_v20 = vsub.f32 %v180_v2, %v200_v16  ;;  %v206_v21 = vsub.f32 %v182_v5, %v202_v17  ;;  %v211_v22 = vsel %vm185_vm0, %v207_v18, 0.0  ;;  %v217_v23 = vsel %vm185_vm0, %v209_v19, 0.0 }
  0xa7   : > { %212 = vadd.xlane.f32.xlu0 %v211_v22 }
  0xa8   : > { %v208_v24 = vmul.f32 %v204_v20, %v204_v20  ;;  %v210_v25 = vmul.f32 %v206_v21, %v206_v21 }
  0xaa   : > { %v214_v26 = vsel %vm185_vm0, %v208_v24, 0.0  ;;  %v220_v27 = vsel %vm185_vm0, %v210_v25, 0.0 }
  0xab   : > { %218 = vadd.xlane.f32.xlu0 %v217_v23  ;;  %215 = vadd.xlane.f32.xlu1 %v214_v26 }
  0xaf   : > { %221 = vadd.xlane.f32.xlu1 %v220_v27 }
 0x134   : > { %v213_v28 = vpop.xlane.xlu0 %212 }
 0x135   : > { %v223_v29 = vmul.f32 0.03125, %v213_v28 }
 0x137   : > { %v227_v30 = vadd.f32 1e-05, %v223_v29 }
 0x138   : > { %v216_v31 = vpop.xlane.xlu1 %215  ;;  %v219_v32 = vpop.xlane.xlu0 %218 }
 0x139   : > { %371 = vrsqrt.f32 %v227_v30  ;;  %v224_v33 = vmul.f32 0.03125, %v216_v31  ;;  %v225_v34 = vmul.f32 0.03125, %v219_v32 }
 0x13b   : > { %v228_v35 = vadd.f32 1e-05, %v224_v33  ;;  %v229_v36 = vadd.f32 1e-05, %v225_v34 }
 0x13c   : > { %v222_v37 = vpop.xlane.xlu1 %221 }
 0x13d   : > { %373 = vrsqrt.f32 %v228_v35  ;;  %v226_v38 = vmul.f32 0.03125, %v222_v37 }
 0x13e   : > { %375 = vrsqrt.f32 %v229_v36 }
 0x13f   : > { %v230_v39 = vadd.f32 1e-05, %v226_v38 }
 0x141   : > { %377 = vrsqrt.f32 %v230_v39 }
 0x143   : > { %v372_v40 = vpop.eup %371 }
 0x144   : > { %v235_v42 = vmul.f32 %v372_v40, %v203_v12 }
 0x146   : > { %v245_v43 = vmul.f32 %v357_v41, %v235_v42 }
 0x147   : > { %v374_v44 = vpop.eup %373 }
 0x148   : > { %v376_v46 = vpop.eup %375  ;;  %v236_v47 = vmul.f32 %v374_v44, %v204_v20  ;;  %v255_v49 = vadd.f32 %v358_v45, %v245_v43 }
 0x149   : > { %v237_v48 = vmul.f32 %v376_v46, %v205_v13 }
 0x14a   : > { %v246_v50 = vmul.f32 %v357_v41, %v236_v47  ;;  %v259_v55 = vsel %vm185_vm0, %v255_v49, 0.0 }
 0x14b   : > { %v378_v51 = vpop.eup %377  ;;  %v247_v52 = vmul.f32 %v357_v41, %v237_v48 }
 0x14c   : > { %v256_v53 = vadd.f32 %v358_v45, %v246_v50  ;;  %v238_v54 = vmul.f32 %v378_v51, %v206_v21 }
 0x14d   : > { %v257_v57 = vadd.f32 %v358_v45, %v247_v52 }
 0x14e   : > { %v260_v56 = vsel %vm185_vm0, %v256_v53, 0.0  ;;  %v248_v58 = vmul.f32 %v357_v41, %v238_v54 }
 0x14f   : > { %v261_v59 = vadd.f32 %v260_v56, %v259_v55  ;;  %v268_v62 = vsel %vm185_vm0, %v257_v57, 0.0 }
 0x150   : > { %v258_v60 = vadd.f32 %v358_v45, %v248_v58 }
 0x151   : > { %v262_v61 = vrot.slane %v261_v59, 4 }
 0x152   : > { %v269_v63 = vsel %vm185_vm0, %v258_v60, 0.0 }
 0x153   : > { %v263_v0 = vadd.f32 %v262_v61, %v261_v59  ;;  %v270_v1 = vadd.f32 %v269_v63, %v268_v62 }
 0x155   : > { %v264_v2 = vrot.slane %v263_v0, 2  ;;  %v271_v3 = vrot.slane %v270_v1, 4 }
 0x157   : > { %v265_v4 = vadd.f32 %v264_v2, %v263_v0  ;;  %v272_v5 = vadd.f32 %v271_v3, %v270_v1 }
 0x159   : > { %v266_v6 = vrot.slane %v265_v4, 1  ;;  %v273_v7 = vrot.slane %v272_v5, 2 }
 0x15b   : > { %v267_v8 = vadd.f32 %v266_v6, %v265_v4  ;;  %v274_v9 = vadd.f32 %v273_v7, %v272_v5 }
 0x15d   : > { %v278_v10 = vmul.f32 0.0625, %v267_v8  ;;  %v275_v11 = vrot.slane %v274_v9, 1 }
 0x15f   : > { %v280_v12 = vsub.f32 %v255_v49, %v278_v10  ;;  %v281_v13 = vsub.f32 %v256_v53, %v278_v10  ;;  %v276_v14 = vadd.f32 %v275_v11, %v274_v9 }
 0x161   : > { %284 = vst.msk [vmem:[%s177_s25] sm:$0xff] %vm185_vm0, %v280_v12  ;;  %285 = vst.msk [vmem:[%s177_s25 + $0x8] sm:$0xff] %vm185_vm0, %v281_v13  ;;  %v279_v15 = vmul.f32 0.0625, %v276_v14 }
 0x163   : > { %v282_v16 = vsub.f32 %v257_v57, %v279_v15  ;;  %v283_v17 = vsub.f32 %v258_v60, %v279_v15 }
 0x165   : > { %286 = vst.msk [vmem:[%s177_s25 + $0x10] sm:$0xff] %vm185_vm0, %v282_v16  ;;  %287 = vst.msk [vmem:[%s177_s25 + $0x18] sm:$0xff] %vm185_vm0, %v283_v17 }
 0x166 PF: > { %s13_s12 = sadd.s32 1, %s385_s12  }
 0x167   : > { %p10_p4 = scmp.ge.s32.totalorder %s13_s12, 4  }
 0x169   :  { %12 = sbr.rel (!%p10_p4) target bundleno = 1 (0x1), region = 62 }

// kernel: autoformer_forward.17
= control target key start
LH: loop header
LB: loop body
LE: loop exit
PB: predicated region body
PF: predicated region fallthrough
CT: control target
= control target key end

     0   :  { %s735_s21 = smov 0   ;;  %s788_s0 = inlined_call_operand.vmem [shape: f32[4,16,32], index: 0, kind: input, shape index: {}]   ;;  %s789_s1 = inlined_call_operand.vmem [shape: f32[4,16,32], index: 1, kind: input, shape index: {}]   ;;  %s790_s2 = inlined_call_operand.vmem [shape: bf16[32,32], index: 2, kind: input, shape index: {}]   ;;  %s791_s3 = inlined_call_operand.vmem [shape: f32[1,32], index: 3, kind: input, shape index: {}]   ;;  %s792_s4 = inlined_call_operand.vmem [shape: bf16[16,16], index: 4, kind: input, shape index: {}]   ;;  %s793_s5 = inlined_call_operand.vmem [shape: f32[4,16,32], index: 5, kind: output, shape index: {0}]   ;;  %s794_s6 = inlined_call_operand.vmem [shape: f32[4,16,32], index: 6, kind: output, shape index: {1}]  }
   0x1 LB: > { %s614_s22 = sadd.s32 4294967295, %s696_s21   ;;  %p618_p0 = scmp.ge.s32.totalorder %s696_s21, 1  ;;  %s696_s21 = sphi %s735_s21, %s17_s21  }
   0x2   : > { %p229_p1 = scmp.lt.s32.totalorder %s696_s21, 3 }
   0x4   : > { %p230_p2 = pnand %p618_p0, %p229_p1 }
   0x5   : > { %v687_v0 = vld [vmem:[%s790_s2] sm:$0xff] (!%p230_p2)   ;;  %s619_s25 = sshll.u32 (!%p230_p2), %s614_s22, 1  ;;  %v688_v1 = vld [vmem:[%s790_s2 + $0x8] sm:$0xff] (!%p230_p2)   ;;  %vm331_vm0 = vcmask (!%p230_p2), 261120   ;;  %v698_v8 = vmov (!%p230_p2), 0.0   ;;  %vm699_vm1 = vmmov (!%p230_p2), 0  }
   0x6   : > { %233 = sbr.rel (%p230_p2) target bundleno = 471 (0x1d7), region = 40  ;;  %p274_p3 = scmp.lt.s32.totalorder (!%p230_p2), %s619_s25, 3  ;;  %657 = vmatprep.subr.bf16.mxu0 (!%p230_p2), %v687_v0  ;;  %665 = vmatprep.subr.bf16.mxu1 (!%p230_p2), %v698_v8  ;;  %v631_v9 = vld [vmem:[%s791_s3] ss:$0 sm:$0xff] (!%p230_p2)  ;;  %vm403_vm2 = vcmask (!%p230_p2), 130048  }
   0x7   : > { %658 = vmatpush3.bf16.msra.mxu0 (!%p230_p2), %v687_v0  ;;  %667 = vmatprep.mubr.msk.bf16.mxu1 (!%p230_p2), %vm699_vm1, %v698_v8  ;;  %v689_v26 = vld [vmem:[%s792_s4] sm:$0xff] (!%p230_p2)  }
   0x8   : > { %659 = vmatprep.subr.bf16.mxu0 (!%p230_p2), %v688_v1 }
   0xb   : > { %660 = vmatpush3.bf16.msra.mxu0 (!%p230_p2), %v688_v1 }
   0xd   : > { %s796_s25 = smov (!%p274_p3, %s619_s25), 3 }
   0xe   : > { %s749_s28 = sshll.u32 %s796_s25, 4 }
   0xf   : > { %s278_s7 = scalar_lea.vmem %s788_s0, %s749_s28  ;;  %s285_s12 = scalar_lea.vmem %s789_s1, %s749_s28 }
  0x10   : > { %v302_v2 = vld [vmem:[%s278_s7] sm:$0xff]  ;;  %v303_v3 = vld [vmem:[%s278_s7 + $0x8] sm:$0xff]  ;;  %v304_v4 = vld [vmem:[%s278_s7 + $0x10] sm:$0xff]  ;;  %s299_s17 = scalar_lea.vmem %s794_s6, %s749_s28  ;;  %s292_s20 = scalar_lea.vmem %s793_s5, %s749_s28 }
  0x11   : > { %v306_v5 = vpack.c.bf16 %v303_v3, %v302_v2  ;;  %v305_v6 = vld [vmem:[%s278_s7 + $0x18] sm:$0xff]  ;;  %v387_v14 = vld [vmem:[%s285_s12] sm:$0xff]  ;;  %v388_v16 = vld [vmem:[%s285_s12 + $0x8] sm:$0xff] }
  0x12   : > { %v307_v7 = vpack.c.bf16 %v305_v6, %v304_v4  ;;  %v390_v19 = vld [vmem:[%s285_s12 + $0x18] sm:$0xff]  ;;  %v389_v23 = vld [vmem:[%s285_s12 + $0x10] sm:$0xff] }
  0x13   : > { %661 = vmatprep.mubr.msk.bf16.mxu0 %vm331_vm0, %v306_v5 }
  0x14   : > { %662 = vmatmul.mubr.msk.bf16.vlgmr.msra.gmra.mrb[0].mxu0 %vm331_vm0, %v307_v7 }
  0xe7   : > { %v663_v10 = vpop.f32.mrb[0].mxu0 }
  0xe8   : > { %v372_v11 = vpop.f32.mrb[1].mxu0  ;;  %v381_v20 = vadd.f32 %v663_v10, %v631_v9 }
  0xe9   : > { %v373_v12 = vadd.f32 %v631_v9, %v372_v11  ;;  %v664_v13 = vpop.f32.mrb[2].mxu0 }
  0xea   : > { %v375_v15 = vpop.f32.mrb[3].mxu0  ;;  %v384_v17 = vadd.f32 %v664_v13, %v631_v9  ;;  %v393_v27 = vadd.f32 %v389_v23, %v381_v20 }
  0xeb   : > { %v376_v18 = vadd.f32 %v631_v9, %v375_v15  ;;  %v391_v21 = vadd.f32 %v387_v14, %v373_v12 }
  0xec   : > { %v394_v24 = vadd.f32 %v390_v19, %v384_v17 }
  0xed   : > { %v392_v22 = vadd.f32 %v388_v16, %v376_v18 }
  0xee   : > { %v456_v28 = vpack.c.bf16 %v394_v24, %v393_v27 }
  0xef   : > { %v397_v25 = vpack.c.bf16 %v392_v22, %v391_v21 }
  0xf1   : > { %666 = vmatpush3.bf16.msra.mxu1 %v397_v25 }
  0xf2   : > { %671 = vmatprep.subr.bf16.mxu1 %v698_v8 }
  0xf4   : > { %668 = vmatmul.mubr.msk.bf16.vlgmr.msra.gmra.mrb[0].mxu1 %vm403_vm2, %v689_v26 }
  0xf5   : > { %672 = vmatpush3.bf16.msra.mxu1 %v456_v28  ;;  %673 = vmatprep.mubr.msk.bf16.mxu1 %vm699_vm1, %v698_v8 }
  0xfc   : > { %674 = vmatmul.mubr.msk.bf16.vlgmr.msra.gmra.mrb[4].mxu1 %vm403_vm2, %v689_v26 }
 0x1c7   : > { %v441_v29 = vpop.f32.mrb[0].mxu1 }
 0x1c8   : > { %v448_v30 = vmul.f32 0.2, %v441_v29  ;;  %v669_v31 = vpop.f32.mrb[1].mxu1 }
 0x1c9   : > { %v444_v32 = vpop.f32.mrb[2].mxu1 }
 0x1ca   : > { %v450_v33 = vsub.f32 %v391_v21, %v448_v30  ;;  %454 = vst.msk [vmem:[%s299_s17] sm:$0xff] %vm331_vm0, %v448_v30  ;;  %v449_v34 = vmul.f32 0.2, %v444_v32  ;;  %v670_v35 = vpop.f32.mrb[3].mxu1 }
 0x1cc   : > { %452 = vst.msk [vmem:[%s292_s20] sm:$0xff] %vm331_vm0, %v450_v33  ;;  %v451_v36 = vsub.f32 %v392_v22, %v449_v34  ;;  %455 = vst.msk [vmem:[%s299_s17 + $0x8] sm:$0xff] %vm331_vm0, %v449_v34 }
 0x1ce   : > { %453 = vst.msk [vmem:[%s292_s20 + $0x8] sm:$0xff] %vm331_vm0, %v451_v36 }
 0x1cf   : > { %v491_v37 = vpop.f32.mrb[4].mxu1 }
 0x1d0   : > { %v498_v38 = vmul.f32 0.2, %v491_v37  ;;  %v675_v39 = vpop.f32.mrb[5].mxu1 }
 0x1d1   : > { %v494_v40 = vpop.f32.mrb[6].mxu1 }
 0x1d2   : > { %v500_v41 = vsub.f32 %v393_v27, %v498_v38  ;;  %641 = vst.msk [vmem:[%s299_s17 + $0x10] sm:$0xff] %vm331_vm0, %v498_v38  ;;  %v499_v42 = vmul.f32 0.2, %v494_v40  ;;  %v676_v43 = vpop.f32.mrb[7].mxu1 }
 0x1d4   : > { %639 = vst.msk [vmem:[%s292_s20 + $0x10] sm:$0xff] %vm331_vm0, %v500_v41  ;;  %v501_v44 = vsub.f32 %v394_v24, %v499_v42  ;;  %642 = vst.msk [vmem:[%s299_s17 + $0x18] sm:$0xff] %vm331_vm0, %v499_v42 }
 0x1d6   : > { %640 = vst.msk [vmem:[%s292_s20 + $0x18] sm:$0xff] %vm331_vm0, %v501_v44 }
 0x1d7 PF: > { %s17_s21 = sadd.s32 1, %s696_s21  }
 0x1d8   : > { %p14_p4 = scmp.ge.s32.totalorder %s17_s21, 4  }
 0x1da   :  { %16 = sbr.rel (!%p14_p4) target bundleno = 1 (0x1), region = 87 }

// kernel: autoformer_forward.23
= control target key start
LH: loop header
LB: loop body
LE: loop exit
PB: predicated region body
PF: predicated region fallthrough
CT: control target
= control target key end

     0   :  { %s730_s24 = smov 0   ;;  %s789_s0 = inlined_call_operand.vmem [shape: f32[4,16,32], index: 0, kind: input, shape index: {}]   ;;  %s790_s1 = inlined_call_operand.vmem [shape: f32[4,16,32], index: 1, kind: input, shape index: {}]   ;;  %s791_s2 = inlined_call_operand.vmem [shape: bf16[32,32], index: 2, kind: input, shape index: {}]   ;;  %s792_s3 = inlined_call_operand.vmem [shape: f32[1,32], index: 3, kind: input, shape index: {}]   ;;  %s793_s4 = inlined_call_operand.vmem [shape: bf16[32,64], index: 4, kind: input, shape index: {}]   ;;  %s794_s5 = inlined_call_operand.vmem [shape: f32[1,64], index: 5, kind: input, shape index: {}]   ;;  %s795_s6 = inlined_call_operand.vmem [shape: f32[4,16,32], index: 6, kind: output, shape index: {0}]   ;;  %s796_s7 = inlined_call_operand.vmem [shape: f32[4,16,64], index: 7, kind: output, shape index: {1}]  }
   0x1 LB: > { %s613_s25 = sadd.s32 4294967295, %s688_s24   ;;  %p617_p0 = scmp.ge.s32.totalorder %s688_s24, 1  ;;  %s688_s24 = sphi %s730_s24, %s18_s24  }
   0x2   : > { %p254_p1 = scmp.lt.s32.totalorder %s688_s24, 3 }
   0x4   : > { %p255_p2 = pnand %p617_p0, %p254_p1 }
   0x5   : > { %v678_v0 = vld [vmem:[%s791_s2] sm:$0xff] (!%p255_p2)   ;;  %s618_s28 = sshll.u32 (!%p255_p2), %s613_s25, 1  ;;  %v680_v2 = vld [vmem:[%s791_s2 + $0x8] sm:$0xff] (!%p255_p2)   ;;  %vm358_vm0 = vcmask (!%p255_p2), 261120   ;;  %vm502_vm1 = vcmask (!%p255_p2), 523264  }
   0x6   : > { %258 = sbr.rel (%p255_p2) target bundleno = 239 (0xef), region = 44  ;;  %v679_v1 = vld [vmem:[%s793_s4] sm:$0xff] (!%p255_p2)   ;;  %p301_p3 = scmp.lt.s32.totalorder (!%p255_p2), %s618_s28, 3  ;;  %654 = vmatprep.subr.bf16.mxu0 (!%p255_p2), %v678_v0  ;;  %v681_v3 = vld [vmem:[%s793_s4 + $0x8] sm:$0xff] (!%p255_p2)  }
   0x7   : > { %662 = vmatprep.subr.bf16.mxu1 (!%p255_p2), %v679_v1  ;;  %655 = vmatpush3.bf16.msra.mxu0 (!%p255_p2), %v678_v0  ;;  %v630_v16 = vld [vmem:[%s792_s3] ss:$0 sm:$0xff] (!%p255_p2) }
   0x8   : > { %663 = vmatpush3.bf16.msra.mxu1 (!%p255_p2), %v679_v1  ;;  %656 = vmatprep.subr.bf16.mxu0 (!%p255_p2), %v680_v2  ;;  %v635_v18 = vld [vmem:[%s794_s5] ss:$0 sm:$0xff] (!%p255_p2) }
   0x9   : > { %664 = vmatprep.subr.bf16.mxu1 (!%p255_p2), %v681_v3 }
   0xb   : > { %657 = vmatpush3.bf16.msra.mxu0 (!%p255_p2), %v680_v2 }
   0xc   : > { %665 = vmatpush3.bf16.msra.mxu1 (!%p255_p2), %v681_v3 }
   0xd   : > { %s798_s28 = smov (!%p301_p3, %s618_s28), 3 }
   0xe   : > { %s750_s12 = sshll.u32 %s798_s28, 4 }
   0xf   : > { %s305_s15 = scalar_lea.vmem %s789_s0, %s750_s12  ;;  %s312_s18 = scalar_lea.vmem %s790_s1, %s750_s12 }
  0x10   : > { %v329_v4 = vld [vmem:[%s305_s15] sm:$0xff]  ;;  %v330_v5 = vld [vmem:[%s305_s15 + $0x8] sm:$0xff]  ;;  %v331_v9 = vld [vmem:[%s305_s15 + $0x10] sm:$0xff]  ;;  %s319_s26 = scalar_lea.vmem %s795_s6, %s750_s12  ;;  %s326_s29 = scalar_lea.vmem %s796_s7, %s750_s12 }
  0x11   : > { %v418_v6 = vld [vmem:[%s312_s18] sm:$0xff]  ;;  %v333_v7 = vpack.c.bf16 %v330_v5, %v329_v4  ;;  %v419_v8 = vld [vmem:[%s312_s18 + $0x8] sm:$0xff]  ;;  %v332_v10 = vld [vmem:[%s305_s15 + $0x18] sm:$0xff] }
  0x12   : > { %v422_v11 = vpack.c.bf16 %v419_v8, %v418_v6  ;;  %v334_v12 = vpack.c.bf16 %v332_v10, %v331_v9  ;;  %v420_v13 = vld [vmem:[%s312_s18 + $0x10] sm:$0xff]  ;;  %v421_v14 = vld [vmem:[%s312_s18 + $0x18] sm:$0xff] }
  0x13   : > { %658 = vmatprep.mubr.msk.bf16.mxu0 %vm358_vm0, %v333_v7  ;;  %v423_v15 = vpack.c.bf16 %v421_v14, %v420_v13 }
  0x14   : > { %666 = vmatprep.mubr.msk.bf16.mxu1 %vm358_vm0, %v422_v11  ;;  %659 = vmatmul.mubr.msk.bf16.vlgmr.msra.gmra.mrb[0].mxu0 %vm358_vm0, %v334_v12 }
  0x15   : > { %667 = vmatmul.mubr.msk.bf16.vlgmr.msra.gmra.mrb[0].mxu1 %vm358_vm0, %v423_v15 }
  0xe7   : > { %v660_v17 = vpop.f32.mrb[0].mxu0 }
  0xe8   : > { %v668_v19 = vpop.f32.mrb[0].mxu1  ;;  %v399_v20 = vpop.f32.mrb[1].mxu0  ;;  %v408_v24 = vadd.f32 %v660_v17, %v630_v16 }
  0xe9   : > { %v400_v21 = vadd.f32 %v630_v16, %v399_v20  ;;  %v487_v22 = vpop.f32.mrb[1].mxu1  ;;  %v661_v23 = vpop.f32.mrb[2].mxu0  ;;  %v496_v28 = vadd.f32 %v668_v19, %v635_v18 }
  0xea   : > { %v488_v25 = vadd.f32 %v635_v18, %v487_v22  ;;  %v669_v26 = vpop.f32.mrb[2].mxu1  ;;  %v402_v27 = vpop.f32.mrb[3].mxu0  ;;  %416 = vst.msk [vmem:[%s319_s26 + $0x10] sm:$0xff] %vm358_vm0, %v408_v24  ;;  %v411_v31 = vadd.f32 %v661_v23, %v630_v16 }
  0xeb   : > { %414 = vst.msk [vmem:[%s319_s26] sm:$0xff] %vm358_vm0, %v400_v21  ;;  %v403_v29 = vadd.f32 %v630_v16, %v402_v27  ;;  %v490_v30 = vpop.f32.mrb[3].mxu1  ;;  %v499_v33 = vadd.f32 %v669_v26, %v635_v18 }
  0xec   : > { %503 = vst.msk [vmem:[%s326_s29] sm:$0xff] %vm502_vm1, %v488_v25  ;;  %v491_v32 = vadd.f32 %v635_v18, %v490_v30  ;;  %505 = vst.msk [vmem:[%s326_s29 + $0x10] sm:$0xff] %vm502_vm1, %v496_v28 }
  0xed   : > { %415 = vst.msk [vmem:[%s319_s26 + $0x8] sm:$0xff] %vm358_vm0, %v403_v29  ;;  %417 = vst.msk [vmem:[%s319_s26 + $0x18] sm:$0xff] %vm358_vm0, %v411_v31 }
  0xee   : > { %504 = vst.msk [vmem:[%s326_s29 + $0x8] sm:$0xff] %vm502_vm1, %v491_v32  ;;  %506 = vst.msk [vmem:[%s326_s29 + $0x18] sm:$0xff] %vm502_vm1, %v499_v33 }
  0xef PF: > { %s18_s24 = sadd.s32 1, %s688_s24  }
  0xf0   : > { %p15_p4 = scmp.ge.s32.totalorder %s18_s24, 4  }
  0xf2   :  { %17 = sbr.rel (!%p15_p4) target bundleno = 1 (0x1), region = 89 }

// kernel: autoformer_forward.25
= control target key start
LH: loop header
LB: loop body
LE: loop exit
PB: predicated region body
PF: predicated region fallthrough
CT: control target
= control target key end

     0   :  { %s772_s18 = smov 0   ;;  %s830_s0 = inlined_call_operand.vmem [shape: f32[4,16,32], index: 0, kind: input, shape index: {}]   ;;  %s831_s1 = inlined_call_operand.vmem [shape: bf16[32,64], index: 1, kind: input, shape index: {}]   ;;  %s832_s2 = inlined_call_operand.vmem [shape: bf16[64,32], index: 2, kind: input, shape index: {}]   ;;  %s833_s3 = inlined_call_operand.vmem [shape: bf16[16,16], index: 3, kind: input, shape index: {}]   ;;  %s834_s4 = inlined_call_operand.vmem [shape: f32[4,16,32], index: 4, kind: output, shape index: {0}]   ;;  %s835_s5 = inlined_call_operand.vmem [shape: f32[4,16,32], index: 5, kind: output, shape index: {1}]  }
   0x1 LB: > { %s633_s19 = sadd.s32 4294967295, %s738_s18   ;;  %p637_p0 = scmp.ge.s32.totalorder %s738_s18, 1  ;;  %s738_s18 = sphi %s772_s18, %s16_s18  }
   0x2   : > { %p192_p1 = scmp.lt.s32.totalorder %s738_s18, 3 }
   0x4   : > { %p193_p2 = pnand %p637_p0, %p192_p1 }
   0x5   : > { %v725_v0 = vld [vmem:[%s831_s1] sm:$0xff] (!%p193_p2)   ;;  %s638_s22 = sshll.u32 (!%p193_p2), %s633_s19, 1  ;;  %v726_v1 = vld [vmem:[%s831_s1 + $0x8] sm:$0xff] (!%p193_p2)   ;;  %vm272_vm0 = vcmask (!%p193_p2), 261120   ;;  %v729_v10 = vld [vmem:[%s832_s2 + $0x10] sm:$0xff] (!%p193_p2)   ;;  %vm366_vm1 = vcmask (!%p193_p2), 523264  }
   0x6   : > { %196 = sbr.rel (%p193_p2) target bundleno = 689 (0x2b1), region = 36  ;;  %p229_p3 = scmp.lt.s32.totalorder (!%p193_p2), %s638_s22, 3  ;;  %683 = vmatprep.subr.bf16.mxu0 (!%p193_p2), %v725_v0  ;;  %v727_v2 = vld [vmem:[%s832_s2] sm:$0xff] (!%p193_p2)   ;;  %v728_v3 = vld [vmem:[%s832_s2 + $0x8] sm:$0xff] (!%p193_p2)   ;;  %v730_v11 = vld [vmem:[%s832_s2 + $0x18] sm:$0xff] (!%p193_p2)   ;;  %v740_v22 = vmov (!%p193_p2), 0.0  }
   0x7   : > { %684 = vmatpush3.bf16.msra.mxu0 (!%p193_p2), %v725_v0  ;;  %691 = vmatprep.subr.bf16.mxu1 (!%p193_p2), %v727_v2  ;;  %vm741_vm2 = vmmov (!%p193_p2), 0   ;;  %v731_v31 = vld [vmem:[%s833_s3] sm:$0xff] (!%p193_p2)   ;;  %vm434_vm3 = vcmask (!%p193_p2), 130048  }
   0x8   : > { %685 = vmatprep.subr.bf16.mxu0 (!%p193_p2), %v726_v1  ;;  %692 = vmatpush3.bf16.msra.mxu1 (!%p193_p2), %v727_v2 }
   0x9   : > { %693 = vmatprep.subr.bf16.mxu1 (!%p193_p2), %v728_v3 }
   0xb   : > { %686 = vmatpush3.bf16.msra.mxu0 (!%p193_p2), %v726_v1 }
   0xc   : > { %694 = vmatpush3.bf16.msra.mxu1 (!%p193_p2), %v728_v3  ;;  %703 = vmatprep.subr.bf16.mxu0 (!%p193_p2), %v740_v22 }
   0xd   : > { %s837_s22 = smov (!%p229_p3, %s638_s22), 3  ;;  %695 = vmatprep.subr.bf16.mxu1 %v729_v10 }
   0xe   : > { %s792_s29 = sshll.u32 %s837_s22, 4 }
   0xf   : > { %s233_s7 = scalar_lea.vmem %s830_s0, %s792_s29  ;;  %s247_s16 = scalar_lea.vmem %s835_s5, %s792_s29 }
  0x10   : > { %v250_v4 = vld [vmem:[%s233_s7] sm:$0xff]  ;;  %v251_v5 = vld [vmem:[%s233_s7 + $0x8] sm:$0xff]  ;;  %v252_v6 = vld [vmem:[%s233_s7 + $0x10] sm:$0xff]  ;;  %696 = vmatpush3.bf16.msra.mxu1 %v729_v10  ;;  %s240_s20 = scalar_lea.vmem %s834_s4, %s792_s29 }
  0x11   : > { %v254_v7 = vpack.c.bf16 %v251_v5, %v250_v4  ;;  %v253_v8 = vld [vmem:[%s233_s7 + $0x18] sm:$0xff]  ;;  %697 = vmatprep.subr.bf16.mxu1 %v730_v11 }
  0x12   : > { %v255_v9 = vpack.c.bf16 %v253_v8, %v252_v6 }
  0x13   : > { %687 = vmatprep.mubr.msk.bf16.mxu0 %vm272_vm0, %v254_v7 }
  0x14   : > { %688 = vmatmul.mubr.msk.bf16.vlgmr.msra.gmra.mrb[0].mxu0 %vm272_vm0, %v255_v9  ;;  %698 = vmatpush3.bf16.msra.mxu1 %v730_v11 }
  0x15   : > { %705 = vmatprep.mubr.msk.bf16.mxu0 %vm741_vm2, %v740_v22 }
  0xe7   : > { %v689_v12 = vpop.f32.mrb[0].mxu0 }
  0xe8   : > { %v313_v13 = vpop.f32.mrb[1].mxu0  ;;  %v330_v15 = vmax.f32 %v689_v12, 0.0 }
  0xe9   : > { %v690_v14 = vpop.f32.mrb[2].mxu0  ;;  %v328_v18 = vmax.f32 %v313_v13, 0.0 }
  0xea   : > { %v331_v16 = vmax.f32 %v690_v14, 0.0  ;;  %v316_v17 = vpop.f32.mrb[3].mxu0 }
  0xeb   : > { %v329_v19 = vmax.f32 %v316_v17, 0.0 }
  0xec   : > { %v333_v20 = vpack.c.bf16 %v331_v16, %v330_v15 }
  0xed   : > { %v332_v21 = vpack.c.bf16 %v329_v19, %v328_v18 }
  0xef   : > { %699 = vmatprep.mubr.msk.bf16.mxu1 %vm366_vm1, %v332_v21 }
  0xf0   : > { %700 = vmatmul.mubr.msk.bf16.vlgmr.msra.gmra.mrb[0].mxu1 %vm366_vm1, %v333_v20 }
 0x1c3   : > { %v701_v23 = vpop.f32.mrb[0].mxu1 }
 0x1c4   : > { %v407_v24 = vpop.f32.mrb[1].mxu1  ;;  %v424_v32 = vadd.f32 %v701_v23, %v252_v6 }
 0x1c5   : > { %v702_v25 = vpop.f32.mrb[2].mxu1  ;;  %v422_v27 = vadd.f32 %v407_v24, %v250_v4 }
 0x1c6   : > { %v410_v26 = vpop.f32.mrb[3].mxu1  ;;  %v425_v29 = vadd.f32 %v702_v25, %v253_v8 }
 0x1c7   : > { %v423_v28 = vadd.f32 %v410_v26, %v251_v5 }
 0x1c8   : > { %v487_v33 = vpack.c.bf16 %v425_v29, %v424_v32 }
 0x1c9   : > { %v428_v30 = vpack.c.bf16 %v423_v28, %v422_v27 }
 0x1cb   : > { %704 = vmatpush3.bf16.msra.mxu0 %v428_v30 }
 0x1cc   : > { %709 = vmatprep.subr.bf16.mxu0 %v740_v22 }
 0x1ce   : > { %706 = vmatmul.mubr.msk.bf16.vlgmr.msra.gmra.mrb[4].mxu0 %vm434_vm3, %v731_v31 }
 0x1cf   : > { %710 = vmatpush3.bf16.msra.mxu0 %v487_v33  ;;  %711 = vmatprep.mubr.msk.bf16.mxu0 %vm741_vm2, %v740_v22 }
 0x1d6   : > { %712 = vmatmul.mubr.msk.bf16.vlgmr.msra.gmra.mrb[8].mxu0 %vm434_vm3, %v731_v31 }
 0x2a1   : > { %v472_v34 = vpop.f32.mrb[4].mxu0 }
 0x2a2   : > { %v479_v35 = vmul.f32 0.2, %v472_v34  ;;  %v707_v36 = vpop.f32.mrb[5].mxu0 }
 0x2a3   : > { %v475_v37 = vpop.f32.mrb[6].mxu0 }
 0x2a4   : > { %v481_v38 = vsub.f32 %v422_v27, %v479_v35  ;;  %485 = vst.msk [vmem:[%s247_s16] sm:$0xff] %vm272_vm0, %v479_v35  ;;  %v480_v39 = vmul.f32 0.2, %v475_v37  ;;  %v708_v40 = vpop.f32.mrb[7].mxu0 }
 0x2a6   : > { %483 = vst.msk [vmem:[%s240_s20] sm:$0xff] %vm272_vm0, %v481_v38  ;;  %v482_v41 = vsub.f32 %v423_v28, %v480_v39  ;;  %486 = vst.msk [vmem:[%s247_s16 + $0x8] sm:$0xff] %vm272_vm0, %v480_v39 }
 0x2a8   : > { %484 = vst.msk [vmem:[%s240_s20 + $0x8] sm:$0xff] %vm272_vm0, %v482_v41 }
 0x2a9   : > { %v522_v42 = vpop.f32.mrb[8].mxu0 }
 0x2aa   : > { %v529_v43 = vmul.f32 0.2, %v522_v42  ;;  %v713_v44 = vpop.f32.mrb[9].mxu0 }
 0x2ab   : > { %v525_v45 = vpop.f32.mrb[10].mxu0 }
 0x2ac   : > { %v531_v46 = vsub.f32 %v424_v32, %v529_v43  ;;  %662 = vst.msk [vmem:[%s247_s16 + $0x10] sm:$0xff] %vm272_vm0, %v529_v43  ;;  %v530_v47 = vmul.f32 0.2, %v525_v45  ;;  %v714_v48 = vpop.f32.mrb[11].mxu0 }
 0x2ae   : > { %660 = vst.msk [vmem:[%s240_s20 + $0x10] sm:$0xff] %vm272_vm0, %v531_v46  ;;  %v532_v49 = vsub.f32 %v425_v29, %v530_v47  ;;  %663 = vst.msk [vmem:[%s247_s16 + $0x18] sm:$0xff] %vm272_vm0, %v530_v47 }
 0x2b0   : > { %661 = vst.msk [vmem:[%s240_s20 + $0x18] sm:$0xff] %vm272_vm0, %v532_v49 }
 0x2b1 PF: > { %s16_s18 = sadd.s32 1, %s738_s18  }
 0x2b2   : > { %p13_p4 = scmp.ge.s32.totalorder %s16_s18, 4  }
 0x2b4   :  { %15 = sbr.rel (!%p13_p4) target bundleno = 1 (0x1), region = 80 }

// kernel: autoformer_forward.26
= control target key start
LH: loop header
LB: loop body
LE: loop exit
PB: predicated region body
PF: predicated region fallthrough
CT: control target
= control target key end

     0   :  { %s719_s18 = smov 0   ;;  %s774_s0 = inlined_call_operand.vmem [shape: f32[4,16,32], index: 0, kind: input, shape index: {}]   ;;  %s775_s1 = inlined_call_operand.vmem [shape: f32[4,16,32], index: 1, kind: input, shape index: {}]   ;;  %s776_s2 = inlined_call_operand.vmem [shape: f32[4,16,32], index: 2, kind: input, shape index: {}]   ;;  %s777_s3 = inlined_call_operand.vmem [shape: f32[4,16,128], index: 3, kind: input, shape index: {}]   ;;  %s778_s4 = inlined_call_operand.vmem [shape: bf16[32,384], index: 4, kind: input, shape index: {}]   ;;  %s779_s5 = inlined_call_operand.vmem [shape: f32[4,16,128], index: 5, kind: output, shape index: {}]  }
   0x1 LB: > { %s614_s19 = sadd.s32 4294967295, %s686_s18   ;;  %p618_p0 = scmp.ge.s32.totalorder %s686_s18, 1  ;;  %s686_s18 = sphi %s719_s18, %s15_s18  }
   0x2   : > { %p225_p1 = scmp.lt.s32.totalorder %s686_s18, 3 }
   0x4   : > { %p226_p2 = pnand %p618_p0, %p225_p1 }
   0x5   : > { %v672_v0 = vld [vmem:[%s778_s4 + $0x4] ss:$12 sps:$4 sm:$0xff] (!%p226_p2)   ;;  %s619_s22 = sshll.u32 (!%p226_p2), %s614_s19, 1  ;;  %v674_v1 = vld [vmem:[%s778_s4] ss:$12 sps:$4 sm:$0xff] (!%p226_p2)   ;;  %v688_v2 = vmov (!%p226_p2), 0   ;;  %v484_v29 = vlaneseq (!%p226_p2) }
   0x6   : > { %229 = sbr.rel (%p226_p2) target bundleno = 256 (0x100), region = 40  ;;  %410 = vmatprep.mubr.bf16.mxu0 (!%p226_p2), %v688_v2  ;;  %378 = vmatprep.subr.bf16.mxu0 (!%p226_p2), %v672_v0  ;;  %v675_v3 = vld [vmem:[%s778_s4 + $0x8] ss:$12 sps:$4 sm:$0xff] (!%p226_p2)   ;;  %p274_p3 = scmp.lt.s32.totalorder (!%p226_p2), %s619_s22, 3  ;;  %v678_v5 = vld [vmem:[%s778_s4 + $0x18] ss:$12 sps:$4 sm:$0xff] (!%p226_p2)  }
   0x7   : > { %379 = vmatpush1.bf16.msra.mxu0 (!%p226_p2), %v674_v1  ;;  %v676_v4 = vld [vmem:[%s778_s4 + $0x1c] ss:$12 sps:$4 sm:$0xff] (!%p226_p2)   ;;  %655 = vmatprep.subr.bf16.mxu1 (!%p226_p2), %v675_v3  ;;  %v679_v6 = vld [vmem:[%s778_s4 + $0x20] ss:$12 sps:$4 sm:$0xff] (!%p226_p2)   ;;  %vm371_vm0 = vcmask (!%p226_p2), 261120   ;;  %v485_v30 = vshrl.u32 (!%p226_p2), %v484_v29, 7 }
   0x8   : > { %656 = vmatpush3.bf16.msra.mxu1 (!%p226_p2), %v675_v3  ;;  %380 = vmatprep.subr.bf16.mxu0 (!%p226_p2), %v676_v4 }
   0x9   : > { %657 = vmatprep.subr.bf16.mxu1 (!%p226_p2), %v679_v6  ;;  %vm486_vm1 = vcmp.lt.s32.totalorder (!%p226_p2), %v485_v30, 1  ;;  %vm499_vm2 = vcmp.lt.s32.totalorder (!%p226_p2), %v485_v30, 7 }
   0xb   : > { %381 = vmatpush1.bf16.msra.mxu0 (!%p226_p2), %v678_v5 }
   0xc   : > { %658 = vmatpush3.bf16.msra.mxu1 (!%p226_p2), %v679_v6 }
   0xd   : > { %s781_s22 = smov (!%p274_p3, %s619_s22), 3 }
   0xe   : > { %s745_s8 = sshll.u32 %s781_s22, 4 }
   0xf   : > { %s278_s11 = scalar_lea.vmem %s774_s0, %s745_s8  ;;  %s285_s14 = scalar_lea.vmem %s775_s1, %s745_s8 }
  0x10   : > { %s292_s17 = scalar_lea.vmem %s776_s2, %s745_s8  ;;  %v309_v7 = vld [vmem:[%s278_s11] sm:$0xff]  ;;  %v310_v8 = vld [vmem:[%s278_s11 + $0x8] sm:$0xff]  ;;  %v311_v15 = vld [vmem:[%s278_s11 + $0x10] sm:$0xff]  ;;  %s299_s21 = scalar_lea.vmem %s777_s3, %s745_s8 }
  0x11   : > { %v313_v9 = vld [vmem:[%s285_s14] sm:$0xff]  ;;  %v314_v10 = vld [vmem:[%s285_s14 + $0x8] sm:$0xff]  ;;  %v312_v16 = vld [vmem:[%s278_s11 + $0x18] sm:$0xff]  ;;  %s306_s24 = scalar_lea.vmem %s779_s5, %s745_s8 }
  0x12   : > { %v317_v11 = vadd.f32 %v313_v9, %v309_v7  ;;  %v321_v12 = vld [vmem:[%s292_s17] sm:$0xff]  ;;  %v322_v13 = vld [vmem:[%s292_s17 + $0x8] sm:$0xff]  ;;  %v318_v14 = vadd.f32 %v314_v10, %v310_v8  ;;  %v315_v17 = vld [vmem:[%s285_s14 + $0x10] sm:$0xff] }
  0x13   : > { %v316_v19 = vld [vmem:[%s285_s14 + $0x18] sm:$0xff]  ;;  %v319_v20 = vadd.f32 %v315_v17, %v311_v15  ;;  %v323_v21 = vld [vmem:[%s292_s17 + $0x10] sm:$0xff]  ;;  %v508_v53 = vld [vmem:[%s299_s21] sm:$0xff] }
  0x14   : > { %v325_v18 = vadd.f32 %v321_v12, %v317_v11  ;;  %v324_v22 = vld [vmem:[%s292_s17 + $0x18] sm:$0xff]  ;;  %v326_v23 = vadd.f32 %v322_v13, %v318_v14  ;;  %v320_v24 = vadd.f32 %v316_v19, %v312_v16  ;;  %v509_v54 = vld [vmem:[%s299_s21 + $0x8] sm:$0xff]  ;;  %v510_v5 = vld [vmem:[%s299_s21 + $0x10] sm:$0xff] }
  0x15   : > { %v327_v25 = vadd.f32 %v323_v21, %v319_v20  ;;  %v511_v6 = vld [vmem:[%s299_s21 + $0x18] sm:$0xff] }
  0x16   : > { %v329_v26 = vpack.c.bf16 %v326_v23, %v325_v18  ;;  %v328_v27 = vadd.f32 %v324_v22, %v320_v24 }
  0x18   : > { %640 = vmatmul.mubr.msk.bf16.vlgmr.msra.gmra.mrb[0].mxu0 %vm371_vm0, %v329_v26  ;;  %659 = vmatprep.mubr.msk.bf16.mxu1 %vm371_vm0, %v329_v26  ;;  %v330_v28 = vpack.c.bf16 %v328_v27, %v327_v25 }
  0x19   : > { %420 = vmatprep.mubr.bf16.mxu0 %v688_v2 }
  0x1a   : > { %660 = vmatmul.mubr.msk.bf16.vlgmr.msra.gmra.mrb[0].mxu1 %vm371_vm0, %v330_v28 }
  0x20   : > { %641 = vmatmul.mubr.msk.bf16.gmra.mrb[4].mxu0 %vm371_vm0, %v330_v28 }
  0xeb   : > { %v412_v31 = vpop.f32.mrb[0].mxu0 }
  0xec   : > { %v414_v32 = vpop.f32.mrb[1].mxu0  ;;  %v480_v35 = vrot.slane %v412_v31, 7 }
  0xed   : > { %v661_v33 = vpop.f32.mrb[0].mxu1  ;;  %v416_v34 = vpop.f32.mrb[2].mxu0 }
  0xee   : > { %v496_v36 = vrot.slane %v661_v33, 1  ;;  %v482_v37 = vrot.slane %v416_v34, 7  ;;  %v465_v38 = vpop.f32.mrb[1].mxu1  ;;  %v418_v39 = vpop.f32.mrb[3].mxu0 }
  0xef   : > { %v495_v40 = vrot.slane %v465_v38, 1  ;;  %v662_v41 = vpop.f32.mrb[2].mxu1 }
  0xf0   : > { %v489_v42 = vsel %vm486_vm1, %v482_v37, %v480_v35  ;;  %v487_v43 = vsel %vm486_vm1, %v480_v35, %v482_v37  ;;  %v498_v44 = vrot.slane %v662_v41, 1  ;;  %v468_v45 = vpop.f32.mrb[3].mxu1 }
  0xf1   : > { %v491_v46 = vadd.f32 %v489_v42, %v414_v32  ;;  %v492_v47 = vadd.f32 %v487_v43, %v418_v39  ;;  %v497_v48 = vrot.slane %v468_v45, 1 }
  0xf2   : > { %v501_v49 = vsel %vm499_vm2, %v496_v36, %v498_v44  ;;  %v503_v50 = vsel %vm499_vm2, %v498_v44, %v496_v36 }
  0xf3   : > { %v500_v51 = vsel %vm499_vm2, %v495_v40, %v497_v48  ;;  %v502_v52 = vsel %vm499_vm2, %v497_v48, %v495_v40  ;;  %v422_v55 = vpop.f32.mrb[4].mxu0 }
  0xf4   : > { %v504_v56 = vadd.f32 %v500_v51, %v491_v46  ;;  %v505_v57 = vadd.f32 %v502_v52, %v492_v47  ;;  %v424_v58 = vpop.f32.mrb[5].mxu0  ;;  %v481_v62 = vrot.slane %v422_v55, 7 }
  0xf5   : > { %v426_v59 = vpop.f32.mrb[6].mxu0 }
  0xf6   : > { %v512_v60 = vadd.f32 %v508_v53, %v504_v56  ;;  %v513_v61 = vadd.f32 %v509_v54, %v505_v57  ;;  %v483_v63 = vrot.slane %v426_v59, 7  ;;  %v428_v0 = vpop.f32.mrb[7].mxu0 }
  0xf8   : > { %516 = vst [vmem:[%s306_s24] sm:$0xff] %v512_v60  ;;  %517 = vst [vmem:[%s306_s24 + $0x8] sm:$0xff] %v513_v61  ;;  %v490_v1 = vsel %vm486_vm1, %v483_v63, %v481_v62  ;;  %v488_v2 = vsel %vm486_vm1, %v481_v62, %v483_v63 }
  0xf9   : > { %v493_v3 = vadd.f32 %v490_v1, %v424_v58  ;;  %v494_v4 = vadd.f32 %v488_v2, %v428_v0 }
  0xfb   : > { %v506_v7 = vadd.f32 %v501_v49, %v493_v3  ;;  %v507_v8 = vadd.f32 %v503_v50, %v494_v4 }
  0xfd   : > { %v514_v9 = vadd.f32 %v510_v5, %v506_v7  ;;  %v515_v10 = vadd.f32 %v511_v6, %v507_v8 }
  0xff   : > { %518 = vst [vmem:[%s306_s24 + $0x10] sm:$0xff] %v514_v9  ;;  %519 = vst [vmem:[%s306_s24 + $0x18] sm:$0xff] %v515_v10 }
 0x100 PF: > { %s15_s18 = sadd.s32 1, %s686_s18  }
 0x101   : > { %p12_p4 = scmp.ge.s32.totalorder %s15_s18, 4  }
 0x103   :  { %14 = sbr.rel (!%p12_p4) target bundleno = 1 (0x1), region = 79 }

// kernel: autoformer_forward.27
= control target key start
LH: loop header
LB: loop body
LE: loop exit
PB: predicated region body
PF: predicated region fallthrough
CT: control target
= control target key end

     0   :  { %s571_s18 = smov 0   ;;  %s624_s0 = inlined_call_operand.vmem [shape: f32[4,16,32], index: 0, kind: input, shape index: {}]   ;;  %s625_s1 = inlined_call_operand.vmem [shape: f32[1,32], index: 1, kind: input, shape index: {}]   ;;  %s626_s2 = inlined_call_operand.vmem [shape: f32[1,32], index: 2, kind: input, shape index: {}]   ;;  %s627_s3 = inlined_call_operand.vmem [shape: bf16[32,128], index: 3, kind: input, shape index: {}]   ;;  %s628_s4 = inlined_call_operand.vmem [shape: f32[1,128], index: 4, kind: input, shape index: {}]   ;;  %s629_s5 = inlined_call_operand.vmem [shape: f32[4,16,128], index: 5, kind: output, shape index: {}]  }
   0x1 LB: > { %s481_s19 = sadd.s32 4294967295, %s539_s18   ;;  %p485_p0 = scmp.ge.s32.totalorder %s539_s18, 1  ;;  %s539_s18 = sphi %s571_s18, %s15_s18  }
   0x2   : > { %p189_p1 = scmp.lt.s32.totalorder %s539_s18, 3 }
   0x4   : > { %p190_p2 = pnand %p485_p0, %p189_p1 }
   0x5   : > { %s486_s20 = sshll.u32 (!%p190_p2), %s481_s19, 1  ;;  %vm240_vm0 = vcmask (!%p190_p2), 261120   ;;  %v523_v28 = vld [vmem:[%s627_s3] sm:$0xff] (!%p190_p2)   ;;  %v524_v29 = vld [vmem:[%s627_s3 + $0x8] sm:$0xff] (!%p190_p2)  }
   0x6   : > { %193 = sbr.rel (%p190_p2) target bundleno = 577 (0x241), region = 40  ;;  %p220_p3 = scmp.lt.s32.totalorder (!%p190_p2), %s486_s20, 3  ;;  %507 = vmatprep.subr.bf16.mxu0 (!%p190_p2), %v523_v28  ;;  %v492_v43 = vld [vmem:[%s625_s1] ss:$0 sm:$0xff] (!%p190_p2) }
   0x7   : > { %508 = vmatpush3.bf16.msra.mxu0 (!%p190_p2), %v523_v28  ;;  %v493_v47 = vld [vmem:[%s626_s2] ss:$0 sm:$0xff] (!%p190_p2) }
   0x8   : > { %509 = vmatprep.subr.bf16.mxu0 (!%p190_p2), %v524_v29 }
   0xb   : > { %510 = vmatpush3.bf16.msra.mxu0 (!%p190_p2), %v524_v29 }
   0xd   : > { %s631_s20 = smov (!%p220_p3, %s486_s20), 3 }
   0xe   : > { %s501_s21 = sshll.u32 %s631_s20, 4 }
   0xf   : > { %s224_s24 = scalar_lea.vmem %s624_s0, %s501_s21  ;;  %s231_s12 = scalar_lea.vmem %s629_s5, %s501_s21 }
  0x10   : > { %v234_v0 = vld [vmem:[%s224_s24] sm:$0xff]  ;;  %v236_v1 = vld [vmem:[%s224_s24 + $0x10] sm:$0xff]  ;;  %v235_v2 = vld [vmem:[%s224_s24 + $0x8] sm:$0xff] }
  0x11   : > { %v241_v3 = vsel %vm240_vm0, %v234_v0, 0.0  ;;  %v247_v4 = vsel %vm240_vm0, %v236_v1, 0.0  ;;  %v237_v5 = vld [vmem:[%s224_s24 + $0x18] sm:$0xff]  ;;  %v244_v6 = vsel %vm240_vm0, %v235_v2, 0.0 }
  0x12   : > { %242 = vadd.xlane.f32.xlu0 %v241_v3  ;;  %248 = vadd.xlane.f32.xlu1 %v247_v4  ;;  %v250_v7 = vsel %vm240_vm0, %v237_v5, 0.0 }
  0x16   : > { %245 = vadd.xlane.f32.xlu0 %v244_v6  ;;  %251 = vadd.xlane.f32.xlu1 %v250_v7 }
  0x9f   : > { %v243_v8 = vpop.xlane.xlu0 %242  ;;  %v249_v9 = vpop.xlane.xlu1 %248 }
  0xa0   : > { %v254_v10 = vmul.f32 0.03125, %v243_v8  ;;  %v256_v11 = vmul.f32 0.03125, %v249_v9 }
  0xa2   : > { %v258_v12 = vsub.f32 %v234_v0, %v254_v10  ;;  %v260_v13 = vsub.f32 %v236_v1, %v256_v11 }
  0xa3   : > { %v246_v14 = vpop.xlane.xlu0 %245  ;;  %v252_v15 = vpop.xlane.xlu1 %251 }
  0xa4   : > { %v255_v16 = vmul.f32 0.03125, %v246_v14  ;;  %v257_v17 = vmul.f32 0.03125, %v252_v15  ;;  %v262_v18 = vmul.f32 %v258_v12, %v258_v12  ;;  %v264_v19 = vmul.f32 %v260_v13, %v260_v13 }
  0xa6   : > { %v259_v20 = vsub.f32 %v235_v2, %v255_v16  ;;  %v261_v21 = vsub.f32 %v237_v5, %v257_v17  ;;  %v266_v22 = vsel %vm240_vm0, %v262_v18, 0.0  ;;  %v272_v23 = vsel %vm240_vm0, %v264_v19, 0.0 }
  0xa7   : > { %267 = vadd.xlane.f32.xlu0 %v266_v22  ;;  %v494_v22 = vld [vmem:[%s628_s4] ss:$0 sm:$0xff] }
  0xa8   : > { %v263_v24 = vmul.f32 %v259_v20, %v259_v20  ;;  %v265_v25 = vmul.f32 %v261_v21, %v261_v21 }
  0xaa   : > { %v269_v26 = vsel %vm240_vm0, %v263_v24, 0.0  ;;  %v275_v27 = vsel %vm240_vm0, %v265_v25, 0.0 }
  0xab   : > { %273 = vadd.xlane.f32.xlu0 %v272_v23  ;;  %270 = vadd.xlane.f32.xlu1 %v269_v26 }
  0xaf   : > { %276 = vadd.xlane.f32.xlu1 %v275_v27 }
 0x134   : > { %v268_v30 = vpop.xlane.xlu0 %267 }
 0x135   : > { %v278_v31 = vmul.f32 0.03125, %v268_v30 }
 0x137   : > { %v282_v32 = vadd.f32 1e-05, %v278_v31 }
 0x138   : > { %v271_v33 = vpop.xlane.xlu1 %270  ;;  %v274_v34 = vpop.xlane.xlu0 %273 }
 0x139   : > { %525 = vrsqrt.f32 %v282_v32  ;;  %v279_v35 = vmul.f32 0.03125, %v271_v33  ;;  %v280_v36 = vmul.f32 0.03125, %v274_v34 }
 0x13b   : > { %v283_v37 = vadd.f32 1e-05, %v279_v35  ;;  %v284_v38 = vadd.f32 1e-05, %v280_v36 }
 0x13c   : > { %v277_v39 = vpop.xlane.xlu1 %276 }
 0x13d   : > { %527 = vrsqrt.f32 %v283_v37  ;;  %v281_v40 = vmul.f32 0.03125, %v277_v39 }
 0x13e   : > { %529 = vrsqrt.f32 %v284_v38 }
 0x13f   : > { %v285_v41 = vadd.f32 1e-05, %v281_v40 }
 0x141   : > { %531 = vrsqrt.f32 %v285_v41 }
 0x143   : > { %v526_v42 = vpop.eup %525 }
 0x144   : > { %v290_v44 = vmul.f32 %v526_v42, %v258_v12 }
 0x146   : > { %v300_v45 = vmul.f32 %v492_v43, %v290_v44 }
 0x147   : > { %v528_v46 = vpop.eup %527 }
 0x148   : > { %v530_v48 = vpop.eup %529  ;;  %v291_v49 = vmul.f32 %v528_v46, %v259_v20  ;;  %v310_v52 = vadd.f32 %v493_v47, %v300_v45 }
 0x149   : > { %v292_v50 = vmul.f32 %v530_v48, %v260_v13 }
 0x14a   : > { %v301_v51 = vmul.f32 %v492_v43, %v291_v49  ;;  %v314_v57 = vsel %vm240_vm0, %v310_v52, 0.0 }
 0x14b   : > { %v532_v53 = vpop.eup %531  ;;  %v302_v54 = vmul.f32 %v492_v43, %v292_v50 }
 0x14c   : > { %v293_v55 = vmul.f32 %v532_v53, %v261_v21  ;;  %v311_v56 = vadd.f32 %v493_v47, %v301_v51 }
 0x14d   : > { %v312_v60 = vadd.f32 %v493_v47, %v302_v54 }
 0x14e   : > { %v315_v58 = vsel %vm240_vm0, %v311_v56, 0.0  ;;  %v303_v59 = vmul.f32 %v492_v43, %v293_v55 }
 0x14f   : > { %v316_v61 = vadd.f32 %v315_v58, %v314_v57  ;;  %v323_v0 = vsel %vm240_vm0, %v312_v60, 0.0 }
 0x150   : > { %v313_v62 = vadd.f32 %v493_v47, %v303_v59 }
 0x151   : > { %v317_v63 = vrot.slane %v316_v61, 4 }
 0x152   : > { %v324_v1 = vsel %vm240_vm0, %v313_v62, 0.0 }
 0x153   : > { %v318_v2 = vadd.f32 %v317_v63, %v316_v61  ;;  %v325_v3 = vadd.f32 %v324_v1, %v323_v0 }
 0x155   : > { %v319_v4 = vrot.slane %v318_v2, 2  ;;  %v326_v5 = vrot.slane %v325_v3, 4 }
 0x157   : > { %v320_v6 = vadd.f32 %v319_v4, %v318_v2  ;;  %v327_v7 = vadd.f32 %v326_v5, %v325_v3 }
 0x159   : > { %v321_v8 = vrot.slane %v320_v6, 1  ;;  %v328_v9 = vrot.slane %v327_v7, 2 }
 0x15b   : > { %v322_v10 = vadd.f32 %v321_v8, %v320_v6  ;;  %v329_v11 = vadd.f32 %v328_v9, %v327_v7 }
 0x15d   : > { %v333_v12 = vmul.f32 0.0625, %v322_v10  ;;  %v330_v13 = vrot.slane %v329_v11, 1 }
 0x15f   : > { %v335_v14 = vsub.f32 %v310_v52, %v333_v12  ;;  %v336_v15 = vsub.f32 %v311_v56, %v333_v12  ;;  %v331_v16 = vadd.f32 %v330_v13, %v329_v11 }
 0x161   : > { %v339_v17 = vpack.c.bf16 %v336_v15, %v335_v14  ;;  %v334_v18 = vmul.f32 0.0625, %v331_v16 }
 0x163   : > { %511 = vmatprep.mubr.msk.bf16.mxu0 %vm240_vm0, %v339_v17  ;;  %v337_v19 = vsub.f32 %v312_v60, %v334_v18  ;;  %v338_v20 = vsub.f32 %v313_v62, %v334_v18 }
 0x165   : > { %v340_v21 = vpack.c.bf16 %v338_v20, %v337_v19 }
 0x167   : > { %512 = vmatmul.mubr.msk.bf16.vlgmr.msra.gmra.mrb[0].mxu0 %vm240_vm0, %v340_v21 }
 0x23a   : > { %v513_v23 = vpop.f32.mrb[0].mxu0 }
 0x23b   : > { %v404_v24 = vpop.f32.mrb[1].mxu0  ;;  %v413_v27 = vadd.f32 %v513_v23, %v494_v22 }
 0x23c   : > { %v405_v25 = vadd.f32 %v494_v22, %v404_v24  ;;  %v514_v26 = vpop.f32.mrb[2].mxu0 }
 0x23d   : > { %v407_v28 = vpop.f32.mrb[3].mxu0  ;;  %421 = vst [vmem:[%s231_s12 + $0x10] sm:$0xff] %v413_v27  ;;  %v416_v30 = vadd.f32 %v514_v26, %v494_v22 }
 0x23e   : > { %419 = vst [vmem:[%s231_s12] sm:$0xff] %v405_v25  ;;  %v408_v29 = vadd.f32 %v494_v22, %v407_v28 }
 0x23f   : > { %422 = vst [vmem:[%s231_s12 + $0x18] sm:$0xff] %v416_v30 }
 0x240   : > { %420 = vst [vmem:[%s231_s12 + $0x8] sm:$0xff] %v408_v29 }
 0x241 PF: > { %s15_s18 = sadd.s32 1, %s539_s18  }
 0x242   : > { %p12_p4 = scmp.ge.s32.totalorder %s15_s18, 4  }
 0x244   :  { %14 = sbr.rel (!%p12_p4) target bundleno = 1 (0x1), region = 70 }

</bundles_post_ra>
